<compile_context>
chip_gen: v6e
topology: v6e:2x2x1
jax: 0.10.0
libtpu: 0.0.40
codegen_flags: <defaults>
</compile_context>

<pallas_src>
from functools import partial

import jax
import jax.numpy as jnp
from jax.experimental import pallas as pl
from jax.experimental.pallas import tpu as pltpu

F_IN = 784        # 28 * 28
F_PAD = 896       # 7 * 128, lane-dense padding of the image features
Z_DIM = 10
H_DIM = 20        # encoder output width (mu ++ sigma)


def _round_up(x, m):
    return (x + m - 1) // m * m


def _cdiv(a, b):
    return (a + b - 1) // b


def _vae_kernel(x_ref, eps_ref,
                ew0, eb0, ew1, eb1, ew2, eb2, ew3, eb3,
                dw0, db0, dw1, db1, dw2, db2, dw3, db3,
                recon_ref, kld_ref, *, batch_size, tile_b):
    f32 = jnp.float32
    bf16 = jnp.bfloat16

    def dense(a, w_ref, b_ref):
        # bf16 x bf16 on the MXU, f32 accumulate; bias add in f32.
        return jnp.dot(a.astype(bf16), w_ref[...],
                       preferred_element_type=f32) + b_ref[...]

    def dense_relu(a, w_ref, b_ref):
        return jnp.maximum(dense(a, w_ref, b_ref), 0.0)

    # ---- encoder: 896(=784 padded) -> 512 -> 256 -> 64 -> 20, all ReLU ----
    h = dense_relu(x_ref[...], ew0, eb0)      # (TB, 512)
    h = dense_relu(h, ew1, eb1)               # (TB, 256)
    h = dense_relu(h, ew2, eb2)               # (TB, 64)
    y = dense_relu(h, ew3, eb3)               # (TB, 20)  encoder ends in ReLU

    # chunk(2, dim=1): first 10 lanes -> mu, last 10 -> sigma (static slices).
    mu = y[:, :Z_DIM]
    sigma = y[:, Z_DIM:2 * Z_DIM]

    # ---- reparameterization: z = mu + sigma * eps ----
    z = mu + sigma * eps_ref[...]             # (TB, 10)

    # ---- per-tile KLD partial sum, padded rows masked out ----
    sig2 = sigma * sigma
    term = mu * mu + sig2 - jnp.log(1e-8 + sig2) - 1.0
    row0 = pl.program_id(0) * tile_b
    rows = row0 + jax.lax.broadcasted_iota(jnp.int32, (tile_b, 1), 0)
    valid = (rows < batch_size).astype(f32)
    kld_ref[0, 0] = jnp.sum(term * valid)     # scalar -> SMEM

    # ---- decoder: 10 -> 64 -> 256 -> 512 -> 896(=784 padded), sigmoid ----
    d = dense_relu(z, dw0, db0)               # (TB, 64)
    d = dense_relu(d, dw1, db1)               # (TB, 256)
    d = dense_relu(d, dw2, db2)               # (TB, 512)
    logits = dense(d, dw3, db3)               # (TB, 896)
    # single-transcendental sigmoid: sigmoid(x) = 0.5 * tanh(0.5 * x) + 0.5
    recon = 0.5 * jnp.tanh(0.5 * logits) + 0.5
    recon_ref[...] = recon.astype(recon_ref.dtype)


def prepare_params(params):
    """Cast / pad logical f32 params into kernel layout.

    Weight matrices -> bf16; ew0 rows padded 784->896 with zeros; dw3 columns
    and db3 padded 784->896 with zeros.  Biases stay f32 with shape (1, out).
    """
    (ew0, eb0, ew1, eb1, ew2, eb2, ew3, eb3,
     dw0, db0, dw1, db1, dw2, db2, dw3, db3) = params
    bf16, f32 = jnp.bfloat16, jnp.float32

    ew0p = jnp.zeros((F_PAD, ew0.shape[1]), bf16).at[:F_IN, :].set(ew0.astype(bf16))
    dw3p = jnp.zeros((dw3.shape[0], F_PAD), bf16).at[:, :F_IN].set(dw3.astype(bf16))
    db3p = jnp.zeros((1, F_PAD), f32).at[:, :F_IN].set(db3.astype(f32))

    return (ew0p, eb0.astype(f32),
            ew1.astype(bf16), eb1.astype(f32),
            ew2.astype(bf16), eb2.astype(f32),
            ew3.astype(bf16), eb3.astype(f32),
            dw0.astype(bf16), db0.astype(f32),
            dw1.astype(bf16), db1.astype(f32),
            dw2.astype(bf16), db2.astype(f32),
            dw3p, db3p)


@jax.jit
def vae_forward(x_nchw, eps, params):
    B = x_nchw.shape[0]

    # Tile so there are >= 2 grid steps whenever B allows it (v7x dual-TC),
    # capped at 512 rows per tile (VMEM ~12 MiB worst case, well under limits).
    tile_b = min(512, max(8, _round_up(_cdiv(B, 2), 8)))
    b_pad = _round_up(B, tile_b)
    num_tiles = b_pad // tile_b

    # Build the padded input directly in bf16 (no f32 intermediate copy).
    x2d = x_nchw.reshape(B, F_IN).astype(jnp.bfloat16)
    x_p = jnp.zeros((b_pad, F_PAD), jnp.bfloat16).at[:B, :F_IN].set(x2d)
    eps_p = jnp.zeros((b_pad, Z_DIM), jnp.float32).at[:B, :].set(
        eps.astype(jnp.float32))

    kparams = prepare_params(params)

    def act_spec(width):
        return pl.BlockSpec((tile_b, width), lambda i: (i, 0))

    def resident_spec(arr):
        # Constant block index across the grid -> DMA'd once, stays in VMEM.
        return pl.BlockSpec(arr.shape, lambda i: (0, 0))

    in_specs = ([act_spec(F_PAD), act_spec(Z_DIM)]
                + [resident_spec(p) for p in kparams])
    out_specs = (
        act_spec(F_PAD),                                   # recon, bf16, lane-dense
        pl.BlockSpec((1, 1), lambda i: (i, 0),             # per-tile KLD scalar
                     memory_space=pltpu.MemorySpace.SMEM),
    )

    # Advisory cost hint for XLA scheduling around the custom call.
    flops_per_row = 2 * (F_PAD * 512 + 512 * 256 + 256 * 64 + 64 * H_DIM
                         + Z_DIM * 64 + 64 * 256 + 256 * 512 + 512 * F_PAD)
    weight_bytes = sum(int(p.size) * p.dtype.itemsize for p in kparams)
    act_bytes = b_pad * (F_PAD * 2 + Z_DIM * 4 + F_PAD * 2) + num_tiles * 4
    cost = pl.CostEstimate(flops=int(b_pad * flops_per_row),
                           transcendentals=int(b_pad * (F_PAD + Z_DIM)),
                           bytes_accessed=int(weight_bytes + act_bytes))

    kernel = partial(_vae_kernel, batch_size=B, tile_b=tile_b)

    recon_p, kld_tiles = pl.pallas_call(
        kernel,
        out_shape=(jax.ShapeDtypeStruct((b_pad, F_PAD), jnp.bfloat16),
                   jax.ShapeDtypeStruct((num_tiles, 1), jnp.float32)),
        grid_spec=pltpu.PrefetchScalarGridSpec(
            num_scalar_prefetch=0, grid=(num_tiles,),
            in_specs=in_specs, out_specs=out_specs),
        compiler_params=pltpu.CompilerParams(
            dimension_semantics=("parallel",),
            vmem_limit_bytes=32 * 1024 * 1024),
        cost_estimate=cost,
    )(x_p, eps_p, *kparams)

    kld = 0.5 * jnp.sum(kld_tiles) / (B * F_IN)
    recon = recon_p[:B, :F_IN].astype(jnp.float32).reshape(B, 1, 28, 28)
    return recon, kld


def init_params(key):
    """PyTorch-Linear-style init (uniform +/- 1/sqrt(fan_in)), all f32.

    Weights stored (in, out) so the kernel computes x @ W + b, equivalent to
    PyTorch's x @ W.T + b with W of shape (out, in).
    """
    def lin(k, fan_in, fan_out):
        kw, kb = jax.random.split(k)
        limit = 1.0 / (fan_in ** 0.5)
        w = jax.random.uniform(kw, (fan_in, fan_out), jnp.float32, -limit, limit)
        b = jax.random.uniform(kb, (1, fan_out), jnp.float32, -limit, limit)
        return w, b

    keys = jax.random.split(key, 8)
    ew0, eb0 = lin(keys[0], 784, 512)
    ew1, eb1 = lin(keys[1], 512, 256)
    ew2, eb2 = lin(keys[2], 256, 64)
    ew3, eb3 = lin(keys[3], 64, 20)       # kept whole; chunked in-kernel
    dw0, db0 = lin(keys[4], 10, 64)
    dw1, db1 = lin(keys[5], 64, 256)
    dw2, db2 = lin(keys[6], 256, 512)
    dw3, db3 = lin(keys[7], 512, 784)
    return (ew0, eb0, ew1, eb1, ew2, eb2, ew3, eb3,
            dw0, db0, dw1, db1, dw2, db2, dw3, db3)


if __name__ == "__main__":
    key = jax.random.PRNGKey(0)
    kx, keps, kp = jax.random.split(key, 3)

    B = 8
    x = jax.random.normal(kx, (B, 1, 28, 28), dtype=jnp.float32)
    # torch.randn_like(sigma): i.i.d. standard normal noise, shape (B, 10),
    # generated host-side for determinism and passed into the kernel.
    eps = jax.random.normal(keps, (B, Z_DIM), dtype=jnp.float32)

    params = init_params(kp)

    recon, kld = vae_forward(x, eps, params)
    recon = jax.block_until_ready(recon)
    kld = jax.block_until_ready(kld)

    assert recon.shape == (B, 1, 28, 28), recon.shape
    assert kld.shape == (), kld.shape
    assert bool(jnp.all(jnp.isfinite(recon))) and bool(jnp.isfinite(kld))
    # sigmoid (tanh form) output lies in [0, 1] exactly
    assert bool(jnp.all(recon >= 0.0)) and bool(jnp.all(recon <= 1.0))

    print("KERNEL_OK")
</pallas_src>

<mosaic_0001>
module attributes {stable_mosaic.version = 11 : i64} {
  func.func @_vae_kernel(%arg0: i32, %arg1: memref<8x896xbf16, #tpu.memory_space<vmem>>, %arg2: memref<8x10xf32, #tpu.memory_space<vmem>>, %arg3: memref<896x512xbf16, #tpu.memory_space<vmem>>, %arg4: memref<1x512xf32, #tpu.memory_space<vmem>>, %arg5: memref<512x256xbf16, #tpu.memory_space<vmem>>, %arg6: memref<1x256xf32, #tpu.memory_space<vmem>>, %arg7: memref<256x64xbf16, #tpu.memory_space<vmem>>, %arg8: memref<1x64xf32, #tpu.memory_space<vmem>>, %arg9: memref<64x20xbf16, #tpu.memory_space<vmem>>, %arg10: memref<1x20xf32, #tpu.memory_space<vmem>>, %arg11: memref<10x64xbf16, #tpu.memory_space<vmem>>, %arg12: memref<1x64xf32, #tpu.memory_space<vmem>>, %arg13: memref<64x256xbf16, #tpu.memory_space<vmem>>, %arg14: memref<1x256xf32, #tpu.memory_space<vmem>>, %arg15: memref<256x512xbf16, #tpu.memory_space<vmem>>, %arg16: memref<1x512xf32, #tpu.memory_space<vmem>>, %arg17: memref<512x896xbf16, #tpu.memory_space<vmem>>, %arg18: memref<1x896xf32, #tpu.memory_space<vmem>>, %arg19: memref<8x896xbf16, #tpu.memory_space<vmem>>, %arg20: memref<1x1xf32, #tpu.memory_space<smem>>) attributes {dimension_semantics = [#tpu.dimension_semantics<parallel>], iteration_bounds = array<i64: 1>, scalar_prefetch = 0 : i64, scratch_operands = 0 : i64, tpu.core_type = #tpu.core_type<tc>, window_params = [{transform_indices = @transform_0, window_bounds = array<i64: 8, 896>}, {transform_indices = @transform_1, window_bounds = array<i64: 8, 10>}, {pipeline_mode = #tpu.pipeline_mode<synchronous>, transform_indices = @transform_2, window_bounds = array<i64: 896, 512>}, {pipeline_mode = #tpu.pipeline_mode<synchronous>, transform_indices = @transform_3, window_bounds = array<i64: 1, 512>}, {pipeline_mode = #tpu.pipeline_mode<synchronous>, transform_indices = @transform_4, window_bounds = array<i64: 512, 256>}, {pipeline_mode = #tpu.pipeline_mode<synchronous>, transform_indices = @transform_5, window_bounds = array<i64: 1, 256>}, {pipeline_mode = #tpu.pipeline_mode<synchronous>, transform_indices = @transform_6, window_bounds = array<i64: 256, 64>}, {pipeline_mode = #tpu.pipeline_mode<synchronous>, transform_indices = @transform_7, window_bounds = array<i64: 1, 64>}, {pipeline_mode = #tpu.pipeline_mode<synchronous>, transform_indices = @transform_8, window_bounds = array<i64: 64, 20>}, {pipeline_mode = #tpu.pipeline_mode<synchronous>, transform_indices = @transform_9, window_bounds = array<i64: 1, 20>}, {pipeline_mode = #tpu.pipeline_mode<synchronous>, transform_indices = @transform_10, window_bounds = array<i64: 10, 64>}, {pipeline_mode = #tpu.pipeline_mode<synchronous>, transform_indices = @transform_11, window_bounds = array<i64: 1, 64>}, {pipeline_mode = #tpu.pipeline_mode<synchronous>, transform_indices = @transform_12, window_bounds = array<i64: 64, 256>}, {pipeline_mode = #tpu.pipeline_mode<synchronous>, transform_indices = @transform_13, window_bounds = array<i64: 1, 256>}, {pipeline_mode = #tpu.pipeline_mode<synchronous>, transform_indices = @transform_14, window_bounds = array<i64: 256, 512>}, {pipeline_mode = #tpu.pipeline_mode<synchronous>, transform_indices = @transform_15, window_bounds = array<i64: 1, 512>}, {pipeline_mode = #tpu.pipeline_mode<synchronous>, transform_indices = @transform_16, window_bounds = array<i64: 512, 896>}, {pipeline_mode = #tpu.pipeline_mode<synchronous>, transform_indices = @transform_17, window_bounds = array<i64: 1, 896>}, {transform_indices = @transform_18, window_bounds = array<i64: 8, 896>}, {transform_indices = @transform_19, window_bounds = array<i64: 1, 1>}]} {
    %c0 = arith.constant 0 : index
    %c0_0 = arith.constant 0 : index
    %0 = vector.load %arg1[%c0, %c0_0] : memref<8x896xbf16, #tpu.memory_space<vmem>>, vector<8x896xbf16>
    %c0_1 = arith.constant 0 : index
    %c0_2 = arith.constant 0 : index
    %1 = vector.load %arg3[%c0_1, %c0_2] : memref<896x512xbf16, #tpu.memory_space<vmem>>, vector<896x512xbf16>
    %cst = arith.constant dense<0.000000e+00> : vector<8x512xf32>
    %2 = tpu.matmul %0, %1, %cst {dimension_numbers = #tpu.dot_dimension_numbers<[1], [0], [0], [1], [0, 0, 1, 1], [], []>} : vector<8x896xbf16>, vector<896x512xbf16>, vector<8x512xf32> -> vector<8x512xf32>
    %c0_3 = arith.constant 0 : index
    %c0_4 = arith.constant 0 : index
    %3 = vector.load %arg4[%c0_3, %c0_4] : memref<1x512xf32, #tpu.memory_space<vmem>>, vector<1x512xf32>
    %4 = vector.broadcast %3 : vector<1x512xf32> to vector<8x512xf32>
    %5 = arith.addf %2, %4 : vector<8x512xf32>
    %cst_5 = arith.constant 0.000000e+00 : f32
    %6 = vector.broadcast %cst_5 : f32 to vector<8x512xf32>
    %7 = arith.maximumf %5, %6 : vector<8x512xf32>
    %8 = arith.truncf %7 : vector<8x512xf32> to vector<8x512xbf16>
    %c0_6 = arith.constant 0 : index
    %c0_7 = arith.constant 0 : index
    %9 = vector.load %arg5[%c0_6, %c0_7] : memref<512x256xbf16, #tpu.memory_space<vmem>>, vector<512x256xbf16>
    %cst_8 = arith.constant dense<0.000000e+00> : vector<8x256xf32>
    %10 = tpu.matmul %8, %9, %cst_8 {dimension_numbers = #tpu.dot_dimension_numbers<[1], [0], [0], [1], [0, 0, 1, 1], [], []>} : vector<8x512xbf16>, vector<512x256xbf16>, vector<8x256xf32> -> vector<8x256xf32>
    %c0_9 = arith.constant 0 : index
    %c0_10 = arith.constant 0 : index
    %11 = vector.load %arg6[%c0_9, %c0_10] : memref<1x256xf32, #tpu.memory_space<vmem>>, vector<1x256xf32>
    %12 = vector.broadcast %11 : vector<1x256xf32> to vector<8x256xf32>
    %13 = arith.addf %10, %12 : vector<8x256xf32>
    %cst_11 = arith.constant 0.000000e+00 : f32
    %14 = vector.broadcast %cst_11 : f32 to vector<8x256xf32>
    %15 = arith.maximumf %13, %14 : vector<8x256xf32>
    %16 = arith.truncf %15 : vector<8x256xf32> to vector<8x256xbf16>
    %c0_12 = arith.constant 0 : index
    %c0_13 = arith.constant 0 : index
    %17 = vector.load %arg7[%c0_12, %c0_13] : memref<256x64xbf16, #tpu.memory_space<vmem>>, vector<256x64xbf16>
    %cst_14 = arith.constant dense<0.000000e+00> : vector<8x64xf32>
    %18 = tpu.matmul %16, %17, %cst_14 {dimension_numbers = #tpu.dot_dimension_numbers<[1], [0], [0], [1], [0, 0, 1, 1], [], []>} : vector<8x256xbf16>, vector<256x64xbf16>, vector<8x64xf32> -> vector<8x64xf32>
    %c0_15 = arith.constant 0 : index
    %c0_16 = arith.constant 0 : index
    %19 = vector.load %arg8[%c0_15, %c0_16] : memref<1x64xf32, #tpu.memory_space<vmem>>, vector<1x64xf32>
    %20 = vector.broadcast %19 : vector<1x64xf32> to vector<8x64xf32>
    %21 = arith.addf %18, %20 : vector<8x64xf32>
    %cst_17 = arith.constant 0.000000e+00 : f32
    %22 = vector.broadcast %cst_17 : f32 to vector<8x64xf32>
    %23 = arith.maximumf %21, %22 : vector<8x64xf32>
    %24 = arith.truncf %23 : vector<8x64xf32> to vector<8x64xbf16>
    %c0_18 = arith.constant 0 : index
    %c0_19 = arith.constant 0 : index
    %25 = vector.load %arg9[%c0_18, %c0_19] : memref<64x20xbf16, #tpu.memory_space<vmem>>, vector<64x20xbf16>
    %cst_20 = arith.constant dense<0.000000e+00> : vector<8x20xf32>
    %26 = tpu.matmul %24, %25, %cst_20 {dimension_numbers = #tpu.dot_dimension_numbers<[1], [0], [0], [1], [0, 0, 1, 1], [], []>} : vector<8x64xbf16>, vector<64x20xbf16>, vector<8x20xf32> -> vector<8x20xf32>
    %c0_21 = arith.constant 0 : index
    %c0_22 = arith.constant 0 : index
    %27 = vector.load %arg10[%c0_21, %c0_22] : memref<1x20xf32, #tpu.memory_space<vmem>>, vector<1x20xf32>
    %28 = vector.broadcast %27 : vector<1x20xf32> to vector<8x20xf32>
    %29 = arith.addf %26, %28 : vector<8x20xf32>
    %cst_23 = arith.constant 0.000000e+00 : f32
    %30 = vector.broadcast %cst_23 : f32 to vector<8x20xf32>
    %31 = arith.maximumf %29, %30 : vector<8x20xf32>
    %32 = vector.extract_strided_slice %31 {offsets = [0, 0], sizes = [8, 10], strides = [1, 1]} : vector<8x20xf32> to vector<8x10xf32>
    %33 = vector.extract_strided_slice %31 {offsets = [0, 10], sizes = [8, 10], strides = [1, 1]} : vector<8x20xf32> to vector<8x10xf32>
    %c0_24 = arith.constant 0 : index
    %c0_25 = arith.constant 0 : index
    %34 = vector.load %arg2[%c0_24, %c0_25] : memref<8x10xf32, #tpu.memory_space<vmem>>, vector<8x10xf32>
    %35 = arith.mulf %33, %34 : vector<8x10xf32>
    %36 = arith.addf %32, %35 : vector<8x10xf32>
    %37 = arith.mulf %33, %33 : vector<8x10xf32>
    %38 = arith.mulf %32, %32 : vector<8x10xf32>
    %39 = arith.addf %38, %37 : vector<8x10xf32>
    %cst_26 = arith.constant 9.99999993E-9 : f32
    %40 = vector.broadcast %cst_26 : f32 to vector<8x10xf32>
    %41 = arith.addf %40, %37 : vector<8x10xf32>
    %42 = math.log %41 : vector<8x10xf32>
    %43 = arith.subf %39, %42 : vector<8x10xf32>
    %cst_27 = arith.constant 1.000000e+00 : f32
    %44 = vector.broadcast %cst_27 : f32 to vector<8x10xf32>
    %45 = arith.subf %43, %44 : vector<8x10xf32>
    %c8_i32 = arith.constant 8 : i32
    %46 = arith.muli %arg0, %c8_i32 : i32
    %47 = tpu.iota {dimensions = array<i32: 0>} : vector<8x1xi32>
    %48 = vector.broadcast %46 : i32 to vector<8x1xi32>
    %49 = arith.addi %48, %47 : vector<8x1xi32>
    %c8_i32_28 = arith.constant 8 : i32
    %50 = vector.broadcast %c8_i32_28 : i32 to vector<8x1xi32>
    %51 = arith.cmpi slt, %49, %50 : vector<8x1xi32>
    %52 = arith.extui %51 : vector<8x1xi1> to vector<8x1xi32>
    %53 = arith.sitofp %52 : vector<8x1xi32> to vector<8x1xf32>
    %54 = vector.broadcast %53 : vector<8x1xf32> to vector<8x10xf32>
    %55 = arith.mulf %45, %54 : vector<8x10xf32>
    %56 = vector.shape_cast %55 : vector<8x10xf32> to vector<1x8x10xf32>
    %cst_29 = arith.constant dense<0.000000e+00> : vector<1xf32>
    %57 = vector.multi_reduction <add>, %56, %cst_29 [1, 2] : vector<1x8x10xf32> to vector<1xf32>
    %58 = vector.shape_cast %57 : vector<1xf32> to vector<1x1x1xf32>
    %59 = vector.extract %58[0, 0, 0] : f32 from vector<1x1x1xf32>
    %c0_30 = arith.constant 0 : index
    %c0_31 = arith.constant 0 : index
    %60 = memref.load %arg20[%c0_30, %c0_31] : memref<1x1xf32, #tpu.memory_space<smem>>
    memref.store %59, %arg20[%c0_30, %c0_31] : memref<1x1xf32, #tpu.memory_space<smem>>
    %61 = arith.truncf %36 : vector<8x10xf32> to vector<8x10xbf16>
    %c0_32 = arith.constant 0 : index
    %c0_33 = arith.constant 0 : index
    %62 = vector.load %arg11[%c0_32, %c0_33] : memref<10x64xbf16, #tpu.memory_space<vmem>>, vector<10x64xbf16>
    %cst_34 = arith.constant dense<0.000000e+00> : vector<8x64xf32>
    %63 = tpu.matmul %61, %62, %cst_34 {dimension_numbers = #tpu.dot_dimension_numbers<[1], [0], [0], [1], [0, 0, 1, 1], [], []>} : vector<8x10xbf16>, vector<10x64xbf16>, vector<8x64xf32> -> vector<8x64xf32>
    %c0_35 = arith.constant 0 : index
    %c0_36 = arith.constant 0 : index
    %64 = vector.load %arg12[%c0_35, %c0_36] : memref<1x64xf32, #tpu.memory_space<vmem>>, vector<1x64xf32>
    %65 = vector.broadcast %64 : vector<1x64xf32> to vector<8x64xf32>
    %66 = arith.addf %63, %65 : vector<8x64xf32>
    %cst_37 = arith.constant 0.000000e+00 : f32
    %67 = vector.broadcast %cst_37 : f32 to vector<8x64xf32>
    %68 = arith.maximumf %66, %67 : vector<8x64xf32>
    %69 = arith.truncf %68 : vector<8x64xf32> to vector<8x64xbf16>
    %c0_38 = arith.constant 0 : index
    %c0_39 = arith.constant 0 : index
    %70 = vector.load %arg13[%c0_38, %c0_39] : memref<64x256xbf16, #tpu.memory_space<vmem>>, vector<64x256xbf16>
    %cst_40 = arith.constant dense<0.000000e+00> : vector<8x256xf32>
    %71 = tpu.matmul %69, %70, %cst_40 {dimension_numbers = #tpu.dot_dimension_numbers<[1], [0], [0], [1], [0, 0, 1, 1], [], []>} : vector<8x64xbf16>, vector<64x256xbf16>, vector<8x256xf32> -> vector<8x256xf32>
    %c0_41 = arith.constant 0 : index
    %c0_42 = arith.constant 0 : index
    %72 = vector.load %arg14[%c0_41, %c0_42] : memref<1x256xf32, #tpu.memory_space<vmem>>, vector<1x256xf32>
    %73 = vector.broadcast %72 : vector<1x256xf32> to vector<8x256xf32>
    %74 = arith.addf %71, %73 : vector<8x256xf32>
    %cst_43 = arith.constant 0.000000e+00 : f32
    %75 = vector.broadcast %cst_43 : f32 to vector<8x256xf32>
    %76 = arith.maximumf %74, %75 : vector<8x256xf32>
    %77 = arith.truncf %76 : vector<8x256xf32> to vector<8x256xbf16>
    %c0_44 = arith.constant 0 : index
    %c0_45 = arith.constant 0 : index
    %78 = vector.load %arg15[%c0_44, %c0_45] : memref<256x512xbf16, #tpu.memory_space<vmem>>, vector<256x512xbf16>
    %cst_46 = arith.constant dense<0.000000e+00> : vector<8x512xf32>
    %79 = tpu.matmul %77, %78, %cst_46 {dimension_numbers = #tpu.dot_dimension_numbers<[1], [0], [0], [1], [0, 0, 1, 1], [], []>} : vector<8x256xbf16>, vector<256x512xbf16>, vector<8x512xf32> -> vector<8x512xf32>
    %c0_47 = arith.constant 0 : index
    %c0_48 = arith.constant 0 : index
    %80 = vector.load %arg16[%c0_47, %c0_48] : memref<1x512xf32, #tpu.memory_space<vmem>>, vector<1x512xf32>
    %81 = vector.broadcast %80 : vector<1x512xf32> to vector<8x512xf32>
    %82 = arith.addf %79, %81 : vector<8x512xf32>
    %cst_49 = arith.constant 0.000000e+00 : f32
    %83 = vector.broadcast %cst_49 : f32 to vector<8x512xf32>
    %84 = arith.maximumf %82, %83 : vector<8x512xf32>
    %85 = arith.truncf %84 : vector<8x512xf32> to vector<8x512xbf16>
    %c0_50 = arith.constant 0 : index
    %c0_51 = arith.constant 0 : index
    %86 = vector.load %arg17[%c0_50, %c0_51] : memref<512x896xbf16, #tpu.memory_space<vmem>>, vector<512x896xbf16>
    %cst_52 = arith.constant dense<0.000000e+00> : vector<8x896xf32>
    %87 = tpu.matmul %85, %86, %cst_52 {dimension_numbers = #tpu.dot_dimension_numbers<[1], [0], [0], [1], [0, 0, 1, 1], [], []>} : vector<8x512xbf16>, vector<512x896xbf16>, vector<8x896xf32> -> vector<8x896xf32>
    %c0_53 = arith.constant 0 : index
    %c0_54 = arith.constant 0 : index
    %88 = vector.load %arg18[%c0_53, %c0_54] : memref<1x896xf32, #tpu.memory_space<vmem>>, vector<1x896xf32>
    %89 = vector.broadcast %88 : vector<1x896xf32> to vector<8x896xf32>
    %90 = arith.addf %87, %89 : vector<8x896xf32>
    %cst_55 = arith.constant 5.000000e-01 : f32
    %91 = vector.broadcast %cst_55 : f32 to vector<8x896xf32>
    %92 = arith.mulf %91, %90 : vector<8x896xf32>
    %93 = math.tanh %92 : vector<8x896xf32>
    %cst_56 = arith.constant 5.000000e-01 : f32
    %94 = vector.broadcast %cst_56 : f32 to vector<8x896xf32>
    %95 = arith.mulf %94, %93 : vector<8x896xf32>
    %cst_57 = arith.constant 5.000000e-01 : f32
    %96 = vector.broadcast %cst_57 : f32 to vector<8x896xf32>
    %97 = arith.addf %95, %96 : vector<8x896xf32>
    %98 = arith.truncf %97 : vector<8x896xf32> to vector<8x896xbf16>
    %c0_58 = arith.constant 0 : index
    %c0_59 = arith.constant 0 : index
    %99 = vector.load %arg19[%c0_58, %c0_59] : memref<8x896xbf16, #tpu.memory_space<vmem>>, vector<8x896xbf16>
    tpu.vector_store %arg19[%c0_58, %c0_59], %98 {strides = array<i32>} : memref<8x896xbf16, #tpu.memory_space<vmem>>, vector<8x896xbf16>,
    return
  }
  func.func @transform_0(%arg0: i32) -> (i32, i32) {
    %c0_i32 = arith.constant 0 : i32
    %c0_i32_0 = arith.constant 0 : i32
    return %arg0, %c0_i32 : i32, i32
  }
  func.func @transform_1(%arg0: i32) -> (i32, i32) {
    %c0_i32 = arith.constant 0 : i32
    %c0_i32_0 = arith.constant 0 : i32
    return %arg0, %c0_i32 : i32, i32
  }
  func.func @transform_2(%arg0: i32) -> (i32, i32) {
    %c0_i32 = arith.constant 0 : i32
    %c0_i32_0 = arith.constant 0 : i32
    %c0_i32_1 = arith.constant 0 : i32
    return %c0_i32, %c0_i32_0 : i32, i32
  }
  func.func @transform_3(%arg0: i32) -> (i32, i32) {
    %c0_i32 = arith.constant 0 : i32
    %c0_i32_0 = arith.constant 0 : i32
    %c0_i32_1 = arith.constant 0 : i32
    return %c0_i32, %c0_i32_0 : i32, i32
  }
  func.func @transform_4(%arg0: i32) -> (i32, i32) {
    %c0_i32 = arith.constant 0 : i32
    %c0_i32_0 = arith.constant 0 : i32
    %c0_i32_1 = arith.constant 0 : i32
    return %c0_i32, %c0_i32_0 : i32, i32
  }
  func.func @transform_5(%arg0: i32) -> (i32, i32) {
    %c0_i32 = arith.constant 0 : i32
    %c0_i32_0 = arith.constant 0 : i32
    %c0_i32_1 = arith.constant 0 : i32
    return %c0_i32, %c0_i32_0 : i32, i32
  }
  func.func @transform_6(%arg0: i32) -> (i32, i32) {
    %c0_i32 = arith.constant 0 : i32
    %c0_i32_0 = arith.constant 0 : i32
    %c0_i32_1 = arith.constant 0 : i32
    return %c0_i32, %c0_i32_0 : i32, i32
  }
  func.func @transform_7(%arg0: i32) -> (i32, i32) {
    %c0_i32 = arith.constant 0 : i32
    %c0_i32_0 = arith.constant 0 : i32
    %c0_i32_1 = arith.constant 0 : i32
    return %c0_i32, %c0_i32_0 : i32, i32
  }
  func.func @transform_8(%arg0: i32) -> (i32, i32) {
    %c0_i32 = arith.constant 0 : i32
    %c0_i32_0 = arith.constant 0 : i32
    %c0_i32_1 = arith.constant 0 : i32
    return %c0_i32, %c0_i32_0 : i32, i32
  }
  func.func @transform_9(%arg0: i32) -> (i32, i32) {
    %c0_i32 = arith.constant 0 : i32
    %c0_i32_0 = arith.constant 0 : i32
    %c0_i32_1 = arith.constant 0 : i32
    return %c0_i32, %c0_i32_0 : i32, i32
  }
  func.func @transform_10(%arg0: i32) -> (i32, i32) {
    %c0_i32 = arith.constant 0 : i32
    %c0_i32_0 = arith.constant 0 : i32
    %c0_i32_1 = arith.constant 0 : i32
    return %c0_i32, %c0_i32_0 : i32, i32
  }
  func.func @transform_11(%arg0: i32) -> (i32, i32) {
    %c0_i32 = arith.constant 0 : i32
    %c0_i32_0 = arith.constant 0 : i32
    %c0_i32_1 = arith.constant 0 : i32
    return %c0_i32, %c0_i32_0 : i32, i32
  }
  func.func @transform_12(%arg0: i32) -> (i32, i32) {
    %c0_i32 = arith.constant 0 : i32
    %c0_i32_0 = arith.constant 0 : i32
    %c0_i32_1 = arith.constant 0 : i32
    return %c0_i32, %c0_i32_0 : i32, i32
  }
  func.func @transform_13(%arg0: i32) -> (i32, i32) {
    %c0_i32 = arith.constant 0 : i32
    %c0_i32_0 = arith.constant 0 : i32
    %c0_i32_1 = arith.constant 0 : i32
    return %c0_i32, %c0_i32_0 : i32, i32
  }
  func.func @transform_14(%arg0: i32) -> (i32, i32) {
    %c0_i32 = arith.constant 0 : i32
    %c0_i32_0 = arith.constant 0 : i32
    %c0_i32_1 = arith.constant 0 : i32
    return %c0_i32, %c0_i32_0 : i32, i32
  }
  func.func @transform_15(%arg0: i32) -> (i32, i32) {
    %c0_i32 = arith.constant 0 : i32
    %c0_i32_0 = arith.constant 0 : i32
    %c0_i32_1 = arith.constant 0 : i32
    return %c0_i32, %c0_i32_0 : i32, i32
  }
  func.func @transform_16(%arg0: i32) -> (i32, i32) {
    %c0_i32 = arith.constant 0 : i32
    %c0_i32_0 = arith.constant 0 : i32
    %c0_i32_1 = arith.constant 0 : i32
    return %c0_i32, %c0_i32_0 : i32, i32
  }
  func.func @transform_17(%arg0: i32) -> (i32, i32) {
    %c0_i32 = arith.constant 0 : i32
    %c0_i32_0 = arith.constant 0 : i32
    %c0_i32_1 = arith.constant 0 : i32
    return %c0_i32, %c0_i32_0 : i32, i32
  }
  func.func @transform_18(%arg0: i32) -> (i32, i32) {
    %c0_i32 = arith.constant 0 : i32
    %c0_i32_0 = arith.constant 0 : i32
    return %arg0, %c0_i32 : i32, i32
  }
  func.func @transform_19(%arg0: i32) -> (i32, i32) {
    %c0_i32 = arith.constant 0 : i32
    %c0_i32_0 = arith.constant 0 : i32
    return %arg0, %c0_i32 : i32, i32
  }
}

</mosaic_0001>

<bundles_post_ra>
// kernel: vae_forward.1
= control target key start
LH: loop header
LB: loop body
LE: loop exit
PB: predicated region body
PF: predicated region fallthrough
CT: control target
= control target key end

     0   :  { %s8836_s0 = inlined_call_operand.vmem [shape: bf16[8,896], index: 0, kind: input, shape index: {}]   ;;  %s8837_s1 = inlined_call_operand.vmem [shape: f32[8,10], index: 1, kind: input, shape index: {}]   ;;  %s8838_s2 = inlined_call_operand.vmem [shape: bf16[896,512], index: 2, kind: input, shape index: {}]   ;;  %s8839_s3 = inlined_call_operand.vmem [shape: f32[1,512], index: 3, kind: input, shape index: {}]   ;;  %s8840_s4 = inlined_call_operand.vmem [shape: bf16[512,256], index: 4, kind: input, shape index: {}]   ;;  %s8841_s5 = inlined_call_operand.vmem [shape: f32[1,256], index: 5, kind: input, shape index: {}]   ;;  %s8842_s6 = inlined_call_operand.vmem [shape: bf16[256,64], index: 6, kind: input, shape index: {}]   ;;  %s8843_s7 = inlined_call_operand.vmem [shape: f32[1,64], index: 7, kind: input, shape index: {}]   ;;  %s8844_s8 = inlined_call_operand.vmem [shape: bf16[64,20], index: 8, kind: input, shape index: {}]   ;;  %s8845_s9 = inlined_call_operand.vmem [shape: f32[1,20], index: 9, kind: input, shape index: {}]   ;;  %s8846_s10 = inlined_call_operand.vmem [shape: bf16[10,64], index: 10, kind: input, shape index: {}]   ;;  %s8847_s11 = inlined_call_operand.vmem [shape: f32[1,64], index: 11, kind: input, shape index: {}]   ;;  %s8848_s12 = inlined_call_operand.vmem [shape: bf16[64,256], index: 12, kind: input, shape index: {}]   ;;  %s8849_s13 = inlined_call_operand.vmem [shape: f32[1,256], index: 13, kind: input, shape index: {}]   ;;  %s8850_s14 = inlined_call_operand.vmem [shape: bf16[256,512], index: 14, kind: input, shape index: {}]   ;;  %s8851_s15 = inlined_call_operand.vmem [shape: f32[1,512], index: 15, kind: input, shape index: {}]   ;;  %s8852_s16 = inlined_call_operand.vmem [shape: bf16[512,896], index: 16, kind: input, shape index: {}]   ;;  %s8853_s17 = inlined_call_operand.vmem [shape: f32[1,896], index: 17, kind: input, shape index: {}]   ;;  %s8854_s18 = inlined_call_operand.vmem [shape: bf16[8,896], index: 18, kind: output, shape index: {0}]   ;;  %s8855_s19 = inlined_call_operand.hbm [shape: f32[1,1], index: 19, kind: output, shape index: {1}]  }
   0x1   :  { %8858 = sst [smem:[#allocation5_spill]] %s8836_s0 }
   0x2   :  { %8859 = sst [smem:[#allocation6_spill]] %s8837_s1 }
   0x3   :  { %8860 = sst [smem:[#allocation7_spill]] %s8838_s2 }
   0x4   :  { %8861 = sst [smem:[#allocation8_spill]] %s8839_s3 }
   0x5   :  { %s8862_s20 = sld [smem:[#allocation7_spill]] }
   0x6   :  { %s8863_s26 = sld [smem:[#allocation5_spill]] }
   0x7   :  { %s8864_s23 = sld [smem:[#allocation8_spill]] }
   0xb   :  { %v5828_v0 = vld [vmem:[%s8862_s20 + $0xe4] ss:$16 sps:$4 sm:$0xff]   ;;  %v5832_v2 = vld [vmem:[%s8862_s20 + $0xe0] ss:$16 sps:$4 sm:$0xff]  }
   0xc   :  { %v5830_v1 = vld [vmem:[%s8862_s20 + $0x2e4] ss:$16 sps:$4 sm:$0xff]   ;;  %1458 = vmatprep.subr.bf16.mxu0 %v5828_v0  ;;  %v5833_v3 = vld [vmem:[%s8862_s20 + $0x2e0] ss:$16 sps:$4 sm:$0xff]   ;;  %v64_v48 = vld [vmem:[%s8863_s26 + $0x8] sm:$0xff] }
   0xd   :  { %1499 = vmatprep.subr.bf16.mxu1 %v5830_v1  ;;  %v5834_v4 = vld [vmem:[%s8862_s20 + $0xc4] ss:$16 sps:$4 sm:$0xff]   ;;  %1459 = vmatpush1.bf16.msra.mxu0 %v5832_v2  ;;  %v5838_v6 = vld [vmem:[%s8862_s20 + $0xc0] ss:$16 sps:$4 sm:$0xff]   ;;  %v7001_v51 = vcombine.high %v64_v48, %v64_v48 }
   0xe   :  { %1500 = vmatpush1.bf16.msra.mxu1 %v5833_v3  ;;  %v5836_v5 = vld [vmem:[%s8862_s20 + $0x2c4] ss:$16 sps:$4 sm:$0xff]   ;;  %1460 = vmatprep.subr.bf16.mxu0 %v5834_v4  ;;  %v5839_v7 = vld [vmem:[%s8862_s20 + $0x2c0] ss:$16 sps:$4 sm:$0xff]  }
   0xf   :  { %1501 = vmatprep.subr.bf16.mxu1 %v5836_v5  ;;  %v5840_v8 = vld [vmem:[%s8862_s20 + $0xa4] ss:$16 sps:$4 sm:$0xff]   ;;  %v5844_v10 = vld [vmem:[%s8862_s20 + $0xa0] ss:$16 sps:$4 sm:$0xff]   ;;  %1531 = vmatprep.mubr.bf16.mxu1 %v7001_v51 }
  0x10   :  { %v5842_v9 = vld [vmem:[%s8862_s20 + $0x2a4] ss:$16 sps:$4 sm:$0xff]   ;;  %v5845_v11 = vld [vmem:[%s8862_s20 + $0x2a0] ss:$16 sps:$4 sm:$0xff]  }
  0x11   :  { %1461 = vmatpush1.bf16.msra.mxu0 %v5838_v6  ;;  %v5846_v12 = vld [vmem:[%s8862_s20 + $0x84] ss:$16 sps:$4 sm:$0xff]   ;;  %v5850_v14 = vld [vmem:[%s8862_s20 + $0x80] ss:$16 sps:$4 sm:$0xff]  }
  0x12   :  { %1502 = vmatpush1.bf16.msra.mxu1 %v5839_v7  ;;  %1462 = vmatprep.subr.bf16.mxu0 %v5840_v8  ;;  %v5848_v13 = vld [vmem:[%s8862_s20 + $0x284] ss:$16 sps:$4 sm:$0xff]   ;;  %v5851_v15 = vld [vmem:[%s8862_s20 + $0x280] ss:$16 sps:$4 sm:$0xff]   ;;  %v7061_v7 = vcombine.low %v64_v48, %v64_v48  ;;  %v5988_v48 = vld [vmem:[%s8862_s20 + $0xcc] ss:$16 sps:$4 sm:$0xff]  }
  0x13   :  { %1503 = vmatprep.subr.bf16.mxu1 %v5842_v9  ;;  %v5852_v16 = vld [vmem:[%s8862_s20 + $0x64] ss:$16 sps:$4 sm:$0xff]   ;;  %v5856_v18 = vld [vmem:[%s8862_s20 + $0x60] ss:$16 sps:$4 sm:$0xff]  }
  0x14   :  { %v5854_v17 = vld [vmem:[%s8862_s20 + $0x264] ss:$16 sps:$4 sm:$0xff]   ;;  %v5857_v19 = vld [vmem:[%s8862_s20 + $0x260] ss:$16 sps:$4 sm:$0xff]  }
  0x15   :  { %1463 = vmatpush1.bf16.msra.mxu0 %v5844_v10  ;;  %v5858_v20 = vld [vmem:[%s8862_s20 + $0x44] ss:$16 sps:$4 sm:$0xff]   ;;  %v5862_v22 = vld [vmem:[%s8862_s20 + $0x40] ss:$16 sps:$4 sm:$0xff]  }
  0x16   :  { %1504 = vmatpush1.bf16.msra.mxu1 %v5845_v11  ;;  %1464 = vmatprep.subr.bf16.mxu0 %v5846_v12  ;;  %v5860_v21 = vld [vmem:[%s8862_s20 + $0x244] ss:$16 sps:$4 sm:$0xff]   ;;  %v5863_v23 = vld [vmem:[%s8862_s20 + $0x240] ss:$16 sps:$4 sm:$0xff]  }
  0x17   :  { %1505 = vmatprep.subr.bf16.mxu1 %v5848_v13  ;;  %v5864_v24 = vld [vmem:[%s8862_s20 + $0x24] ss:$16 sps:$4 sm:$0xff]   ;;  %v5868_v26 = vld [vmem:[%s8862_s20 + $0x20] ss:$16 sps:$4 sm:$0xff]  }
  0x18   :  { %v5866_v25 = vld [vmem:[%s8862_s20 + $0x224] ss:$16 sps:$4 sm:$0xff]   ;;  %v5869_v27 = vld [vmem:[%s8862_s20 + $0x220] ss:$16 sps:$4 sm:$0xff]  }
  0x19   :  { %1465 = vmatpush1.bf16.msra.mxu0 %v5850_v14  ;;  %v5870_v28 = vld [vmem:[%s8862_s20 + $0x4] ss:$16 sps:$4 sm:$0xff]   ;;  %v5874_v30 = vld [vmem:[%s8862_s20] ss:$16 sps:$4 sm:$0xff]  }
  0x1a   :  { %1506 = vmatpush1.bf16.msra.mxu1 %v5851_v15  ;;  %1466 = vmatprep.subr.bf16.mxu0 %v5852_v16  ;;  %v5872_v29 = vld [vmem:[%s8862_s20 + $0x204] ss:$16 sps:$4 sm:$0xff]   ;;  %v5875_v31 = vld [vmem:[%s8862_s20 + $0x200] ss:$16 sps:$4 sm:$0xff]   ;;  %v6743_v16 = vmov 0  }
  0x1b   :  { %1507 = vmatprep.subr.bf16.mxu1 %v5854_v17  ;;  %v5876_v32 = vld [vmem:[%s8862_s20 + $0x1e4] ss:$16 sps:$4 sm:$0xff]   ;;  %v5880_v34 = vld [vmem:[%s8862_s20 + $0x1e0] ss:$16 sps:$4 sm:$0xff]  }
  0x1c   :  { %v5878_v33 = vld [vmem:[%s8862_s20 + $0x3e4] ss:$16 sps:$4 sm:$0xff]   ;;  %v5881_v35 = vld [vmem:[%s8862_s20 + $0x3e0] ss:$16 sps:$4 sm:$0xff]  }
  0x1d   :  { %1467 = vmatpush1.bf16.msra.mxu0 %v5856_v18  ;;  %v5882_v36 = vld [vmem:[%s8862_s20 + $0x1c4] ss:$16 sps:$4 sm:$0xff]   ;;  %v5886_v38 = vld [vmem:[%s8862_s20 + $0x1c0] ss:$16 sps:$4 sm:$0xff]  }
  0x1e   :  { %1508 = vmatpush1.bf16.msra.mxu1 %v5857_v19  ;;  %1468 = vmatprep.subr.bf16.mxu0 %v5858_v20  ;;  %v5884_v37 = vld [vmem:[%s8862_s20 + $0x3c4] ss:$16 sps:$4 sm:$0xff]   ;;  %v5887_v39 = vld [vmem:[%s8862_s20 + $0x3c0] ss:$16 sps:$4 sm:$0xff]  }
  0x1f   :  { %1509 = vmatprep.subr.bf16.mxu1 %v5860_v21  ;;  %v5888_v40 = vld [vmem:[%s8862_s20 + $0x1a4] ss:$16 sps:$4 sm:$0xff]   ;;  %v5892_v42 = vld [vmem:[%s8862_s20 + $0x1a0] ss:$16 sps:$4 sm:$0xff]  }
  0x20   :  { %v5890_v41 = vld [vmem:[%s8862_s20 + $0x3a4] ss:$16 sps:$4 sm:$0xff]   ;;  %v5893_v43 = vld [vmem:[%s8862_s20 + $0x3a0] ss:$16 sps:$4 sm:$0xff]  }
  0x21   :  { %1469 = vmatpush1.bf16.msra.mxu0 %v5862_v22  ;;  %v5894_v44 = vld [vmem:[%s8862_s20 + $0x184] ss:$16 sps:$4 sm:$0xff]   ;;  %v5898_v49 = vld [vmem:[%s8862_s20 + $0x180] ss:$16 sps:$4 sm:$0xff]  }
  0x22   :  { %1510 = vmatpush1.bf16.msra.mxu1 %v5863_v23  ;;  %1470 = vmatprep.subr.bf16.mxu0 %v5864_v24  ;;  %v5896_v45 = vld [vmem:[%s8862_s20 + $0x384] ss:$16 sps:$4 sm:$0xff]   ;;  %v5899_v50 = vld [vmem:[%s8862_s20 + $0x380] ss:$16 sps:$4 sm:$0xff]  }
  0x23   :  { %1511 = vmatprep.subr.bf16.mxu1 %v5866_v25  ;;  %v63_v46 = vld [vmem:[%s8863_s26] sm:$0xff] }
  0x24   :  { %v6990_v47 = vcombine.high %v63_v46, %v63_v46  ;;  %v5900_v52 = vld [vmem:[%s8862_s20 + $0x164] ss:$16 sps:$4 sm:$0xff]   ;;  %v5904_v54 = vld [vmem:[%s8862_s20 + $0x160] ss:$16 sps:$4 sm:$0xff]   ;;  %v7059_v6 = vcombine.low %v63_v46, %v63_v46 }
  0x25   :  { %1471 = vmatpush1.bf16.msra.mxu0 %v5868_v26  ;;  %v5902_v53 = vld [vmem:[%s8862_s20 + $0x364] ss:$16 sps:$4 sm:$0xff]   ;;  %v5905_v55 = vld [vmem:[%s8862_s20 + $0x360] ss:$16 sps:$4 sm:$0xff]  }
  0x26   :  { %1512 = vmatpush1.bf16.msra.mxu1 %v5869_v27  ;;  %1472 = vmatprep.subr.bf16.mxu0 %v5870_v28  ;;  %v5906_v56 = vld [vmem:[%s8862_s20 + $0x144] ss:$16 sps:$4 sm:$0xff]   ;;  %v5910_v58 = vld [vmem:[%s8862_s20 + $0x140] ss:$16 sps:$4 sm:$0xff]  }
  0x27   :  { %1513 = vmatprep.subr.bf16.mxu1 %v5872_v29  ;;  %1490 = vmatprep.mubr.bf16.mxu0 %v6990_v47  ;;  %v5908_v57 = vld [vmem:[%s8862_s20 + $0x344] ss:$16 sps:$4 sm:$0xff]   ;;  %v5911_v59 = vld [vmem:[%s8862_s20 + $0x340] ss:$16 sps:$4 sm:$0xff]  }
  0x28   :  { %v5912_v60 = vld [vmem:[%s8862_s20 + $0x124] ss:$16 sps:$4 sm:$0xff]   ;;  %v5916_v62 = vld [vmem:[%s8862_s20 + $0x120] ss:$16 sps:$4 sm:$0xff]  }
  0x29   :  { %1473 = vmatpush1.bf16.msra.mxu0 %v5874_v30  ;;  %v5914_v61 = vld [vmem:[%s8862_s20 + $0x324] ss:$16 sps:$4 sm:$0xff]   ;;  %v5917_v63 = vld [vmem:[%s8862_s20 + $0x320] ss:$16 sps:$4 sm:$0xff]  }
  0x2a   :  { %1514 = vmatpush1.bf16.msra.mxu1 %v5875_v31  ;;  %1474 = vmatprep.subr.bf16.mxu0 %v5876_v32  ;;  %v5918_v0 = vld [vmem:[%s8862_s20 + $0x104] ss:$16 sps:$4 sm:$0xff]   ;;  %v5922_v2 = vld [vmem:[%s8862_s20 + $0x100] ss:$16 sps:$4 sm:$0xff]  }
  0x2b   :  { %1515 = vmatprep.subr.bf16.mxu1 %v5878_v33  ;;  %v5920_v1 = vld [vmem:[%s8862_s20 + $0x304] ss:$16 sps:$4 sm:$0xff]   ;;  %v5923_v3 = vld [vmem:[%s8862_s20 + $0x300] ss:$16 sps:$4 sm:$0xff]  }
  0x2c   :  { %v5930_v4 = vld [vmem:[%s8862_s20 + $0x4e4] ss:$16 sps:$4 sm:$0xff]   ;;  %v5928_v8 = vld [vmem:[%s8862_s20 + $0x4e0] ss:$16 sps:$4 sm:$0xff]  }
  0x2d   :  { %1475 = vmatpush2.bf16.msra.mxu0 %v5880_v34  ;;  %v5933_v5 = vld [vmem:[%s8862_s20 + $0x6e4] ss:$16 sps:$4 sm:$0xff]   ;;  %v5931_v9 = vld [vmem:[%s8862_s20 + $0x6e0] ss:$16 sps:$4 sm:$0xff]  }
  0x2e   :  { %1516 = vmatpush2.bf16.msra.mxu1 %v5881_v35  ;;  %1476 = vmatprep.subr.bf16.mxu0 %v5882_v36  ;;  %v5936_v10 = vld [vmem:[%s8862_s20 + $0x4c4] ss:$16 sps:$4 sm:$0xff]   ;;  %v5934_v12 = vld [vmem:[%s8862_s20 + $0x4c0] ss:$16 sps:$4 sm:$0xff]  }
  0x2f   :  { %1517 = vmatprep.subr.bf16.mxu1 %v5884_v37  ;;  %v5939_v11 = vld [vmem:[%s8862_s20 + $0x6c4] ss:$16 sps:$4 sm:$0xff]   ;;  %v5937_v13 = vld [vmem:[%s8862_s20 + $0x6c0] ss:$16 sps:$4 sm:$0xff]  }
  0x30   :  { %v5942_v14 = vld [vmem:[%s8862_s20 + $0x4a4] ss:$16 sps:$4 sm:$0xff]   ;;  %v5940_v17 = vld [vmem:[%s8862_s20 + $0x4a0] ss:$16 sps:$4 sm:$0xff]  }
  0x31   :  { %1477 = vmatpush2.bf16.msra.mxu0 %v5886_v38  ;;  %v5945_v15 = vld [vmem:[%s8862_s20 + $0x6a4] ss:$16 sps:$4 sm:$0xff]   ;;  %v5943_v18 = vld [vmem:[%s8862_s20 + $0x6a0] ss:$16 sps:$4 sm:$0xff]  }
  0x32   :  { %1518 = vmatpush2.bf16.msra.mxu1 %v5887_v39  ;;  %1478 = vmatprep.subr.bf16.mxu0 %v5888_v40  ;;  %v5948_v19 = vld [vmem:[%s8862_s20 + $0x484] ss:$16 sps:$4 sm:$0xff]   ;;  %v5946_v21 = vld [vmem:[%s8862_s20 + $0x480] ss:$16 sps:$4 sm:$0xff]  }
  0x33   :  { %1519 = vmatprep.subr.bf16.mxu1 %v5890_v41  ;;  %v5951_v20 = vld [vmem:[%s8862_s20 + $0x684] ss:$16 sps:$4 sm:$0xff]   ;;  %v5949_v22 = vld [vmem:[%s8862_s20 + $0x680] ss:$16 sps:$4 sm:$0xff]  }
  0x34   :  { %v5954_v23 = vld [vmem:[%s8862_s20 + $0x464] ss:$16 sps:$4 sm:$0xff]   ;;  %v5952_v25 = vld [vmem:[%s8862_s20 + $0x460] ss:$16 sps:$4 sm:$0xff]  }
  0x35   :  { %1479 = vmatpush2.bf16.msra.mxu0 %v5892_v42  ;;  %v5957_v24 = vld [vmem:[%s8862_s20 + $0x664] ss:$16 sps:$4 sm:$0xff]   ;;  %v5955_v26 = vld [vmem:[%s8862_s20 + $0x660] ss:$16 sps:$4 sm:$0xff]   ;;  %v5982_v42 = vld [vmem:[%s8862_s20 + $0xec] ss:$16 sps:$4 sm:$0xff]  }
  0x36   :  { %1520 = vmatpush2.bf16.msra.mxu1 %v5893_v43  ;;  %1480 = vmatprep.subr.bf16.mxu0 %v5894_v44  ;;  %v5960_v27 = vld [vmem:[%s8862_s20 + $0x444] ss:$16 sps:$4 sm:$0xff]   ;;  %v5958_v29 = vld [vmem:[%s8862_s20 + $0x440] ss:$16 sps:$4 sm:$0xff]   ;;  %v5979_v44 = vld [vmem:[%s8863_s26 + $0x18] ss:$0 sps:$4 sm:$0xff]  }
  0x37   :  { %1521 = vmatprep.subr.bf16.mxu1 %v5896_v45  ;;  %v5963_v28 = vld [vmem:[%s8862_s20 + $0x644] ss:$16 sps:$4 sm:$0xff]   ;;  %v5961_v30 = vld [vmem:[%s8862_s20 + $0x640] ss:$16 sps:$4 sm:$0xff]   ;;  %v5980_v45 = vld [vmem:[%s8862_s20 + $0xe8] ss:$16 sps:$4 sm:$0xff]  }
  0x38   :  { %v5966_v31 = vld [vmem:[%s8862_s20 + $0x424] ss:$16 sps:$4 sm:$0xff]   ;;  %v5964_v34 = vld [vmem:[%s8862_s20 + $0x420] ss:$16 sps:$4 sm:$0xff]  }
  0x39   :  { %1481 = vmatpush2.bf16.msra.mxu0 %v5898_v49  ;;  %v5969_v32 = vld [vmem:[%s8862_s20 + $0x624] ss:$16 sps:$4 sm:$0xff]   ;;  %v5967_v36 = vld [vmem:[%s8862_s20 + $0x620] ss:$16 sps:$4 sm:$0xff]  }
  0x3a   :  { %1522 = vmatpush2.bf16.msra.mxu1 %v5899_v50  ;;  %1482 = vmatprep.subr.bf16.mxu0 %v5900_v52  ;;  %v7141_v33 = vld [vmem:[%s8863_s26 + $0x10] sm:$0xff]  ;;  %v5986_v50 = vld [vmem:[%s8862_s20 + $0xc8] ss:$16 sps:$4 sm:$0xff]  }
  0x3b   :  { %1523 = vmatprep.subr.bf16.mxu1 %v5902_v53  ;;  %v7148_v35 = vcombine.high %v7141_v33, %v7141_v33  ;;  %v5972_v37 = vld [vmem:[%s8862_s20 + $0x404] ss:$16 sps:$4 sm:$0xff]   ;;  %v5970_v39 = vld [vmem:[%s8862_s20 + $0x400] ss:$16 sps:$4 sm:$0xff]   ;;  %v5994_v53 = vld [vmem:[%s8862_s20 + $0xac] ss:$16 sps:$4 sm:$0xff]  }
  0x3c   :  { %v5975_v38 = vld [vmem:[%s8862_s20 + $0x604] ss:$16 sps:$4 sm:$0xff]   ;;  %v5973_v40 = vld [vmem:[%s8862_s20 + $0x600] ss:$16 sps:$4 sm:$0xff]  }
  0x3d   :  { %1483 = vmatpush2.bf16.msra.mxu0 %v5904_v54  ;;  %v5978_v41 = vld [vmem:[%s8862_s20 + $0x5e4] ss:$16 sps:$4 sm:$0xff]   ;;  %v5976_v43 = vld [vmem:[%s8862_s20 + $0x5e0] ss:$16 sps:$4 sm:$0xff]  }
  0x3e   :  { %1524 = vmatpush2.bf16.msra.mxu1 %v5905_v55  ;;  %1484 = vmatprep.subr.bf16.mxu0 %v5906_v56  ;;  %v5985_v46 = vld [vmem:[%s8862_s20 + $0x5c4] ss:$16 sps:$4 sm:$0xff]   ;;  %v5983_v49 = vld [vmem:[%s8862_s20 + $0x5c0] ss:$16 sps:$4 sm:$0xff]   ;;  %v5992_v55 = vld [vmem:[%s8862_s20 + $0xa8] ss:$16 sps:$4 sm:$0xff]  }
  0x3f   :  { %1525 = vmatprep.subr.bf16.mxu1 %v5908_v57  ;;  %v5991_v52 = vld [vmem:[%s8862_s20 + $0x5a4] ss:$16 sps:$4 sm:$0xff]   ;;  %v5989_v54 = vld [vmem:[%s8862_s20 + $0x5a0] ss:$16 sps:$4 sm:$0xff]  }
  0x40   :  { %v5997_v56 = vld [vmem:[%s8862_s20 + $0x584] ss:$16 sps:$4 sm:$0xff]   ;;  %v5995_v57 = vld [vmem:[%s8862_s20 + $0x580] ss:$16 sps:$4 sm:$0xff]  }
  0x41   :  { %1485 = vmatpush2.bf16.msra.mxu0 %v5910_v58  ;;  %v5998_v58 = vld [vmem:[%s8862_s20 + $0x88] ss:$16 sps:$4 sm:$0xff]  }
  0x42   :  { %1526 = vmatpush2.bf16.msra.mxu1 %v5911_v59  ;;  %1486 = vmatprep.subr.bf16.mxu0 %v5912_v60  ;;  %v6003_v59 = vld [vmem:[%s8862_s20 + $0x564] ss:$16 sps:$4 sm:$0xff]   ;;  %v6006_v60 = vld [vmem:[%s8862_s20 + $0x6c] ss:$16 sps:$4 sm:$0xff]  }
  0x43   :  { %1527 = vmatprep.subr.bf16.mxu1 %v5914_v61  ;;  %v6001_v61 = vld [vmem:[%s8862_s20 + $0x560] ss:$16 sps:$4 sm:$0xff]  }
  0x45   :  { %1487 = vmatpush2.bf16.msra.mxu0 %v5916_v62  ;;  %v6004_v62 = vld [vmem:[%s8862_s20 + $0x68] ss:$16 sps:$4 sm:$0xff]  }
  0x46   :  { %1528 = vmatpush2.bf16.msra.mxu1 %v5917_v63  ;;  %1488 = vmatprep.subr.bf16.mxu0 %v5918_v0  ;;  %v6009_v63 = vld [vmem:[%s8862_s20 + $0x544] ss:$16 sps:$4 sm:$0xff]   ;;  %v6012_v0 = vld [vmem:[%s8862_s20 + $0x4c] ss:$16 sps:$4 sm:$0xff]  }
  0x47   :  { %1529 = vmatprep.subr.bf16.mxu1 %v5920_v1  ;;  %v6007_v1 = vld [vmem:[%s8862_s20 + $0x540] ss:$16 sps:$4 sm:$0xff]  }
  0x49   :  { %1489 = vmatpush2.bf16.msra.mxu0 %v5922_v2  ;;  %v6010_v2 = vld [vmem:[%s8862_s20 + $0x48] ss:$16 sps:$4 sm:$0xff]  }
  0x4a   :  { %1530 = vmatpush2.bf16.msra.mxu1 %v5923_v3  ;;  %1540 = vmatprep.subr.bf16.mxu0 %v5930_v4  ;;  %v6015_v3 = vld [vmem:[%s8862_s20 + $0x524] ss:$16 sps:$4 sm:$0xff]   ;;  %v6018_v4 = vld [vmem:[%s8862_s20 + $0x2c] ss:$16 sps:$4 sm:$0xff]  }
  0x4b   :  { %1581 = vmatprep.subr.bf16.mxu1 %v5933_v5  ;;  %v6013_v5 = vld [vmem:[%s8862_s20 + $0x520] ss:$16 sps:$4 sm:$0xff]  }
  0x4c   :  { %1491 = vmatmul.mubr.bf16.vlgmr.msra.gmra.mxu0 %v7059_v6 }
  0x4d   :  { %1532 = vmatmul.mubr.bf16.vlgmr.msra.gmra.mxu1 %v7061_v7  ;;  %1541 = vmatpush1.bf16.msra.mxu0 %v5928_v8  ;;  %v6016_v8 = vld [vmem:[%s8862_s20 + $0x28] ss:$16 sps:$4 sm:$0xff]  }
  0x4e   :  { %1582 = vmatpush1.bf16.msra.mxu1 %v5931_v9  ;;  %1542 = vmatprep.subr.bf16.mxu0 %v5936_v10  ;;  %v6021_v9 = vld [vmem:[%s8862_s20 + $0x504] ss:$16 sps:$4 sm:$0xff]   ;;  %v6024_v10 = vld [vmem:[%s8862_s20 + $0xc] ss:$16 sps:$4 sm:$0xff]  }
  0x4f   :  { %1583 = vmatprep.subr.bf16.mxu1 %v5939_v11  ;;  %1613 = vmatprep.mubr.bf16.mxu1 %v6743_v16  ;;  %v6019_v11 = vld [vmem:[%s8862_s20 + $0x500] ss:$16 sps:$4 sm:$0xff]  }
  0x50   :  { %1572 = vmatprep.mubr.bf16.mxu0 %v7148_v35 }
  0x51   :  { %1543 = vmatpush1.bf16.msra.mxu0 %v5934_v12  ;;  %v6022_v12 = vld [vmem:[%s8862_s20 + $0x8] ss:$16 sps:$4 sm:$0xff]  }
  0x52   :  { %1584 = vmatpush1.bf16.msra.mxu1 %v5937_v13  ;;  %1544 = vmatprep.subr.bf16.mxu0 %v5942_v14  ;;  %v6029_v13 = vld [vmem:[%s8862_s20 + $0x1ec] ss:$16 sps:$4 sm:$0xff]  }
  0x53   :  { %1585 = vmatprep.subr.bf16.mxu1 %v5945_v15  ;;  %v6032_v14 = vld [vmem:[%s8862_s20 + $0x2ec] ss:$16 sps:$4 sm:$0xff]   ;;  %v7274_v15 = vcombine.low %v7141_v33, %v7141_v33  ;;  %v6054_v33 = vld [vmem:[%s8862_s20 + $0x268] ss:$16 sps:$4 sm:$0xff]  }
  0x55   :  { %1545 = vmatpush1.bf16.msra.mxu0 %v5940_v17  ;;  %v6027_v17 = vld [vmem:[%s8862_s20 + $0x1e8] ss:$16 sps:$4 sm:$0xff]  }
  0x56   :  { %1586 = vmatpush1.bf16.msra.mxu1 %v5943_v18  ;;  %1546 = vmatprep.subr.bf16.mxu0 %v5948_v19  ;;  %v6030_v18 = vld [vmem:[%s8862_s20 + $0x2e8] ss:$16 sps:$4 sm:$0xff]   ;;  %v6035_v19 = vld [vmem:[%s8862_s20 + $0x1cc] ss:$16 sps:$4 sm:$0xff]  }
  0x57   :  { %1587 = vmatprep.subr.bf16.mxu1 %v5951_v20  ;;  %v6038_v20 = vld [vmem:[%s8862_s20 + $0x2cc] ss:$16 sps:$4 sm:$0xff]  }
  0x59   :  { %1547 = vmatpush1.bf16.msra.mxu0 %v5946_v21  ;;  %v6033_v21 = vld [vmem:[%s8862_s20 + $0x1c8] ss:$16 sps:$4 sm:$0xff]  }
  0x5a   :  { %1588 = vmatpush1.bf16.msra.mxu1 %v5949_v22  ;;  %1548 = vmatprep.subr.bf16.mxu0 %v5954_v23  ;;  %v6036_v22 = vld [vmem:[%s8862_s20 + $0x2c8] ss:$16 sps:$4 sm:$0xff]   ;;  %v6041_v23 = vld [vmem:[%s8862_s20 + $0x1ac] ss:$16 sps:$4 sm:$0xff]  }
  0x5b   :  { %1589 = vmatprep.subr.bf16.mxu1 %v5957_v24  ;;  %v6044_v24 = vld [vmem:[%s8862_s20 + $0x2ac] ss:$16 sps:$4 sm:$0xff]  }
  0x5d   :  { %1549 = vmatpush1.bf16.msra.mxu0 %v5952_v25  ;;  %v6039_v25 = vld [vmem:[%s8862_s20 + $0x1a8] ss:$16 sps:$4 sm:$0xff]  }
  0x5e   :  { %1590 = vmatpush1.bf16.msra.mxu1 %v5955_v26  ;;  %1550 = vmatprep.subr.bf16.mxu0 %v5960_v27  ;;  %v6042_v26 = vld [vmem:[%s8862_s20 + $0x2a8] ss:$16 sps:$4 sm:$0xff]   ;;  %v6047_v27 = vld [vmem:[%s8862_s20 + $0x18c] ss:$16 sps:$4 sm:$0xff]  }
  0x5f   :  { %1591 = vmatprep.subr.bf16.mxu1 %v5963_v28  ;;  %v6045_v28 = vld [vmem:[%s8862_s20 + $0x188] ss:$16 sps:$4 sm:$0xff]  }
  0x61   :  { %1551 = vmatpush1.bf16.msra.mxu0 %v5958_v29  ;;  %v6048_v29 = vld [vmem:[%s8862_s20 + $0x288] ss:$16 sps:$4 sm:$0xff]  }
  0x62   :  { %1592 = vmatpush1.bf16.msra.mxu1 %v5961_v30  ;;  %1552 = vmatprep.subr.bf16.mxu0 %v5966_v31  ;;  %v6053_v30 = vld [vmem:[%s8862_s20 + $0x16c] ss:$16 sps:$4 sm:$0xff]  }
  0x63   :  { %1593 = vmatprep.subr.bf16.mxu1 %v5969_v32  ;;  %v6056_v31 = vld [vmem:[%s8862_s20 + $0x26c] ss:$16 sps:$4 sm:$0xff]   ;;  %v6051_v32 = vld [vmem:[%s8862_s20 + $0x168] ss:$16 sps:$4 sm:$0xff]  }
  0x65   :  { %1553 = vmatpush1.bf16.msra.mxu0 %v5964_v34  ;;  %v6059_v34 = vld [vmem:[%s8862_s20 + $0x14c] ss:$16 sps:$4 sm:$0xff]  }
  0x66   :  { %1594 = vmatpush1.bf16.msra.mxu1 %v5967_v36  ;;  %1554 = vmatprep.subr.bf16.mxu0 %v5972_v37  ;;  %v6062_v36 = vld [vmem:[%s8862_s20 + $0x24c] ss:$16 sps:$4 sm:$0xff]   ;;  %v6057_v37 = vld [vmem:[%s8862_s20 + $0x148] ss:$16 sps:$4 sm:$0xff]  }
  0x67   :  { %1595 = vmatprep.subr.bf16.mxu1 %v5975_v38  ;;  %v6060_v38 = vld [vmem:[%s8862_s20 + $0x248] ss:$16 sps:$4 sm:$0xff]  }
  0x69   :  { %1555 = vmatpush1.bf16.msra.mxu0 %v5970_v39  ;;  %v6065_v39 = vld [vmem:[%s8862_s20 + $0x12c] ss:$16 sps:$4 sm:$0xff]  }
  0x6a   :  { %1596 = vmatpush1.bf16.msra.mxu1 %v5973_v40  ;;  %1556 = vmatprep.subr.bf16.mxu0 %v5978_v41  ;;  %v6068_v40 = vld [vmem:[%s8862_s20 + $0x22c] ss:$16 sps:$4 sm:$0xff]   ;;  %v6063_v41 = vld [vmem:[%s8862_s20 + $0x128] ss:$16 sps:$4 sm:$0xff]  }
  0x6b   :  { %1622 = vmatprep.subr.bf16.mxu1 %v5982_v42  ;;  %v6066_v42 = vld [vmem:[%s8862_s20 + $0x228] ss:$16 sps:$4 sm:$0xff]  }
  0x6d   :  { %1614 = vmatmul.mubr.bf16.vlgmr.msra.gmra.mxu1 %v5979_v44  ;;  %1557 = vmatpush2.bf16.msra.mxu0 %v5976_v43  ;;  %v6071_v43 = vld [vmem:[%s8862_s20 + $0x10c] ss:$16 sps:$4 sm:$0xff]  }
  0x6e   :  { %1623 = vmatpush1.bf16.msra.mxu1 %v5980_v45  ;;  %1558 = vmatprep.subr.bf16.mxu0 %v5985_v46  ;;  %v6074_v44 = vld [vmem:[%s8862_s20 + $0x20c] ss:$16 sps:$4 sm:$0xff]   ;;  %v6069_v45 = vld [vmem:[%s8862_s20 + $0x108] ss:$16 sps:$4 sm:$0xff]  }
  0x6f   :  { %1624 = vmatprep.subr.bf16.mxu1 %v5988_v48  ;;  %1654 = vmatprep.mubr.bf16.mxu1 %v6990_v47  ;;  %v6000_v47 = vld [vmem:[%s8862_s20 + $0x8c] ss:$16 sps:$4 sm:$0xff]   ;;  %v6072_v46 = vld [vmem:[%s8862_s20 + $0x208] ss:$16 sps:$4 sm:$0xff]  }
  0x70   :  { %v6077_v48 = vld [vmem:[%s8862_s20 + $0x3ec] ss:$16 sps:$4 sm:$0xff]  }
  0x71   :  { %1559 = vmatpush2.bf16.msra.mxu0 %v5983_v49  ;;  %v6080_v49 = vld [vmem:[%s8862_s20 + $0x4ec] ss:$16 sps:$4 sm:$0xff]  }
  0x72   :  { %1625 = vmatpush1.bf16.msra.mxu1 %v5986_v50  ;;  %1560 = vmatprep.subr.bf16.mxu0 %v5991_v52  ;;  %v6075_v50 = vld [vmem:[%s8862_s20 + $0x3e8] ss:$16 sps:$4 sm:$0xff]  }
  0x73   :  { %1626 = vmatprep.subr.bf16.mxu1 %v5994_v53  ;;  %v6078_v52 = vld [vmem:[%s8862_s20 + $0x4e8] ss:$16 sps:$4 sm:$0xff]   ;;  %v6083_v53 = vld [vmem:[%s8862_s20 + $0x3cc] ss:$16 sps:$4 sm:$0xff]  }
  0x75   :  { %1561 = vmatpush2.bf16.msra.mxu0 %v5989_v54  ;;  %v6086_v54 = vld [vmem:[%s8862_s20 + $0x4cc] ss:$16 sps:$4 sm:$0xff]  }
  0x76   :  { %1627 = vmatpush1.bf16.msra.mxu1 %v5992_v55  ;;  %1562 = vmatprep.subr.bf16.mxu0 %v5997_v56  ;;  %v6081_v55 = vld [vmem:[%s8862_s20 + $0x3c8] ss:$16 sps:$4 sm:$0xff]  }
  0x77   :  { %1628 = vmatprep.subr.bf16.mxu1 %v6000_v47  ;;  %v6084_v56 = vld [vmem:[%s8862_s20 + $0x4c8] ss:$16 sps:$4 sm:$0xff]   ;;  %v6089_v47 = vld [vmem:[%s8862_s20 + $0x3ac] ss:$16 sps:$4 sm:$0xff]  }
  0x79   :  { %1563 = vmatpush2.bf16.msra.mxu0 %v5995_v57  ;;  %v6092_v57 = vld [vmem:[%s8862_s20 + $0x4ac] ss:$16 sps:$4 sm:$0xff]  }
  0x7a   :  { %1629 = vmatpush1.bf16.msra.mxu1 %v5998_v58  ;;  %1564 = vmatprep.subr.bf16.mxu0 %v6003_v59  ;;  %v6087_v58 = vld [vmem:[%s8862_s20 + $0x3a8] ss:$16 sps:$4 sm:$0xff]   ;;  %v6095_v59 = vld [vmem:[%s8862_s20 + $0x38c] ss:$16 sps:$4 sm:$0xff]  }
  0x7b   :  { %1630 = vmatprep.subr.bf16.mxu1 %v6006_v60  ;;  %v6098_v60 = vld [vmem:[%s8862_s20 + $0x48c] ss:$16 sps:$4 sm:$0xff]  }
  0x7d   :  { %1565 = vmatpush2.bf16.msra.mxu0 %v6001_v61  ;;  %v6093_v61 = vld [vmem:[%s8862_s20 + $0x388] ss:$16 sps:$4 sm:$0xff]  }
  0x7e   :  { %1631 = vmatpush1.bf16.msra.mxu1 %v6004_v62  ;;  %1566 = vmatprep.subr.bf16.mxu0 %v6009_v63  ;;  %v6101_v62 = vld [vmem:[%s8862_s20 + $0x36c] ss:$16 sps:$4 sm:$0xff]  }
  0x7f   :  { %1632 = vmatprep.subr.bf16.mxu1 %v6012_v0  ;;  %v6104_v63 = vld [vmem:[%s8862_s20 + $0x46c] ss:$16 sps:$4 sm:$0xff]   ;;  %v6099_v0 = vld [vmem:[%s8862_s20 + $0x368] ss:$16 sps:$4 sm:$0xff]  }
  0x81   :  { %1567 = vmatpush2.bf16.msra.mxu0 %v6007_v1  ;;  %v6102_v1 = vld [vmem:[%s8862_s20 + $0x468] ss:$16 sps:$4 sm:$0xff]  }
  0x82   :  { %1633 = vmatpush1.bf16.msra.mxu1 %v6010_v2  ;;  %1568 = vmatprep.subr.bf16.mxu0 %v6015_v3  ;;  %v6107_v2 = vld [vmem:[%s8862_s20 + $0x34c] ss:$16 sps:$4 sm:$0xff]  }
  0x83   :  { %1634 = vmatprep.subr.bf16.mxu1 %v6018_v4  ;;  %v6110_v3 = vld [vmem:[%s8862_s20 + $0x44c] ss:$16 sps:$4 sm:$0xff]   ;;  %v6105_v4 = vld [vmem:[%s8862_s20 + $0x348] ss:$16 sps:$4 sm:$0xff]  }
  0x85   :  { %1569 = vmatpush2.bf16.msra.mxu0 %v6013_v5  ;;  %v6108_v5 = vld [vmem:[%s8862_s20 + $0x448] ss:$16 sps:$4 sm:$0xff]  }
  0x86   :  { %1635 = vmatpush1.bf16.msra.mxu1 %v6016_v8  ;;  %1570 = vmatprep.subr.bf16.mxu0 %v6021_v9  ;;  %v6113_v8 = vld [vmem:[%s8862_s20 + $0x32c] ss:$16 sps:$4 sm:$0xff]  }
  0x87   :  { %1636 = vmatprep.subr.bf16.mxu1 %v6024_v10  ;;  %v6116_v9 = vld [vmem:[%s8862_s20 + $0x42c] ss:$16 sps:$4 sm:$0xff]   ;;  %v6111_v10 = vld [vmem:[%s8862_s20 + $0x328] ss:$16 sps:$4 sm:$0xff]  }
  0x89   :  { %1571 = vmatpush2.bf16.msra.mxu0 %v6019_v11  ;;  %v6114_v11 = vld [vmem:[%s8862_s20 + $0x428] ss:$16 sps:$4 sm:$0xff]  }
  0x8a   :  { %1637 = vmatpush1.bf16.msra.mxu1 %v6022_v12  ;;  %1663 = vmatprep.subr.bf16.mxu0 %v6032_v14  ;;  %v6119_v12 = vld [vmem:[%s8862_s20 + $0x30c] ss:$16 sps:$4 sm:$0xff]   ;;  %v6117_v14 = vld [vmem:[%s8862_s20 + $0x308] ss:$16 sps:$4 sm:$0xff]  }
  0x8b   :  { %1638 = vmatprep.subr.bf16.mxu1 %v6029_v13  ;;  %v6122_v13 = vld [vmem:[%s8862_s20 + $0x40c] ss:$16 sps:$4 sm:$0xff]  }
  0x8c   :  { %1573 = vmatmul.mubr.bf16.vlgmr.msra.gmra.mxu0 %v7274_v15 }
  0x8d   :  { %1664 = vmatpush1.bf16.msra.mxu0 %v6030_v18  ;;  %1695 = vmatprep.mubr.bf16.mxu0 %v7001_v51  ;;  %v6050_v51 = vld [vmem:[%s8862_s20 + $0x28c] ss:$16 sps:$4 sm:$0xff]  }
  0x8e   :  { %1639 = vmatpush2.bf16.msra.mxu1 %v6027_v17  ;;  %1665 = vmatprep.subr.bf16.mxu0 %v6038_v20  ;;  %v6120_v17 = vld [vmem:[%s8862_s20 + $0x408] ss:$16 sps:$4 sm:$0xff]   ;;  %v6125_v18 = vld [vmem:[%s8862_s20 + $0x5ec] ss:$16 sps:$4 sm:$0xff]  }
  0x8f   :  { %1640 = vmatprep.subr.bf16.mxu1 %v6035_v19  ;;  %v6128_v19 = vld [vmem:[%s8862_s20 + $0x6ec] ss:$16 sps:$4 sm:$0xff]   ;;  %v6123_v20 = vld [vmem:[%s8862_s20 + $0x5e8] ss:$16 sps:$4 sm:$0xff]  }
  0x91   :  { %1666 = vmatpush1.bf16.msra.mxu0 %v6036_v22  ;;  %v6131_v22 = vld [vmem:[%s8862_s20 + $0x5cc] ss:$16 sps:$4 sm:$0xff]  }
  0x92   :  { %1641 = vmatpush2.bf16.msra.mxu1 %v6033_v21  ;;  %1667 = vmatprep.subr.bf16.mxu0 %v6044_v24  ;;  %v6126_v21 = vld [vmem:[%s8862_s20 + $0x6e8] ss:$16 sps:$4 sm:$0xff]  }
  0x93   :  { %1642 = vmatprep.subr.bf16.mxu1 %v6041_v23  ;;  %v6134_v23 = vld [vmem:[%s8862_s20 + $0x6cc] ss:$16 sps:$4 sm:$0xff]   ;;  %v6129_v24 = vld [vmem:[%s8862_s20 + $0x5c8] ss:$16 sps:$4 sm:$0xff]  }
  0x95   :  { %1668 = vmatpush1.bf16.msra.mxu0 %v6042_v26  ;;  %v6137_v26 = vld [vmem:[%s8862_s20 + $0x5ac] ss:$16 sps:$4 sm:$0xff]  }
  0x96   :  { %1643 = vmatpush2.bf16.msra.mxu1 %v6039_v25  ;;  %1669 = vmatprep.subr.bf16.mxu0 %v6050_v51  ;;  %v6132_v25 = vld [vmem:[%s8862_s20 + $0x6c8] ss:$16 sps:$4 sm:$0xff]  }
  0x97   :  { %1644 = vmatprep.subr.bf16.mxu1 %v6047_v27  ;;  %v6140_v27 = vld [vmem:[%s8862_s20 + $0x6ac] ss:$16 sps:$4 sm:$0xff]   ;;  %v6135_v51 = vld [vmem:[%s8862_s20 + $0x5a8] ss:$16 sps:$4 sm:$0xff]  }
  0x99   :  { %1670 = vmatpush1.bf16.msra.mxu0 %v6048_v29  ;;  %v6146_v29 = vld [vmem:[%s8862_s20 + $0x68c] ss:$16 sps:$4 sm:$0xff]  }
  0x9a   :  { %1645 = vmatpush2.bf16.msra.mxu1 %v6045_v28  ;;  %1671 = vmatprep.subr.bf16.mxu0 %v6056_v31  ;;  %v6143_v28 = vld [vmem:[%s8862_s20 + $0x58c] ss:$16 sps:$4 sm:$0xff]   ;;  %v6144_v31 = vld [vmem:[%s8862_s20 + $0x688] ss:$16 sps:$4 sm:$0xff]  }
  0x9b   :  { %1646 = vmatprep.subr.bf16.mxu1 %v6053_v30  ;;  %v6141_v30 = vld [vmem:[%s8862_s20 + $0x588] ss:$16 sps:$4 sm:$0xff]  }
  0x9d   :  { %1672 = vmatpush1.bf16.msra.mxu0 %v6054_v33  ;;  %v6152_v33 = vld [vmem:[%s8862_s20 + $0x66c] ss:$16 sps:$4 sm:$0xff]  }
  0x9e   :  { %1647 = vmatpush2.bf16.msra.mxu1 %v6051_v32  ;;  %1673 = vmatprep.subr.bf16.mxu0 %v6062_v36  ;;  %v6149_v32 = vld [vmem:[%s8862_s20 + $0x56c] ss:$16 sps:$4 sm:$0xff]   ;;  %v6150_v36 = vld [vmem:[%s8862_s20 + $0x668] ss:$16 sps:$4 sm:$0xff]  }
  0x9f   :  { %1648 = vmatprep.subr.bf16.mxu1 %v6059_v34  ;;  %v6147_v34 = vld [vmem:[%s8862_s20 + $0x568] ss:$16 sps:$4 sm:$0xff]  }
  0xa1   :  { %1674 = vmatpush1.bf16.msra.mxu0 %v6060_v38  ;;  %v6158_v38 = vld [vmem:[%s8862_s20 + $0x64c] ss:$16 sps:$4 sm:$0xff]  }
  0xa2   :  { %1649 = vmatpush2.bf16.msra.mxu1 %v6057_v37  ;;  %1675 = vmatprep.subr.bf16.mxu0 %v6068_v40  ;;  %v6155_v37 = vld [vmem:[%s8862_s20 + $0x54c] ss:$16 sps:$4 sm:$0xff]   ;;  %v6156_v40 = vld [vmem:[%s8862_s20 + $0x648] ss:$16 sps:$4 sm:$0xff]  }
  0xa3   :  { %1650 = vmatprep.subr.bf16.mxu1 %v6065_v39  ;;  %v6153_v39 = vld [vmem:[%s8862_s20 + $0x548] ss:$16 sps:$4 sm:$0xff]  }
  0xa5   :  { %1676 = vmatpush1.bf16.msra.mxu0 %v6066_v42  ;;  %v6164_v42 = vld [vmem:[%s8862_s20 + $0x62c] ss:$16 sps:$4 sm:$0xff]  }
  0xa6   :  { %1651 = vmatpush2.bf16.msra.mxu1 %v6063_v41  ;;  %1677 = vmatprep.subr.bf16.mxu0 %v6074_v44  ;;  %v6161_v41 = vld [vmem:[%s8862_s20 + $0x52c] ss:$16 sps:$4 sm:$0xff]   ;;  %v6162_v44 = vld [vmem:[%s8862_s20 + $0x628] ss:$16 sps:$4 sm:$0xff]  }
  0xa7   :  { %1652 = vmatprep.subr.bf16.mxu1 %v6071_v43  ;;  %v6159_v43 = vld [vmem:[%s8862_s20 + $0x528] ss:$16 sps:$4 sm:$0xff]  }
  0xa9   :  { %1678 = vmatpush1.bf16.msra.mxu0 %v6072_v46  ;;  %v6170_v46 = vld [vmem:[%s8862_s20 + $0x60c] ss:$16 sps:$4 sm:$0xff]  }
  0xaa   :  { %1653 = vmatpush2.bf16.msra.mxu1 %v6069_v45  ;;  %1679 = vmatprep.subr.bf16.mxu0 %v6077_v48  ;;  %v6167_v45 = vld [vmem:[%s8862_s20 + $0x50c] ss:$16 sps:$4 sm:$0xff]   ;;  %v6165_v48 = vld [vmem:[%s8862_s20 + $0x508] ss:$16 sps:$4 sm:$0xff]  }
  0xab   :  { %1704 = vmatprep.subr.bf16.mxu1 %v6080_v49  ;;  %v6168_v49 = vld [vmem:[%s8862_s20 + $0x608] ss:$16 sps:$4 sm:$0xff]  }
  0xad   :  { %1655 = vmatmul.mubr.bf16.vlgmr.msra.gmra.mxu1 %v7059_v6  ;;  %1680 = vmatpush2.bf16.msra.mxu0 %v6075_v50  ;;  %v6090_v6 = vld [vmem:[%s8862_s20 + $0x4a8] ss:$16 sps:$4 sm:$0xff]   ;;  %v6173_v50 = vld [vmem:[%s8840_s4 + $0x74] ss:$8 sps:$4 sm:$0xff]  }
  0xae   :  { %1705 = vmatpush1.bf16.msra.mxu1 %v6078_v52  ;;  %1681 = vmatprep.subr.bf16.mxu0 %v6083_v53  ;;  %v6171_v52 = vld [vmem:[%s8840_s4 + $0x70] ss:$8 sps:$4 sm:$0xff]   ;;  %v6176_v53 = vld [vmem:[%s8840_s4 + $0x64] ss:$8 sps:$4 sm:$0xff]  }
  0xaf   :  { %1706 = vmatprep.subr.bf16.mxu1 %v6086_v54  ;;  %1736 = vmatprep.mubr.bf16.mxu1 %v7148_v35  ;;  %v6096_v35 = vld [vmem:[%s8862_s20 + $0x488] ss:$16 sps:$4 sm:$0xff]  }
  0xb0   :  { %v6174_v54 = vld [vmem:[%s8840_s4 + $0x60] ss:$8 sps:$4 sm:$0xff]  }
  0xb1   :  { %1682 = vmatpush2.bf16.msra.mxu0 %v6081_v55  ;;  %v6732_v55 = vld [vmem:[%s8863_s26 + $0x18] ss:$0 sps:$4 sm:$0xff]  }
  0xb2   :  { %1707 = vmatpush1.bf16.msra.mxu1 %v6084_v56  ;;  %1683 = vmatprep.subr.bf16.mxu0 %v6089_v47  ;;  %v6179_v56 = vld [vmem:[%s8840_s4 + $0x54] ss:$8 sps:$4 sm:$0xff]   ;;  %v6177_v47 = vld [vmem:[%s8840_s4 + $0x50] ss:$8 sps:$4 sm:$0xff]  }
  0xb3   :  { %1708 = vmatprep.subr.bf16.mxu1 %v6092_v57  ;;  %v6219_v57 = vld [vmem:[%s8840_s4 + $0x170] ss:$8 sps:$4 sm:$0xff]  }
  0xb5   :  { %1684 = vmatpush2.bf16.msra.mxu0 %v6087_v58  ;;  %v6221_v58 = vld [vmem:[%s8840_s4 + $0x174] ss:$8 sps:$4 sm:$0xff]  }
  0xb6   :  { %1709 = vmatpush1.bf16.msra.mxu1 %v6090_v6  ;;  %1685 = vmatprep.subr.bf16.mxu0 %v6095_v59  ;;  %v6224_v6 = vld [vmem:[%s8840_s4 + $0x164] ss:$8 sps:$4 sm:$0xff]   ;;  %v6180_v59 = vld [vmem:[%s8840_s4 + $0x40] ss:$8 sps:$4 sm:$0xff]  }
  0xb7   :  { %1710 = vmatprep.subr.bf16.mxu1 %v6098_v60  ;;  %v6185_v60 = vld [vmem:[%s8840_s4 + $0x34] ss:$8 sps:$4 sm:$0xff]  }
  0xb9   :  { %1686 = vmatpush2.bf16.msra.mxu0 %v6093_v61  ;;  %v6222_v61 = vld [vmem:[%s8840_s4 + $0x160] ss:$8 sps:$4 sm:$0xff]  }
  0xba   :  { %1711 = vmatpush1.bf16.msra.mxu1 %v6096_v35  ;;  %1687 = vmatprep.subr.bf16.mxu0 %v6101_v62  ;;  %v6227_v35 = vld [vmem:[%s8840_s4 + $0x154] ss:$8 sps:$4 sm:$0xff]   ;;  %v6183_v62 = vld [vmem:[%s8840_s4 + $0x30] ss:$8 sps:$4 sm:$0xff]  }
  0xbb   :  { %1712 = vmatprep.subr.bf16.mxu1 %v6104_v63  ;;  %v6225_v63 = vld [vmem:[%s8840_s4 + $0x150] ss:$8 sps:$4 sm:$0xff]  }
  0xbd   :  { %1688 = vmatpush2.bf16.msra.mxu0 %v6099_v0  ;;  %v6188_v0 = vld [vmem:[%s8840_s4 + $0x24] ss:$8 sps:$4 sm:$0xff]  }
  0xbe   :  { %1713 = vmatpush1.bf16.msra.mxu1 %v6102_v1  ;;  %1689 = vmatprep.subr.bf16.mxu0 %v6107_v2  ;;  %v6230_v1 = vld [vmem:[%s8840_s4 + $0x144] ss:$8 sps:$4 sm:$0xff]   ;;  %v6186_v2 = vld [vmem:[%s8840_s4 + $0x20] ss:$8 sps:$4 sm:$0xff]  }
  0xbf   :  { %1714 = vmatprep.subr.bf16.mxu1 %v6110_v3  ;;  %v6228_v3 = vld [vmem:[%s8840_s4 + $0x140] ss:$8 sps:$4 sm:$0xff]  }
  0xc1   :  { %1690 = vmatpush2.bf16.msra.mxu0 %v6105_v4  ;;  %v6191_v4 = vld [vmem:[%s8840_s4 + $0x14] ss:$8 sps:$4 sm:$0xff]  }
  0xc2   :  { %1715 = vmatpush1.bf16.msra.mxu1 %v6108_v5  ;;  %1691 = vmatprep.subr.bf16.mxu0 %v6113_v8  ;;  %v6233_v5 = vld [vmem:[%s8840_s4 + $0x134] ss:$8 sps:$4 sm:$0xff]   ;;  %v6189_v8 = vld [vmem:[%s8840_s4 + $0x10] ss:$8 sps:$4 sm:$0xff]  }
  0xc3   :  { %1716 = vmatprep.subr.bf16.mxu1 %v6116_v9  ;;  %v6231_v9 = vld [vmem:[%s8840_s4 + $0x130] ss:$8 sps:$4 sm:$0xff]  }
  0xc5   :  { %1692 = vmatpush2.bf16.msra.mxu0 %v6111_v10  ;;  %v6194_v10 = vld [vmem:[%s8840_s4 + $0x4] ss:$8 sps:$4 sm:$0xff]  }
  0xc6   :  { %1717 = vmatpush1.bf16.msra.mxu1 %v6114_v11  ;;  %1693 = vmatprep.subr.bf16.mxu0 %v6119_v12  ;;  %v6192_v11 = vld [vmem:[%s8840_s4] ss:$8 sps:$4 sm:$0xff]   ;;  %v6197_v12 = vld [vmem:[%s8840_s4 + $0xf4] ss:$8 sps:$4 sm:$0xff]  }
  0xc7   :  { %1718 = vmatprep.subr.bf16.mxu1 %v6122_v13  ;;  %v6195_v13 = vld [vmem:[%s8840_s4 + $0xf0] ss:$8 sps:$4 sm:$0xff]  }
  0xc9   :  { %1694 = vmatpush2.bf16.msra.mxu0 %v6117_v14  ;;  %v6200_v14 = vld [vmem:[%s8840_s4 + $0xe4] ss:$8 sps:$4 sm:$0xff]  }
  0xca   :  { %1719 = vmatpush1.bf16.msra.mxu1 %v6120_v17  ;;  %1745 = vmatprep.subr.bf16.mxu0 %v6128_v19  ;;  %v6236_v17 = vld [vmem:[%s8840_s4 + $0x124] ss:$8 sps:$4 sm:$0xff]   ;;  %v6234_v19 = vld [vmem:[%s8840_s4 + $0x120] ss:$8 sps:$4 sm:$0xff]  }
  0xcb   :  { %1720 = vmatprep.subr.bf16.mxu1 %v6125_v18  ;;  %v6198_v18 = vld [vmem:[%s8840_s4 + $0xe0] ss:$8 sps:$4 sm:$0xff]  }
  0xcc   :  { %1696 = vmatmul.mubr.bf16.vlgmr.msra.gmra.mxu0 %v7061_v7  ;;  %v6138_v7 = vld [vmem:[%s8862_s20 + $0x6a8] ss:$16 sps:$4 sm:$0xff]  }
  0xcd   :  { %1746 = vmatpush1.bf16.msra.mxu0 %v6126_v21  ;;  %1777 = vmatprep.mubr.bf16.mxu0 %v6743_v16 }
  0xce   :  { %1721 = vmatpush2.bf16.msra.mxu1 %v6123_v20  ;;  %1747 = vmatprep.subr.bf16.mxu0 %v6134_v23 }
  0xcf   :  { %1722 = vmatprep.subr.bf16.mxu1 %v6131_v22  ;;  %v6203_v22 = vld [vmem:[%s8840_s4 + $0xd4] ss:$8 sps:$4 sm:$0xff]  }
  0xd1   :  { %1748 = vmatpush1.bf16.msra.mxu0 %v6132_v25  ;;  %v6239_v25 = vld [vmem:[%s8840_s4 + $0x114] ss:$8 sps:$4 sm:$0xff]  }
  0xd2   :  { %1723 = vmatpush2.bf16.msra.mxu1 %v6129_v24  ;;  %1749 = vmatprep.subr.bf16.mxu0 %v6140_v27  ;;  %v6237_v27 = vld [vmem:[%s8840_s4 + $0x110] ss:$8 sps:$4 sm:$0xff]  }
  0xd3   :  { %1724 = vmatprep.subr.bf16.mxu1 %v6137_v26  ;;  %v6201_v26 = vld [vmem:[%s8840_s4 + $0xd0] ss:$8 sps:$4 sm:$0xff]  }
  0xd5   :  { %1750 = vmatpush1.bf16.msra.mxu0 %v6138_v7 }
  0xd6   :  { %1725 = vmatpush2.bf16.msra.mxu1 %v6135_v51  ;;  %1751 = vmatprep.subr.bf16.mxu0 %v6146_v29 }
  0xd7   :  { %1726 = vmatprep.subr.bf16.mxu1 %v6143_v28 }
  0xd9   :  { %1752 = vmatpush1.bf16.msra.mxu0 %v6144_v31  ;;  %v6240_v31 = vld [vmem:[%s8840_s4 + $0x100] ss:$8 sps:$4 sm:$0xff]  }
  0xda   :  { %1727 = vmatpush2.bf16.msra.mxu1 %v6141_v30  ;;  %1753 = vmatprep.subr.bf16.mxu0 %v6152_v33  ;;  %v6206_v30 = vld [vmem:[%s8840_s4 + $0xc4] ss:$8 sps:$4 sm:$0xff]   ;;  %v6245_v33 = vld [vmem:[%s8840_s4 + $0x1f4] ss:$8 sps:$4 sm:$0xff]  }
  0xdb   :  { %1728 = vmatprep.subr.bf16.mxu1 %v6149_v32  ;;  %v6242_v32 = vld [vmem:[%s8840_s4 + $0x104] ss:$8 sps:$4 sm:$0xff]  }
  0xdd   :  { %1754 = vmatpush1.bf16.msra.mxu0 %v6150_v36  ;;  %v6209_v36 = vld [vmem:[%s8840_s4 + $0xb4] ss:$8 sps:$4 sm:$0xff]  }
  0xde   :  { %1729 = vmatpush2.bf16.msra.mxu1 %v6147_v34  ;;  %1755 = vmatprep.subr.bf16.mxu0 %v6158_v38  ;;  %v6204_v34 = vld [vmem:[%s8840_s4 + $0xc0] ss:$8 sps:$4 sm:$0xff]   ;;  %v6248_v38 = vld [vmem:[%s8840_s4 + $0x1e4] ss:$8 sps:$4 sm:$0xff]  }
  0xdf   :  { %1730 = vmatprep.subr.bf16.mxu1 %v6155_v37  ;;  %v6243_v37 = vld [vmem:[%s8840_s4 + $0x1f0] ss:$8 sps:$4 sm:$0xff]  }
  0xe1   :  { %1756 = vmatpush1.bf16.msra.mxu0 %v6156_v40  ;;  %v6246_v40 = vld [vmem:[%s8840_s4 + $0x1e0] ss:$8 sps:$4 sm:$0xff]  }
  0xe2   :  { %1731 = vmatpush2.bf16.msra.mxu1 %v6153_v39  ;;  %1757 = vmatprep.subr.bf16.mxu0 %v6164_v42  ;;  %v6207_v39 = vld [vmem:[%s8840_s4 + $0xb0] ss:$8 sps:$4 sm:$0xff]   ;;  %v6251_v42 = vld [vmem:[%s8840_s4 + $0x1d4] ss:$8 sps:$4 sm:$0xff]  }
  0xe3   :  { %1732 = vmatprep.subr.bf16.mxu1 %v6161_v41  ;;  %v6212_v41 = vld [vmem:[%s8840_s4 + $0xa4] ss:$8 sps:$4 sm:$0xff]  }
  0xe5   :  { %1758 = vmatpush1.bf16.msra.mxu0 %v6162_v44  ;;  %v6249_v44 = vld [vmem:[%s8840_s4 + $0x1d0] ss:$8 sps:$4 sm:$0xff]  }
  0xe6   :  { %1733 = vmatpush2.bf16.msra.mxu1 %v6159_v43  ;;  %1759 = vmatprep.subr.bf16.mxu0 %v6170_v46  ;;  %v6210_v43 = vld [vmem:[%s8840_s4 + $0xa0] ss:$8 sps:$4 sm:$0xff]   ;;  %v6254_v46 = vld [vmem:[%s8840_s4 + $0x1c4] ss:$8 sps:$4 sm:$0xff]  }
  0xe7   :  { %1734 = vmatprep.subr.bf16.mxu1 %v6167_v45  ;;  %v6215_v45 = vld [vmem:[%s8840_s4 + $0x94] ss:$8 sps:$4 sm:$0xff]  }
  0xe9   :  { %1760 = vmatpush1.bf16.msra.mxu0 %v6168_v49  ;;  %v6252_v49 = vld [vmem:[%s8840_s4 + $0x1c0] ss:$8 sps:$4 sm:$0xff]  }
  0xea   :  { %1735 = vmatpush2.bf16.msra.mxu1 %v6165_v48  ;;  %2190 = vmatprep.subr.bf16.mxu0 %v6173_v50  ;;  %v6213_v48 = vld [vmem:[%s8840_s4 + $0x90] ss:$8 sps:$4 sm:$0xff]   ;;  %v6218_v50 = vld [vmem:[%s8840_s4 + $0x84] ss:$8 sps:$4 sm:$0xff]  }
  0xeb   :  { %2231 = vmatprep.subr.bf16.mxu1 %v6221_v58  ;;  %v6263_v58 = vld [vmem:[%s8840_s4 + $0x194] ss:$8 sps:$4 sm:$0xff]  }
  0xec   :  { %1778 = vmatmul.mubr.bf16.vlgmr.msra.gmra.mxu0 %v6732_v55  ;;  %v6260_v55 = vld [vmem:[%s8840_s4 + $0x1a4] ss:$8 sps:$4 sm:$0xff]  }
  0xed   :  { %1737 = vmatmul.mubr.bf16.vlgmr.msra.gmra.mxu1 %v7274_v15  ;;  %2191 = vmatpush1.bf16.msra.mxu0 %v6171_v52  ;;  %v6182_v15 = vld [vmem:[%s8840_s4 + $0x44] ss:$8 sps:$4 sm:$0xff]   ;;  %v6257_v52 = vld [vmem:[%s8840_s4 + $0x1b4] ss:$8 sps:$4 sm:$0xff]  }
  0xee   :  { %2192 = vmatprep.subr.bf16.mxu0 %v6176_v53  ;;  %2232 = vmatpush1.bf16.msra.mxu1 %v6219_v57  ;;  %v6216_v53 = vld [vmem:[%s8840_s4 + $0x80] ss:$8 sps:$4 sm:$0xff]  }
  0xef   :  { %2233 = vmatprep.subr.bf16.mxu1 %v6224_v6  ;;  %v6261_v6 = vld [vmem:[%s8840_s4 + $0x190] ss:$8 sps:$4 sm:$0xff]  }
  0xf1   :  { %2193 = vmatpush1.bf16.msra.mxu0 %v6174_v54  ;;  %v6255_v54 = vld [vmem:[%s8840_s4 + $0x1b0] ss:$8 sps:$4 sm:$0xff]  }
  0xf2   :  { %2194 = vmatprep.subr.bf16.mxu0 %v6179_v56  ;;  %2234 = vmatpush1.bf16.msra.mxu1 %v6222_v61  ;;  %v6258_v56 = vld [vmem:[%s8840_s4 + $0x1a0] ss:$8 sps:$4 sm:$0xff]  }
  0xf3   :  { %2235 = vmatprep.subr.bf16.mxu1 %v6227_v35  ;;  %v6266_v35 = vld [vmem:[%s8840_s4 + $0x184] ss:$8 sps:$4 sm:$0xff]  }
  0xf5   :  { %2195 = vmatpush1.bf16.msra.mxu0 %v6177_v47  ;;  %v293_v47 = vlaneseq }
  0xf6   :  { %2196 = vmatprep.subr.bf16.mxu0 %v6182_v15  ;;  %2236 = vmatpush1.bf16.msra.mxu1 %v6225_v63 }
  0xf7   :  { %2237 = vmatprep.subr.bf16.mxu1 %v6230_v1  ;;  %v291_v1 = vld [vmem:[%s8864_s23] sm:$0xf] }
  0xf9   :  { %2197 = vmatpush1.bf16.msra.mxu0 %v6180_v59  ;;  %v7762_v59 = vshrl.u32 %v293_v47, 7 }
  0xfa   :  { %2198 = vmatprep.subr.bf16.mxu0 %v6185_v60  ;;  %2238 = vmatpush1.bf16.msra.mxu1 %v6228_v3 }
  0xfb   :  { %2239 = vmatprep.subr.bf16.mxu1 %v6233_v5  ;;  %v7771_v63 = vsub.s32 0, %v7762_v59 }
  0xfd   :  { %2199 = vmatpush1.bf16.msra.mxu0 %v6183_v62  ;;  %v6264_v62 = vld [vmem:[%s8840_s4 + $0x180] ss:$8 sps:$4 sm:$0xff]  }
  0xfe   :  { %2200 = vmatprep.subr.bf16.mxu0 %v6188_v0  ;;  %2240 = vmatpush1.bf16.msra.mxu1 %v6231_v9  ;;  %v7774_v0 = vsub.s32 1, %v7762_v59 }
  0xff   :  { %2241 = vmatprep.subr.bf16.mxu1 %v6236_v17 }
 0x100   :  { %v300_v3 = vrot.slane %v291_v1, %v7774_v0 }
 0x101   :  { %2201 = vmatpush1.bf16.msra.mxu0 %v6186_v2  ;;  %v296_v2 = vrot.slane %v291_v1, %v7771_v63 }
 0x102   :  { %2202 = vmatprep.subr.bf16.mxu0 %v6191_v4  ;;  %2242 = vmatpush1.bf16.msra.mxu1 %v6234_v19 }
 0x103   :  { %2243 = vmatprep.subr.bf16.mxu1 %v6239_v25 }
 0x105   :  { %2203 = vmatpush1.bf16.msra.mxu0 %v6189_v8 }
 0x106   :  { %2204 = vmatprep.subr.bf16.mxu0 %v6194_v10  ;;  %2244 = vmatpush1.bf16.msra.mxu1 %v6237_v27 }
 0x107   :  { %2245 = vmatprep.subr.bf16.mxu1 %v6242_v32 }
 0x109   :  { %2205 = vmatpush1.bf16.msra.mxu0 %v6192_v11 }
 0x10a   :  { %2206 = vmatprep.subr.bf16.mxu0 %v6197_v12  ;;  %2246 = vmatpush1.bf16.msra.mxu1 %v6240_v31 }
 0x10b   :  { %2247 = vmatprep.subr.bf16.mxu1 %v6245_v33 }
 0x10c   :  { %v7664_v20 = vpop.f32.mrf.mxu0 }
 0x10d   :  { %v7666_v21 = vpop.f32.mrf.mxu1  ;;  %2207 = vmatpush2.bf16.msra.mxu0 %v6195_v13 }
 0x10e   :  { %v7671_v23 = vpop.f32.mrf.mxu0  ;;  %2208 = vmatprep.subr.bf16.mxu0 %v6200_v14  ;;  %2248 = vmatpush2.bf16.msra.mxu1 %v6243_v37 }
 0x10f   :  { %v7673_v24 = vpop.f32.mrf.mxu1  ;;  %2249 = vmatprep.subr.bf16.mxu1 %v6248_v38 }
 0x110   :  { %v1496_v51 = vpop.f32.mrf.mxu0 }
 0x111   :  { %v1537_v7 = vpop.f32.mrf.mxu1  ;;  %2209 = vmatpush2.bf16.msra.mxu0 %v6198_v18 }
 0x112   :  { %v1497_v28 = vpop.f32.mrf.mxu0  ;;  %2210 = vmatprep.subr.bf16.mxu0 %v6203_v22  ;;  %2250 = vmatpush2.bf16.msra.mxu1 %v6246_v40 }
 0x113   :  { %v1538_v29 = vpop.f32.mrf.mxu1  ;;  %2251 = vmatprep.subr.bf16.mxu1 %v6251_v42 }
 0x115   :  { %2211 = vmatpush2.bf16.msra.mxu0 %v6201_v26 }
 0x116   :  { %2212 = vmatprep.subr.bf16.mxu0 %v6206_v30  ;;  %2252 = vmatpush2.bf16.msra.mxu1 %v6249_v44 }
 0x117   :  { %2253 = vmatprep.subr.bf16.mxu1 %v6254_v46 }
 0x119   :  { %2213 = vmatpush2.bf16.msra.mxu0 %v6204_v34 }
 0x11a   :  { %2214 = vmatprep.subr.bf16.mxu0 %v6209_v36  ;;  %2254 = vmatpush2.bf16.msra.mxu1 %v6252_v49 }
 0x11b   :  { %2255 = vmatprep.subr.bf16.mxu1 %v6257_v52 }
 0x11d   :  { %2215 = vmatpush2.bf16.msra.mxu0 %v6207_v39 }
 0x11e   :  { %2216 = vmatprep.subr.bf16.mxu0 %v6212_v41  ;;  %2256 = vmatpush2.bf16.msra.mxu1 %v6255_v54 }
 0x11f   :  { %2257 = vmatprep.subr.bf16.mxu1 %v6260_v55 }
 0x121   :  { %2217 = vmatpush2.bf16.msra.mxu0 %v6210_v43 }
 0x122   :  { %2218 = vmatprep.subr.bf16.mxu0 %v6215_v45  ;;  %2258 = vmatpush2.bf16.msra.mxu1 %v6258_v56 }
 0x123   :  { %2259 = vmatprep.subr.bf16.mxu1 %v6263_v58 }
 0x125   :  { %2219 = vmatpush2.bf16.msra.mxu0 %v6213_v48 }
 0x126   :  { %2220 = vmatprep.subr.bf16.mxu0 %v6218_v50  ;;  %2260 = vmatpush2.bf16.msra.mxu1 %v6261_v6 }
 0x127   :  { %2261 = vmatprep.subr.bf16.mxu1 %v6266_v35 }
 0x129   :  { %2221 = vmatpush2.bf16.msra.mxu0 %v6216_v53 }
 0x12a   :  { %2262 = vmatpush2.bf16.msra.mxu1 %v6264_v62 }
 0x12d   :  { %v1615_v15 = vpop.f32.mrf.mxu1 }
 0x12f   :  { %v1617_v57 = vpop.f32.mrf.mxu1 }
 0x131   :  { %v1619_v60 = vpop.f32.mrf.mxu1 }
 0x133   :  { %v1620_v61 = vpop.f32.mrf.mxu1 }
 0x134   :  { %25 = vsyncpa [#allocation3], 0  ;;  %v1493_v4 = vadd.f32 %v7664_v20, %v296_v2  ;;  %v1495_v5 = vadd.f32 %v7671_v23, %v300_v3  ;;  %v6267_v30 = vld [vmem:[%s8842_s6 + $0x78] sm:$0xff]   ;;  %v6269_v32 = vld [vmem:[%s8842_s6 + $0x70] sm:$0xff]   ;;  %v7795_v33 = vsub.s32 2, %v7762_v59  ;;  %v7804_v37 = vsub.s32 3, %v7762_v59 }
 0x135   :  { %v6268_v31 = vld [vmem:[%s8842_s6 + $0x38] sm:$0xff]   ;;  %5729 = vmatprep.subr.bf16.mxu0 %v6267_v30  ;;  %v6270_v34 = vld [vmem:[%s8842_s6 + $0x30] sm:$0xff]   ;;  %v6271_v36 = vld [vmem:[%s8842_s6 + $0x68] sm:$0xff]   ;;  %vm6745_vm0 = vmmov 0   ;;  %s8865_s30 = sld [smem:[#allocation6_spill]]  ;;  %s6746_s21 = smov 10  }
 0x136   :  { %v1534_v8 = vadd.f32 %v7666_v21, %v1493_v4  ;;  %v1536_v10 = vadd.f32 %v7673_v24, %v1495_v5  ;;  %v304_v38 = vrot.slane %v291_v1, %v7795_v33  ;;  %v6272_v39 = vld [vmem:[%s8842_s6 + $0x28] sm:$0xff]   ;;  %v6273_v40 = vld [vmem:[%s8842_s6 + $0x60] sm:$0xff]   ;;  %v308_v41 = vrot.slane %v291_v1, %v7804_v37  ;;  %v6275_v44 = vld [vmem:[%s8842_s6 + $0x58] sm:$0xff]   ;;  %s6747_s4 = smov 118  }
 0x137   :  { %v6274_v43 = vld [vmem:[%s8842_s6 + $0x20] sm:$0xff]   ;;  %v6276_v53 = vld [vmem:[%s8842_s6 + $0x18] sm:$0xff]   ;;  %v6277_v56 = vld [vmem:[%s8842_s6 + $0x50] sm:$0xff]   ;;  %vm2492_vm1 = vcmask 523264   ;;  %vm2603_vm2 = vcmask 1044480   ;;  %vm2572_vm3 = vcmask 80896  }
 0x138   :  { %v6278_v60 = vld [vmem:[%s8842_s6 + $0x10] sm:$0xff]   ;;  %v6279_v4 = vld [vmem:[%s8842_s6 + $0x48] sm:$0xff]  }
 0x139   :  { %v6280_v5 = vld [vmem:[%s8842_s6 + $0x8] sm:$0xff]  }
 0x14c   :  { %v1574_v9 = vpop.f32.mrf.mxu0 }
 0x14d   :  { %v1575_v11 = vadd.f32 %v1574_v9, %v1534_v8  ;;  %v6281_v8 = vld [vmem:[%s8842_s6 + $0x40] sm:$0xff]  }
 0x14e   :  { %v1576_v12 = vpop.f32.mrf.mxu0  ;;  %v6282_v9 = vld [vmem:[%s8842_s6] sm:$0xff]  }
 0x14f   :  { %v1616_v13 = vadd.f32 %v1615_v15, %v1575_v11  ;;  %v1577_v14 = vadd.f32 %v1576_v12, %v1536_v10  ;;  %v6283_v10 = vld [vmem:[%s8844_s8 + $0x18] sm:$0xff]   ;;  %v6744_v11 = vmov 0.0  }
 0x150   :  { %v1578_v17 = vpop.f32.mrf.mxu0  ;;  %5802 = vmatprep.subr.bf16.mxu1 %v6744_v11 }
 0x151   :  { %v1618_v18 = vadd.f32 %v1617_v57, %v1577_v14  ;;  %v1786_v19 = vmax.f32 %v1616_v13, 0.0 }
 0x152   :  { %v1579_v22 = vpop.f32.mrf.mxu0 }
 0x153   :  { %v1787_v25 = vmax.f32 %v1618_v18, 0.0  ;;  %v1790_v27 = vpack.c.bf16 %v1786_v19, %v1786_v19  ;;  %v1858_v18 = vld [vmem:[%s8841_s5] sm:$0x3]  ;;  %s6748_s5 = smov [#allocation2]  }
 0x154   :  { %v1863_v19 = vrot.slane %v1858_v18, %v7771_v63  ;;  %v1867_v22 = vrot.slane %v1858_v18, %v7774_v0  ;;  %v6297_v18 = vld [vmem:[%s8848_s12] ss:$8 sps:$4 sm:$0xff]  }
 0x155   :  { %v1791_v26 = vpack.c.bf16 %v1787_v25, %v1787_v25 }
 0x157   :  { %2222 = vmatprep.mubr.bf16.mxu0 %v1791_v26 }
 0x158   :  { %2223 = vmatmul.mubr.bf16.vlgmr.msra.gmra.mxu0 %v1790_v27 }
 0x159   :  { %5730 = vmatpush3.bf16.msra.mxu0 %v6268_v31  ;;  %v6284_v31 = vld [vmem:[%s8844_s8 + $0x10] sm:$0xff]  }
 0x15a   :  { %5731 = vmatprep.subr.bf16.mxu0 %v6269_v32  ;;  %v6285_v32 = vld [vmem:[%s8844_s8 + $0x8] sm:$0xff]  }
 0x15d   :  { %5732 = vmatpush3.bf16.msra.mxu0 %v6270_v34  ;;  %v6286_v34 = vld [vmem:[%s8844_s8] sm:$0xff]  }
 0x15e   :  { %5733 = vmatprep.subr.bf16.mxu0 %v6271_v36  ;;  %v2537_v36 = vld [vmem:[%s8865_s30] sm:$0xff] }
 0x15f   :  { %2539 = vrot.lane.b32.xlu0 %v2537_v36, %s6746_s21  ;;  %v6350_v36 = vld [vmem:[%s8850_s14 + $0x1e4] ss:$16 sps:$4 sm:$0xff]  }
 0x161   :  { %5734 = vmatpush3.bf16.msra.mxu0 %v6272_v39  ;;  %v5397_v39 = vld [vmem:[%s8843_s7] ss:$0 sm:$0xff] }
 0x162   :  { %5735 = vmatprep.subr.bf16.mxu0 %v6273_v40 }
 0x165   :  { %5736 = vmatpush3.bf16.msra.mxu0 %v6274_v43 }
 0x166   :  { %5737 = vmatprep.subr.bf16.mxu0 %v6275_v44 }
 0x169   :  { %5738 = vmatpush3.bf16.msra.mxu0 %v6276_v53 }
 0x16a   :  { %5739 = vmatprep.subr.bf16.mxu0 %v6277_v56 }
 0x16d   :  { %v1656_v20 = vpop.f32.mrf.mxu1  ;;  %5740 = vmatpush3.bf16.msra.mxu0 %v6278_v60 }
 0x16e   :  { %v1657_v42 = vadd.f32 %v1656_v20, %v304_v38  ;;  %5741 = vmatprep.subr.bf16.mxu0 %v6279_v4 }
 0x16f   :  { %v1658_v23 = vpop.f32.mrf.mxu1 }
 0x170   :  { %v1659_v45 = vadd.f32 %v1658_v23, %v308_v41 }
 0x171   :  { %v1660_v51 = vpop.f32.mrf.mxu1  ;;  %5742 = vmatpush3.bf16.msra.mxu0 %v6280_v5 }
 0x172   :  { %5743 = vmatprep.subr.bf16.mxu0 %v6281_v8 }
 0x173   :  { %v1661_v21 = vpop.f32.mrf.mxu1 }
 0x175   :  { %5744 = vmatpush3.bf16.msra.mxu0 %v6282_v9 }
 0x18c   :  { %v1697_v7 = vpop.f32.mrf.mxu0 }
 0x18d   :  { %v1698_v46 = vadd.f32 %v1697_v7, %v1657_v42 }
 0x18e   :  { %v1699_v28 = vpop.f32.mrf.mxu0 }
 0x18f   :  { %v1700_v50 = vadd.f32 %v1699_v28, %v1659_v45 }
 0x190   :  { %v1701_v24 = vpop.f32.mrf.mxu0 }
 0x192   :  { %v1702_v29 = vpop.f32.mrf.mxu0 }
 0x1ac   :  { %v1779_v49 = vpop.f32.mrf.mxu0 }
 0x1ad   :  { %v1738_v48 = vpop.f32.mrf.mxu1 }
 0x1ae   :  { %v1739_v52 = vadd.f32 %v1738_v48, %v1698_v46  ;;  %v1781_v55 = vpop.f32.mrf.mxu0  ;;  %v6287_v48 = vld [vmem:[%s8846_s10] sm:$0x1f]  }
 0x1af   :  { %v1740_v54 = vpop.f32.mrf.mxu1 }
 0x1b0   :  { %v1780_v47 = vadd.f32 %v1779_v49, %v1739_v52  ;;  %v1741_v15 = vadd.f32 %v1740_v54, %v1700_v50  ;;  %v1783_v58 = vpop.f32.mrf.mxu0  ;;  %v2605_v49 = vsel %vm2603_vm2, %v6287_v48, 0  ;;  %v5414_v50 = vld [vmem:[%s8845_s9] ss:$0 sm:$0xff]  ;;  %v6380_v48 = vld [vmem:[%s8850_s14 + $0x144] ss:$16 sps:$4 sm:$0xff]  }
 0x1b1   :  { %v1742_v57 = vpop.f32.mrf.mxu1 }
 0x1b2   :  { %v1782_v6 = vadd.f32 %v1781_v55, %v1741_v15  ;;  %v1788_v61 = vmax.f32 %v1780_v47, 0.0  ;;  %v1784_v62 = vpop.f32.mrf.mxu0 }
 0x1b3   :  { %v1743_v35 = vpop.f32.mrf.mxu1 }
 0x1b4   :  { %v1789_v1 = vmax.f32 %v1782_v6, 0.0  ;;  %v1792_v3 = vpack.c.bf16 %v1788_v61, %v1788_v61 }
 0x1b6   :  { %v1793_v2 = vpack.c.bf16 %v1789_v1, %v1789_v1 }
 0x1b8   :  { %2263 = vmatprep.mubr.bf16.mxu1 %v1793_v2 }
 0x1b9   :  { %2264 = vmatmul.mubr.bf16.vlgmr.msra.gmra.mxu1 %v1792_v3 }
 0x1ba   :  { %5803 = vmatpush3.bf16.msra.mxu1 %v6283_v10  ;;  %5810 = vmatprep.mubr.msk.bf16.mxu1 %vm6745_vm0, %v6744_v11  ;;  %v6288_v10 = vld [vmem:[%s8848_s12 + $0x30] ss:$8 sps:$4 sm:$0xff]  }
 0x1bb   :  { %5804 = vmatprep.subr.bf16.mxu1 %v6744_v11 }
 0x1be   :  { %5805 = vmatpush3.bf16.msra.mxu1 %v6284_v31  ;;  %v6336_v31 = vld [vmem:[%s8850_s14 + $0x20] ss:$16 sps:$4 sm:$0xff]  }
 0x1bf   :  { %5806 = vmatprep.subr.bf16.mxu1 %v6744_v11 }
 0x1c2   :  { %5807 = vmatpush3.bf16.msra.mxu1 %v6285_v32  ;;  %v6344_v32 = vld [vmem:[%s8850_s14 + $0x4] ss:$16 sps:$4 sm:$0xff]  }
 0x1c3   :  { %5808 = vmatprep.subr.bf16.mxu1 %v6744_v11 }
 0x1c6   :  { %5809 = vmatpush3.bf16.msra.mxu1 %v6286_v34  ;;  %v6342_v34 = vld [vmem:[%s8850_s14] ss:$16 sps:$4 sm:$0xff]  }
 0x1c7   :  { %5814 = vmatprep.subr.bf16.mxu1 %v6744_v11 }
 0x1d1   :  { %v2540_v55 = vpop.permute.xlu0 %2539 }
 0x218   :  { %v2224_v12 = vpop.f32.mrf.mxu0 }
 0x219   :  { %v2225_v25 = vadd.f32 %v2224_v12, %v1863_v19  ;;  %v6293_v12 = vld [vmem:[%s8848_s12 + $0x24] ss:$8 sps:$4 sm:$0xff]   ;;  %v6300_v19 = vld [vmem:[%s8850_s14 + $0xe0] ss:$16 sps:$4 sm:$0xff]  }
 0x21a   :  { %v2226_v13 = vpop.f32.mrf.mxu0 }
 0x21b   :  { %v2227_v27 = vadd.f32 %v2226_v13, %v1867_v22  ;;  %v6296_v13 = vld [vmem:[%s8848_s12 + $0x14] ss:$8 sps:$4 sm:$0xff]  }
 0x21c   :  { %v2228_v14 = vpop.f32.mrf.mxu0  ;;  %v6302_v22 = vld [vmem:[%s8850_s14 + $0xe4] ss:$16 sps:$4 sm:$0xff]  }
 0x21d   :  { %v6294_v14 = vld [vmem:[%s8848_s12 + $0x10] ss:$8 sps:$4 sm:$0xff]   ;;  %3163 = vmatprep.subr.bf16.mxu0 %v6302_v22 }
 0x21e   :  { %v2229_v17 = vpop.f32.mrf.mxu0  ;;  %v6351_v22 = vld [vmem:[%s8850_s14 + $0x1e8] ss:$16 sps:$4 sm:$0xff]  }
 0x21f   :  { %v6299_v17 = vld [vmem:[%s8848_s12 + $0x4] ss:$8 sps:$4 sm:$0xff]  }
 0x279   :  { %v2265_v26 = vpop.f32.mrf.mxu1 }
 0x27a   :  { %v2266_v20 = vadd.f32 %v2265_v26, %v2225_v25  ;;  %v6305_v25 = vld [vmem:[%s8850_s14 + $0xec] ss:$16 sps:$4 sm:$0xff]   ;;  %v6308_v26 = vld [vmem:[%s8850_s14 + $0xc4] ss:$16 sps:$4 sm:$0xff]  }
 0x27b   :  { %v2267_v23 = vpop.f32.mrf.mxu1 }
 0x27c   :  { %v2268_v51 = vadd.f32 %v2267_v23, %v2227_v27  ;;  %v2272_v21 = vmax.f32 %v2266_v20, 0.0  ;;  %v6306_v27 = vld [vmem:[%s8850_s14 + $0xc0] ss:$16 sps:$4 sm:$0xff]   ;;  %v6314_v20 = vld [vmem:[%s8850_s14 + $0xa4] ss:$16 sps:$4 sm:$0xff]  }
 0x27d   :  { %v2269_v7 = vpop.f32.mrf.mxu1  ;;  %v6312_v23 = vld [vmem:[%s8850_s14 + $0xa0] ss:$16 sps:$4 sm:$0xff]  }
 0x27e   :  { %v2273_v28 = vmax.f32 %v2268_v51, 0.0  ;;  %v2274_v30 = vpack.c.bf16 %v2272_v21, %v2272_v21  ;;  %v6320_v51 = vld [vmem:[%s8850_s14 + $0x84] ss:$16 sps:$4 sm:$0xff]   ;;  %v6318_v21 = vld [vmem:[%s8850_s14 + $0x80] ss:$16 sps:$4 sm:$0xff]  }
 0x27f   :  { %v2270_v24 = vpop.f32.mrf.mxu1  ;;  %v6326_v7 = vld [vmem:[%s8850_s14 + $0x64] ss:$16 sps:$4 sm:$0xff]  }
 0x280   :  { %v2275_v29 = vpack.c.bf16 %v2273_v28, %v2273_v28  ;;  %v6324_v28 = vld [vmem:[%s8850_s14 + $0x60] ss:$16 sps:$4 sm:$0xff]   ;;  %v6332_v24 = vld [vmem:[%s8850_s14 + $0x44] ss:$16 sps:$4 sm:$0xff]  }
 0x282   :  { %2443 = vmatprep.mubr.bf16.mxu0 %v2275_v29  ;;  %v6330_v29 = vld [vmem:[%s8850_s14 + $0x40] ss:$16 sps:$4 sm:$0xff]  }
 0x283   :  { %2444 = vmatmul.mubr.bf16.vlgmr.msra.gmra.mxu0 %v2274_v30  ;;  %v6338_v30 = vld [vmem:[%s8850_s14 + $0x24] ss:$16 sps:$4 sm:$0xff]  }
 0x284   :  { %3164 = vmatpush1.bf16.msra.mxu0 %v6300_v19  ;;  %v6353_v19 = vld [vmem:[%s8850_s14 + $0x1ec] ss:$16 sps:$4 sm:$0xff]  }
 0x285   :  { %3165 = vmatprep.subr.bf16.mxu0 %v6308_v26  ;;  %v6357_v26 = vld [vmem:[%s8850_s14 + $0x1c8] ss:$16 sps:$4 sm:$0xff]  }
 0x288   :  { %3166 = vmatpush1.bf16.msra.mxu0 %v6306_v27  ;;  %v6365_v27 = vld [vmem:[%s8850_s14 + $0x1ac] ss:$16 sps:$4 sm:$0xff]  }
 0x289   :  { %3167 = vmatprep.subr.bf16.mxu0 %v6314_v20  ;;  %v6363_v20 = vld [vmem:[%s8850_s14 + $0x1a8] ss:$16 sps:$4 sm:$0xff]  }
 0x28c   :  { %3168 = vmatpush1.bf16.msra.mxu0 %v6312_v23  ;;  %v6371_v23 = vld [vmem:[%s8850_s14 + $0x18c] ss:$16 sps:$4 sm:$0xff]  }
 0x28d   :  { %3169 = vmatprep.subr.bf16.mxu0 %v6320_v51  ;;  %v6369_v51 = vld [vmem:[%s8850_s14 + $0x188] ss:$16 sps:$4 sm:$0xff]  }
 0x290   :  { %3170 = vmatpush1.bf16.msra.mxu0 %v6318_v21  ;;  %v6377_v21 = vld [vmem:[%s8850_s14 + $0x16c] ss:$16 sps:$4 sm:$0xff]  }
 0x291   :  { %3171 = vmatprep.subr.bf16.mxu0 %v6326_v7  ;;  %v6375_v7 = vld [vmem:[%s8850_s14 + $0x168] ss:$16 sps:$4 sm:$0xff]  }
 0x294   :  { %3172 = vmatpush1.bf16.msra.mxu0 %v6324_v28  ;;  %v6383_v28 = vld [vmem:[%s8850_s14 + $0x14c] ss:$16 sps:$4 sm:$0xff]  }
 0x295   :  { %3173 = vmatprep.subr.bf16.mxu0 %v6332_v24  ;;  %v6381_v24 = vld [vmem:[%s8850_s14 + $0x148] ss:$16 sps:$4 sm:$0xff]  }
 0x298   :  { %3174 = vmatpush1.bf16.msra.mxu0 %v6330_v29  ;;  %v6386_v29 = vld [vmem:[%s8850_s14 + $0x124] ss:$16 sps:$4 sm:$0xff]  }
 0x299   :  { %3175 = vmatprep.subr.bf16.mxu0 %v6338_v30  ;;  %v6389_v30 = vld [vmem:[%s8850_s14 + $0x12c] ss:$16 sps:$4 sm:$0xff]  }
 0x29c   :  { %3176 = vmatpush1.bf16.msra.mxu0 %v6336_v31  ;;  %v6384_v31 = vld [vmem:[%s8850_s14 + $0x120] ss:$16 sps:$4 sm:$0xff]  }
 0x29d   :  { %3177 = vmatprep.subr.bf16.mxu0 %v6344_v32  ;;  %v6387_v32 = vld [vmem:[%s8850_s14 + $0x128] ss:$16 sps:$4 sm:$0xff]  }
 0x2a0   :  { %3178 = vmatpush1.bf16.msra.mxu0 %v6342_v34  ;;  %v6392_v34 = vld [vmem:[%s8850_s14 + $0x104] ss:$16 sps:$4 sm:$0xff]  }
 0x2a1   :  { %3179 = vmatprep.subr.bf16.mxu0 %v6350_v36  ;;  %v6395_v36 = vld [vmem:[%s8850_s14 + $0x10c] ss:$16 sps:$4 sm:$0xff]  }
 0x343   :  { %v5745_v38 = vpop.f32.mrf.mxu0 }
 0x345   :  { %v5746_v40 = vpop.f32.mrf.mxu0 }
 0x346   :  { %v5747_v41 = vadd.f32 %v5746_v40, %v5745_v38  ;;  %v6348_v38 = vld [vmem:[%s8850_s14 + $0x1e0] ss:$16 sps:$4 sm:$0xff]  }
 0x347   :  { %v5748_v42 = vpop.f32.mrf.mxu0  ;;  %3180 = vmatpush2.bf16.msra.mxu0 %v6348_v38  ;;  %v6354_v40 = vld [vmem:[%s8850_s14 + $0x1c0] ss:$16 sps:$4 sm:$0xff]  }
 0x348   :  { %v2446_v43 = vadd.f32 %v5747_v41, %v5397_v39  ;;  %v6356_v39 = vld [vmem:[%s8850_s14 + $0x1c4] ss:$16 sps:$4 sm:$0xff]   ;;  %v6360_v42 = vld [vmem:[%s8850_s14 + $0x1a0] ss:$16 sps:$4 sm:$0xff]  }
 0x349   :  { %v5749_v44 = vpop.f32.mrf.mxu0  ;;  %3181 = vmatprep.subr.bf16.mxu0 %v6356_v39  ;;  %v6362_v41 = vld [vmem:[%s8850_s14 + $0x1a4] ss:$16 sps:$4 sm:$0xff]   ;;  %v6390_v38 = vld [vmem:[%s8850_s14 + $0x100] ss:$16 sps:$4 sm:$0xff]   ;;  %v6393_v39 = vld [vmem:[%s8850_s14 + $0x108] ss:$16 sps:$4 sm:$0xff]  }
 0x34a   :  { %v2451_v45 = vmax.f32 %v2446_v43, 0.0  ;;  %v6368_v43 = vld [vmem:[%s8850_s14 + $0x184] ss:$16 sps:$4 sm:$0xff]   ;;  %v6366_v44 = vld [vmem:[%s8850_s14 + $0x180] ss:$16 sps:$4 sm:$0xff]  }
 0x34b   :  { %3182 = vmatpush2.bf16.msra.mxu0 %v6354_v40  ;;  %v6398_v40 = vld [vmem:[%s8852_s16 + $0x18c] ss:$28 sps:$4 sm:$0xff]  }
 0x34c   :  { %v2452_v46 = vpack.c.bf16 %v2451_v45, %v2451_v45  ;;  %3183 = vmatprep.subr.bf16.mxu0 %v6362_v41  ;;  %v6374_v45 = vld [vmem:[%s8850_s14 + $0x164] ss:$16 sps:$4 sm:$0xff]   ;;  %v6401_v41 = vld [vmem:[%s8852_s16 + $0x50c] ss:$28 sps:$4 sm:$0xff]  }
 0x34e   :  { %5811 = vmatmul.mubr.msk.bf16.vlgmr.msra.gmra.mxu1 %vm2492_vm1, %v2452_v46  ;;  %v6372_v46 = vld [vmem:[%s8850_s14 + $0x160] ss:$16 sps:$4 sm:$0xff]  }
 0x34f   :  { %5816 = vmatprep.mubr.msk.bf16.mxu1 %vm6745_vm0, %v6744_v11  ;;  %5815 = vmatpush3.bf16.msra.mxu1 %v2605_v49  ;;  %v6290_v11 = vld [vmem:[%s8848_s12 + $0x34] ss:$8 sps:$4 sm:$0xff]   ;;  %v6378_v49 = vld [vmem:[%s8850_s14 + $0x140] ss:$16 sps:$4 sm:$0xff]  }
 0x350   :  { %2720 = vmatprep.subr.bf16.mxu1 %v6290_v11  ;;  %3184 = vmatpush2.bf16.msra.mxu0 %v6360_v42  ;;  %v6327_v11 = vld [vmem:[%s8850_s14 + $0x68] ss:$16 sps:$4 sm:$0xff]   ;;  %v2657_v42 = vld [vmem:[%s8849_s13] sm:$0x3] }
 0x351   :  { %3185 = vmatprep.subr.bf16.mxu0 %v6368_v43  ;;  %v2662_v43 = vrot.slane %v2657_v42, %v7771_v63 }
 0x354   :  { %3186 = vmatpush2.bf16.msra.mxu0 %v6366_v44  ;;  %v2666_v44 = vrot.slane %v2657_v42, %v7774_v0  ;;  %v6470_v42 = vld [vmem:[%s8852_s16 + $0x26c] ss:$28 sps:$4 sm:$0xff]  }
 0x355   :  { %3187 = vmatprep.subr.bf16.mxu0 %v6374_v45 }
 0x358   :  { %3188 = vmatpush2.bf16.msra.mxu0 %v6372_v46 }
 0x359   :  { %3189 = vmatprep.subr.bf16.mxu0 %v6380_v48 }
 0x35c   :  { %3190 = vmatpush2.bf16.msra.mxu0 %v6378_v49 }
 0x35d   :  { %3191 = vmatprep.subr.bf16.mxu0 %v6386_v29  ;;  %v6450_v29 = vld [vmem:[%s8852_s16 + $0x310] ss:$28 sps:$4 sm:$0xff]  }
 0x360   :  { %3192 = vmatpush2.bf16.msra.mxu0 %v6384_v31  ;;  %v6458_v31 = vld [vmem:[%s8852_s16 + $0x2dc] ss:$28 sps:$4 sm:$0xff]  }
 0x361   :  { %3193 = vmatprep.subr.bf16.mxu0 %v6392_v34  ;;  %v6456_v34 = vld [vmem:[%s8852_s16 + $0x2d8] ss:$28 sps:$4 sm:$0xff]  }
 0x364   :  { %3194 = vmatpush2.bf16.msra.mxu0 %v6390_v38  ;;  %v6464_v38 = vld [vmem:[%s8852_s16 + $0x2a4] ss:$28 sps:$4 sm:$0xff]  }
 0x365   :  { %4698 = vmatprep.subr.bf16.mxu0 %v6398_v40  ;;  %v6462_v40 = vld [vmem:[%s8852_s16 + $0x2a0] ss:$28 sps:$4 sm:$0xff]  }
 0x40e   :  { %v2530_v52 = vpop.f32.mrf.mxu1 }
 0x40f   :  { %v2531_v53 = vadd.f32 %v5414_v50, %v2530_v52 }
 0x410   :  { %v5812_v54 = vpop.f32.mrf.mxu1 }
 0x411   :  { %v2536_v56 = vmax.f32 %v2531_v53, 0.0 }
 0x412   :  { %v2533_v47 = vpop.f32.mrf.mxu1 }
 0x413   :  { %v2542_v15 = vmul.f32 %v2540_v55, %v2536_v56  ;;  %v2548_v57 = vmul.f32 %v2536_v56, %v2536_v56 }
 0x414   :  { %v5813_v58 = vpop.f32.mrf.mxu1 }
 0x415   :  { %2550 = vrot.lane.b32.xlu1 %v2548_v57, %s6747_s4  ;;  %2544 = vrot.lane.b32.xlu0 %v2542_v15, %s6747_s4  ;;  %v2554_v6 = vadd.f32 1e-08, %v2548_v57  ;;  %v5421_v15 = vld [vmem:[%s8847_s11] ss:$0 sm:$0xff] }
 0x417   :  { %6716 = vlog2.f32 %v2554_v6 }
 0x424   :  { %v6717_v60 = vpop.eup %6716 }
 0x425   :  { %v2556_v61 = vmul.f32 0.6931472, %v6717_v60 }
 0x427   :  { %2558 = vrot.lane.b32.xlu1 %v2556_v61, %s6747_s4 }
 0x487   :  { %v2545_v35 = vpop.permute.xlu0 %2544  ;;  %v2551_v2 = vpop.permute.xlu1 %2550 }
 0x488   :  { %v2547_v62 = vadd.f32 %v2545_v35, %v2536_v56  ;;  %v2553_v3 = vadd.f32 %v2551_v2, %v2548_v57  ;;  %v6303_v35 = vld [vmem:[%s8850_s14 + $0xe8] ss:$16 sps:$4 sm:$0xff]  }
 0x48a   :  { %v2585_v1 = vpack.c.bf16 %v2547_v62, %v2547_v62 }
 0x48c   :  { %5817 = vmatmul.mubr.msk.bf16.vlgmr.msra.gmra.mxu1 %vm2572_vm3, %v2585_v1  ;;  %v6311_v1 = vld [vmem:[%s8850_s14 + $0xcc] ss:$16 sps:$4 sm:$0xff]  }
 0x48d   :  { %2744 = vmatprep.mubr.bf16.mxu1 %v6743_v16  ;;  %2721 = vmatpush1.bf16.msra.mxu1 %v6288_v10  ;;  %v6291_v16 = vld [vmem:[%s8848_s12 + $0x20] ss:$8 sps:$4 sm:$0xff]   ;;  %v6329_v10 = vld [vmem:[%s8850_s14 + $0x6c] ss:$16 sps:$4 sm:$0xff]  }
 0x48e   :  { %2722 = vmatprep.subr.bf16.mxu1 %v6293_v12  ;;  %v6335_v12 = vld [vmem:[%s8850_s14 + $0x4c] ss:$16 sps:$4 sm:$0xff]  }
 0x491   :  { %2723 = vmatpush1.bf16.msra.mxu1 %v6291_v16  ;;  %v6333_v16 = vld [vmem:[%s8850_s14 + $0x48] ss:$16 sps:$4 sm:$0xff]  }
 0x492   :  { %2724 = vmatprep.subr.bf16.mxu1 %v6296_v13  ;;  %v6341_v13 = vld [vmem:[%s8850_s14 + $0x2c] ss:$16 sps:$4 sm:$0xff]  }
 0x495   :  { %2725 = vmatpush1.bf16.msra.mxu1 %v6294_v14  ;;  %v6339_v14 = vld [vmem:[%s8850_s14 + $0x28] ss:$16 sps:$4 sm:$0xff]  }
 0x496   :  { %2726 = vmatprep.subr.bf16.mxu1 %v6299_v17  ;;  %v6347_v17 = vld [vmem:[%s8850_s14 + $0xc] ss:$16 sps:$4 sm:$0xff]  }
 0x499   :  { %v2559_v4 = vpop.permute.xlu1 %2558  ;;  %2727 = vmatpush1.bf16.msra.mxu1 %v6297_v18  ;;  %v6345_v18 = vld [vmem:[%s8850_s14 + $0x8] ss:$16 sps:$4 sm:$0xff]  }
 0x49a   :  { %v2561_v5 = vsub.f32 %v2553_v3, %v2559_v4  ;;  %3204 = vmatprep.subr.bf16.mxu1 %v6305_v25  ;;  %v6309_v3 = vld [vmem:[%s8850_s14 + $0xc8] ss:$16 sps:$4 sm:$0xff]   ;;  %v6317_v4 = vld [vmem:[%s8850_s14 + $0xac] ss:$16 sps:$4 sm:$0xff]  }
 0x49b   :  { %v6359_v25 = vld [vmem:[%s8850_s14 + $0x1cc] ss:$16 sps:$4 sm:$0xff]  }
 0x49c   :  { %v5420_v8 = vadd.f32 -1.0, %v2561_v5  ;;  %v6315_v5 = vld [vmem:[%s8850_s14 + $0xa8] ss:$16 sps:$4 sm:$0xff]  }
 0x49e   :  { %v2573_v9 = vsel %vm2572_vm3, %v5420_v8, 0.0  ;;  %v6323_v8 = vld [vmem:[%s8850_s14 + $0x8c] ss:$16 sps:$4 sm:$0xff]  }
 0x49f   :  { %2574 = vadd.xlane.f32.xlu0 %v2573_v9  ;;  %v6321_v9 = vld [vmem:[%s8850_s14 + $0x88] ss:$16 sps:$4 sm:$0xff]  }
 0x528   :  { %v2575_v50 = vpop.xlane.xlu0 %2574 }
 0x529   :  { %v2576_v52 = vrot.slane %v2575_v50, 4 }
 0x52b   :  { %v2577_v53 = vadd.f32 %v2576_v52, %v2575_v50 }
 0x52d   :  { %v2578_v54 = vrot.slane %v2577_v53, 2 }
 0x52f   :  { %v2579_v55 = vadd.f32 %v2578_v54, %v2577_v53 }
 0x531   :  { %v2580_v56 = vrot.slane %v2579_v55, 1 }
 0x533   :  { %v2581_v47 = vadd.f32 %v2580_v56, %v2579_v55  ;;  %v6396_v56 = vld [vmem:[%s8852_s16 + $0x188] ss:$28 sps:$4 sm:$0xff]  }
 0x535   :  { %5820 = vpush %v2581_v47  ;;  %v6399_v47 = vld [vmem:[%s8852_s16 + $0x508] ss:$28 sps:$4 sm:$0xff]  }
 0x54c   :  { %v2641_v57 = vpop.f32.mrf.mxu1 }
 0x54d   :  { %v2642_v58 = vadd.f32 %v5421_v15, %v2641_v57  ;;  %v6404_v57 = vld [vmem:[%s8852_s16 + $0x154] ss:$28 sps:$4 sm:$0xff]  }
 0x54e   :  { %v5818_v6 = vpop.f32.mrf.mxu1 }
 0x54f   :  { %v2647_v60 = vmax.f32 %v2642_v58, 0.0  ;;  %v6407_v58 = vld [vmem:[%s8852_s16 + $0x4d4] ss:$28 sps:$4 sm:$0xff]  }
 0x550   :  { %v2644_v61 = vpop.f32.mrf.mxu1  ;;  %v6402_v6 = vld [vmem:[%s8852_s16 + $0x150] ss:$28 sps:$4 sm:$0xff]  }
 0x551   :  { %v2648_v62 = vpack.c.bf16 %v2647_v60, %v2647_v60  ;;  %v6405_v60 = vld [vmem:[%s8852_s16 + $0x4d0] ss:$28 sps:$4 sm:$0xff]   ;;  %v6410_v61 = vld [vmem:[%s8852_s16 + $0x11c] ss:$28 sps:$4 sm:$0xff]  }
 0x552   :  { %v5819_v2 = vpop.f32.mrf.mxu1 }
 0x553   :  { %5432 = vmatmul.mubr.msk.bf16.vlgmr.msra.gmra.mxu1 %vm2492_vm1, %v2648_v62  ;;  %v6408_v62 = vld [vmem:[%s8852_s16 + $0x118] ss:$28 sps:$4 sm:$0xff]   ;;  %v6416_v2 = vld [vmem:[%s8852_s16 + $0xe4] ss:$28 sps:$4 sm:$0xff]  }
 0x554   :  { %3205 = vmatpush1.bf16.msra.mxu1 %v6303_v35  ;;  %v6413_v35 = vld [vmem:[%s8852_s16 + $0x49c] ss:$28 sps:$4 sm:$0xff]  }
 0x555   :  { %3206 = vmatprep.subr.bf16.mxu1 %v6311_v1  ;;  %v6411_v1 = vld [vmem:[%s8852_s16 + $0x498] ss:$28 sps:$4 sm:$0xff]  }
 0x558   :  { %3207 = vmatpush1.bf16.msra.mxu1 %v6309_v3  ;;  %v6419_v3 = vld [vmem:[%s8852_s16 + $0x464] ss:$28 sps:$4 sm:$0xff]  }
 0x559   :  { %3208 = vmatprep.subr.bf16.mxu1 %v6317_v4  ;;  %v6414_v4 = vld [vmem:[%s8852_s16 + $0xe0] ss:$28 sps:$4 sm:$0xff]  }
 0x55c   :  { %3209 = vmatpush1.bf16.msra.mxu1 %v6315_v5  ;;  %v6417_v5 = vld [vmem:[%s8852_s16 + $0x460] ss:$28 sps:$4 sm:$0xff]  }
 0x55d   :  { %3210 = vmatprep.subr.bf16.mxu1 %v6323_v8  ;;  %v6422_v8 = vld [vmem:[%s8852_s16 + $0xac] ss:$28 sps:$4 sm:$0xff]  }
 0x560   :  { %3211 = vmatpush1.bf16.msra.mxu1 %v6321_v9  ;;  %v6425_v9 = vld [vmem:[%s8852_s16 + $0x42c] ss:$28 sps:$4 sm:$0xff]  }
 0x561   :  { %3212 = vmatprep.subr.bf16.mxu1 %v6329_v10  ;;  %v6420_v10 = vld [vmem:[%s8852_s16 + $0xa8] ss:$28 sps:$4 sm:$0xff]  }
 0x564   :  { %3213 = vmatpush1.bf16.msra.mxu1 %v6327_v11  ;;  %v6423_v11 = vld [vmem:[%s8852_s16 + $0x428] ss:$28 sps:$4 sm:$0xff]  }
 0x565   :  { %3214 = vmatprep.subr.bf16.mxu1 %v6335_v12  ;;  %v6428_v12 = vld [vmem:[%s8852_s16 + $0x74] ss:$28 sps:$4 sm:$0xff]  }
 0x566   :  { %s5821_s27 = spop %5820 }
 0x567   :  { %2584 = sst [smem:[#allocation2]] %s5821_s27 }
 0x568   :  { %3215 = vmatpush1.bf16.msra.mxu1 %v6333_v16  ;;  %v6431_v16 = vld [vmem:[%s8852_s16 + $0x3f4] ss:$28 sps:$4 sm:$0xff]   ;;  %5094 = dma.smem_to_hbm %s6748_s5, 16, %s8855_s19, [#allocation3]  }
 0x569   :  { %3216 = vmatprep.subr.bf16.mxu1 %v6341_v13  ;;  %v6426_v13 = vld [vmem:[%s8852_s16 + $0x70] ss:$28 sps:$4 sm:$0xff]  }
 0x56c   :  { %3217 = vmatpush1.bf16.msra.mxu1 %v6339_v14  ;;  %v6429_v14 = vld [vmem:[%s8852_s16 + $0x3f0] ss:$28 sps:$4 sm:$0xff]  }
 0x56d   :  { %3218 = vmatprep.subr.bf16.mxu1 %v6347_v17  ;;  %v6434_v17 = vld [vmem:[%s8852_s16 + $0x3c] ss:$28 sps:$4 sm:$0xff]  }
 0x570   :  { %3219 = vmatpush1.bf16.msra.mxu1 %v6345_v18  ;;  %v6437_v18 = vld [vmem:[%s8852_s16 + $0x3bc] ss:$28 sps:$4 sm:$0xff]  }
 0x571   :  { %3220 = vmatprep.subr.bf16.mxu1 %v6353_v19  ;;  %v6432_v19 = vld [vmem:[%s8852_s16 + $0x38] ss:$28 sps:$4 sm:$0xff]  }
 0x574   :  { %3221 = vmatpush2.bf16.msra.mxu1 %v6351_v22  ;;  %v6435_v22 = vld [vmem:[%s8852_s16 + $0x3b8] ss:$28 sps:$4 sm:$0xff]  }
 0x575   :  { %3222 = vmatprep.subr.bf16.mxu1 %v6359_v25  ;;  %v6440_v25 = vld [vmem:[%s8852_s16 + $0x4] ss:$28 sps:$4 sm:$0xff]  }
 0x578   :  { %3223 = vmatpush2.bf16.msra.mxu1 %v6357_v26  ;;  %v6443_v26 = vld [vmem:[%s8852_s16 + $0x384] ss:$28 sps:$4 sm:$0xff]  }
 0x579   :  { %3224 = vmatprep.subr.bf16.mxu1 %v6365_v27  ;;  %v6438_v27 = vld [vmem:[%s8852_s16] ss:$28 sps:$4 sm:$0xff]  }
 0x57c   :  { %3225 = vmatpush2.bf16.msra.mxu1 %v6363_v20  ;;  %v6441_v20 = vld [vmem:[%s8852_s16 + $0x380] ss:$28 sps:$4 sm:$0xff]  }
 0x57d   :  { %3226 = vmatprep.subr.bf16.mxu1 %v6371_v23  ;;  %v6446_v23 = vld [vmem:[%s8852_s16 + $0x34c] ss:$28 sps:$4 sm:$0xff]  }
 0x580   :  { %3227 = vmatpush2.bf16.msra.mxu1 %v6369_v51  ;;  %v6449_v51 = vld [vmem:[%s8852_s16 + $0x6cc] ss:$28 sps:$4 sm:$0xff]  }
 0x581   :  { %3228 = vmatprep.subr.bf16.mxu1 %v6377_v21  ;;  %v6444_v21 = vld [vmem:[%s8852_s16 + $0x348] ss:$28 sps:$4 sm:$0xff]  }
 0x584   :  { %3229 = vmatpush2.bf16.msra.mxu1 %v6375_v7  ;;  %v6447_v7 = vld [vmem:[%s8852_s16 + $0x6c8] ss:$28 sps:$4 sm:$0xff]  }
 0x585   :  { %3230 = vmatprep.subr.bf16.mxu1 %v6383_v28  ;;  %v6452_v28 = vld [vmem:[%s8852_s16 + $0x314] ss:$28 sps:$4 sm:$0xff]  }
 0x588   :  { %3231 = vmatpush2.bf16.msra.mxu1 %v6381_v24  ;;  %v6455_v24 = vld [vmem:[%s8852_s16 + $0x694] ss:$28 sps:$4 sm:$0xff]  }
 0x589   :  { %3232 = vmatprep.subr.bf16.mxu1 %v6389_v30  ;;  %v6453_v30 = vld [vmem:[%s8852_s16 + $0x690] ss:$28 sps:$4 sm:$0xff]  }
 0x58c   :  { %3233 = vmatpush2.bf16.msra.mxu1 %v6387_v32  ;;  %v6461_v32 = vld [vmem:[%s8852_s16 + $0x65c] ss:$28 sps:$4 sm:$0xff]  }
 0x58d   :  { %3234 = vmatprep.subr.bf16.mxu1 %v6395_v36  ;;  %v6459_v36 = vld [vmem:[%s8852_s16 + $0x658] ss:$28 sps:$4 sm:$0xff]  }
 0x590   :  { %3235 = vmatpush2.bf16.msra.mxu1 %v6393_v39  ;;  %v6467_v39 = vld [vmem:[%s8852_s16 + $0x624] ss:$28 sps:$4 sm:$0xff]  }
 0x591   :  { %4739 = vmatprep.subr.bf16.mxu1 %v6401_v41  ;;  %v6465_v41 = vld [vmem:[%s8852_s16 + $0x620] ss:$28 sps:$4 sm:$0xff]  }
 0x613   :  { %v2746_v45 = vpop.f32.mrf.mxu1 }
 0x614   :  { %v2747_v46 = vadd.f32 %v2746_v45, %v2662_v43  ;;  %v6473_v43 = vld [vmem:[%s8852_s16 + $0x5ec] ss:$28 sps:$4 sm:$0xff]  }
 0x615   :  { %v2748_v48 = vpop.f32.mrf.mxu1  ;;  %v6471_v45 = vld [vmem:[%s8852_s16 + $0x5e8] ss:$28 sps:$4 sm:$0xff]  }
 0x616   :  { %v2749_v49 = vadd.f32 %v2748_v48, %v2666_v44  ;;  %v2753_v50 = vmax.f32 %v2747_v46, 0.0  ;;  %v6468_v44 = vld [vmem:[%s8852_s16 + $0x268] ss:$28 sps:$4 sm:$0xff]   ;;  %v6476_v46 = vld [vmem:[%s8852_s16 + $0x234] ss:$28 sps:$4 sm:$0xff]  }
 0x617   :  { %v2750_v52 = vpop.f32.mrf.mxu1  ;;  %v6479_v48 = vld [vmem:[%s8852_s16 + $0x5b4] ss:$28 sps:$4 sm:$0xff]  }
 0x618   :  { %v2754_v53 = vmax.f32 %v2749_v49, 0.0  ;;  %v2755_v15 = vpack.c.bf16 %v2753_v50, %v2753_v50  ;;  %v6474_v49 = vld [vmem:[%s8852_s16 + $0x230] ss:$28 sps:$4 sm:$0xff]   ;;  %v6482_v52 = vld [vmem:[%s8852_s16 + $0x1fc] ss:$28 sps:$4 sm:$0xff]  }
 0x619   :  { %v2751_v54 = vpop.f32.mrf.mxu1  ;;  %v6477_v50 = vld [vmem:[%s8852_s16 + $0x5b0] ss:$28 sps:$4 sm:$0xff]  }
 0x61a   :  { %v2756_v55 = vpack.c.bf16 %v2754_v53, %v2754_v53  ;;  %v6485_v53 = vld [vmem:[%s8852_s16 + $0x57c] ss:$28 sps:$4 sm:$0xff]  }
 0x61b   :  { %v6480_v54 = vld [vmem:[%s8852_s16 + $0x1f8] ss:$28 sps:$4 sm:$0xff]  }
 0x61c   :  { %3195 = vmatprep.mubr.bf16.mxu0 %v2756_v55  ;;  %3236 = vmatprep.mubr.bf16.mxu1 %v2756_v55  ;;  %v6483_v55 = vld [vmem:[%s8852_s16 + $0x578] ss:$28 sps:$4 sm:$0xff]  }
 0x61d   :  { %3196 = vmatmul.mubr.bf16.vlgmr.msra.gmra.mxu0 %v2755_v15  ;;  %3237 = vmatmul.mubr.bf16.vlgmr.msra.gmra.mxu1 %v2755_v15  ;;  %v6486_v15 = vld [vmem:[%s8852_s16 + $0x1c0] ss:$28 sps:$4 sm:$0xff]  }
 0x61e   :  { %4699 = vmatpush1.bf16.msra.mxu0 %v6396_v56  ;;  %4740 = vmatpush1.bf16.msra.mxu1 %v6399_v47  ;;  %v6488_v56 = vld [vmem:[%s8852_s16 + $0x1c4] ss:$28 sps:$4 sm:$0xff]  }
 0x61f   :  { %4700 = vmatprep.subr.bf16.mxu0 %v6404_v57  ;;  %4741 = vmatprep.subr.bf16.mxu1 %v6407_v58  ;;  %v6491_v47 = vld [vmem:[%s8852_s16 + $0x544] ss:$28 sps:$4 sm:$0xff]   ;;  %v6494_v58 = vld [vmem:[%s8852_s16 + $0x194] ss:$28 sps:$4 sm:$0xff]  }
 0x620   :  { %v6489_v57 = vld [vmem:[%s8852_s16 + $0x540] ss:$28 sps:$4 sm:$0xff]  }
 0x622   :  { %4701 = vmatpush1.bf16.msra.mxu0 %v6402_v6  ;;  %4742 = vmatpush1.bf16.msra.mxu1 %v6405_v60  ;;  %v6497_v6 = vld [vmem:[%s8852_s16 + $0x514] ss:$28 sps:$4 sm:$0xff]   ;;  %v2821_v60 = vld [vmem:[%s8851_s15] sm:$0xf] }
 0x623   :  { %4702 = vmatprep.subr.bf16.mxu0 %v6410_v61  ;;  %4743 = vmatprep.subr.bf16.mxu1 %v6413_v35  ;;  %v2826_v61 = vrot.slane %v2821_v60, %v7771_v63  ;;  %v2834_v35 = vrot.slane %v2821_v60, %v7795_v33 }
 0x626   :  { %4703 = vmatpush1.bf16.msra.mxu0 %v6408_v62  ;;  %4744 = vmatpush1.bf16.msra.mxu1 %v6411_v1  ;;  %v2830_v62 = vrot.slane %v2821_v60, %v7774_v0  ;;  %v2838_v1 = vrot.slane %v2821_v60, %v7804_v37  ;;  %v6548_v60 = vld [vmem:[%s8852_s16 + $0x31c] ss:$28 sps:$4 sm:$0xff]  }
 0x627   :  { %4704 = vmatprep.subr.bf16.mxu0 %v6416_v2  ;;  %4745 = vmatprep.subr.bf16.mxu1 %v6419_v3 }
 0x62a   :  { %4705 = vmatpush1.bf16.msra.mxu0 %v6414_v4  ;;  %4746 = vmatpush1.bf16.msra.mxu1 %v6417_v5 }
 0x62b   :  { %4706 = vmatprep.subr.bf16.mxu0 %v6422_v8  ;;  %4747 = vmatprep.subr.bf16.mxu1 %v6425_v9 }
 0x62e   :  { %4707 = vmatpush1.bf16.msra.mxu0 %v6420_v10  ;;  %4748 = vmatpush1.bf16.msra.mxu1 %v6423_v11 }
 0x62f   :  { %4708 = vmatprep.subr.bf16.mxu0 %v6428_v12  ;;  %4749 = vmatprep.subr.bf16.mxu1 %v6431_v16 }
 0x632   :  { %4709 = vmatpush1.bf16.msra.mxu0 %v6426_v13  ;;  %4750 = vmatpush1.bf16.msra.mxu1 %v6429_v14 }
 0x633   :  { %4710 = vmatprep.subr.bf16.mxu0 %v6434_v17  ;;  %4751 = vmatprep.subr.bf16.mxu1 %v6437_v18 }
 0x636   :  { %4711 = vmatpush1.bf16.msra.mxu0 %v6432_v19  ;;  %4752 = vmatpush1.bf16.msra.mxu1 %v6435_v22 }
 0x637   :  { %4712 = vmatprep.subr.bf16.mxu0 %v6440_v25  ;;  %4753 = vmatprep.subr.bf16.mxu1 %v6443_v26 }
 0x63a   :  { %4713 = vmatpush1.bf16.msra.mxu0 %v6438_v27  ;;  %4754 = vmatpush1.bf16.msra.mxu1 %v6441_v20  ;;  %v6492_v27 = vld [vmem:[%s8852_s16 + $0x190] ss:$28 sps:$4 sm:$0xff]  }
 0x63b   :  { %4714 = vmatprep.subr.bf16.mxu0 %v6446_v23  ;;  %4755 = vmatprep.subr.bf16.mxu1 %v6449_v51  ;;  %v6495_v20 = vld [vmem:[%s8852_s16 + $0x510] ss:$28 sps:$4 sm:$0xff]  }
 0x63e   :  { %4715 = vmatpush2.bf16.msra.mxu0 %v6444_v21  ;;  %4756 = vmatpush2.bf16.msra.mxu1 %v6447_v7  ;;  %v6500_v21 = vld [vmem:[%s8852_s16 + $0x15c] ss:$28 sps:$4 sm:$0xff]  }
 0x63f   :  { %4716 = vmatprep.subr.bf16.mxu0 %v6452_v28  ;;  %4757 = vmatprep.subr.bf16.mxu1 %v6455_v24  ;;  %v6503_v7 = vld [vmem:[%s8852_s16 + $0x4dc] ss:$28 sps:$4 sm:$0xff]  }
 0x640   :  { %v6498_v28 = vld [vmem:[%s8852_s16 + $0x158] ss:$28 sps:$4 sm:$0xff]  }
 0x641   :  { %v6501_v24 = vld [vmem:[%s8852_s16 + $0x4d8] ss:$28 sps:$4 sm:$0xff]  }
 0x642   :  { %4717 = vmatpush2.bf16.msra.mxu0 %v6450_v29  ;;  %4758 = vmatpush2.bf16.msra.mxu1 %v6453_v30  ;;  %v6506_v29 = vld [vmem:[%s8852_s16 + $0x124] ss:$28 sps:$4 sm:$0xff]  }
 0x643   :  { %4718 = vmatprep.subr.bf16.mxu0 %v6458_v31  ;;  %4759 = vmatprep.subr.bf16.mxu1 %v6461_v32  ;;  %v6509_v30 = vld [vmem:[%s8852_s16 + $0x4a4] ss:$28 sps:$4 sm:$0xff]  }
 0x644   :  { %v6504_v31 = vld [vmem:[%s8852_s16 + $0x120] ss:$28 sps:$4 sm:$0xff]  }
 0x645   :  { %v6507_v32 = vld [vmem:[%s8852_s16 + $0x4a0] ss:$28 sps:$4 sm:$0xff]  }
 0x646   :  { %4719 = vmatpush2.bf16.msra.mxu0 %v6456_v34  ;;  %4760 = vmatpush2.bf16.msra.mxu1 %v6459_v36  ;;  %v6512_v34 = vld [vmem:[%s8852_s16 + $0xec] ss:$28 sps:$4 sm:$0xff]  }
 0x647   :  { %4720 = vmatprep.subr.bf16.mxu0 %v6464_v38  ;;  %4761 = vmatprep.subr.bf16.mxu1 %v6467_v39  ;;  %v6515_v36 = vld [vmem:[%s8852_s16 + $0x46c] ss:$28 sps:$4 sm:$0xff]  }
 0x648   :  { %v6510_v38 = vld [vmem:[%s8852_s16 + $0xe8] ss:$28 sps:$4 sm:$0xff]  }
 0x649   :  { %v6513_v39 = vld [vmem:[%s8852_s16 + $0x468] ss:$28 sps:$4 sm:$0xff]  }
 0x64a   :  { %4721 = vmatpush2.bf16.msra.mxu0 %v6462_v40  ;;  %4762 = vmatpush2.bf16.msra.mxu1 %v6465_v41  ;;  %v6518_v40 = vld [vmem:[%s8852_s16 + $0xb4] ss:$28 sps:$4 sm:$0xff]  }
 0x64b   :  { %4722 = vmatprep.subr.bf16.mxu0 %v6470_v42  ;;  %4763 = vmatprep.subr.bf16.mxu1 %v6473_v43  ;;  %v6521_v41 = vld [vmem:[%s8852_s16 + $0x434] ss:$28 sps:$4 sm:$0xff]  }
 0x64c   :  { %v6516_v42 = vld [vmem:[%s8852_s16 + $0xb0] ss:$28 sps:$4 sm:$0xff]  }
 0x64d   :  { %v6519_v43 = vld [vmem:[%s8852_s16 + $0x430] ss:$28 sps:$4 sm:$0xff]  }
 0x64e   :  { %4723 = vmatpush2.bf16.msra.mxu0 %v6468_v44  ;;  %4764 = vmatpush2.bf16.msra.mxu1 %v6471_v45  ;;  %v6524_v44 = vld [vmem:[%s8852_s16 + $0x7c] ss:$28 sps:$4 sm:$0xff]  }
 0x64f   :  { %4724 = vmatprep.subr.bf16.mxu0 %v6476_v46  ;;  %4765 = vmatprep.subr.bf16.mxu1 %v6479_v48  ;;  %v6527_v45 = vld [vmem:[%s8852_s16 + $0x3fc] ss:$28 sps:$4 sm:$0xff]  }
 0x650   :  { %v6522_v46 = vld [vmem:[%s8852_s16 + $0x78] ss:$28 sps:$4 sm:$0xff]  }
 0x651   :  { %v6525_v48 = vld [vmem:[%s8852_s16 + $0x3f8] ss:$28 sps:$4 sm:$0xff]  }
 0x652   :  { %4725 = vmatpush2.bf16.msra.mxu0 %v6474_v49  ;;  %4766 = vmatpush2.bf16.msra.mxu1 %v6477_v50  ;;  %v6530_v49 = vld [vmem:[%s8852_s16 + $0x44] ss:$28 sps:$4 sm:$0xff]  }
 0x653   :  { %4726 = vmatprep.subr.bf16.mxu0 %v6482_v52  ;;  %4767 = vmatprep.subr.bf16.mxu1 %v6485_v53  ;;  %v6533_v50 = vld [vmem:[%s8852_s16 + $0x3c4] ss:$28 sps:$4 sm:$0xff]  }
 0x654   :  { %v6528_v52 = vld [vmem:[%s8852_s16 + $0x40] ss:$28 sps:$4 sm:$0xff]  }
 0x655   :  { %v6531_v53 = vld [vmem:[%s8852_s16 + $0x3c0] ss:$28 sps:$4 sm:$0xff]  }
 0x656   :  { %4727 = vmatpush2.bf16.msra.mxu0 %v6480_v54  ;;  %4768 = vmatpush2.bf16.msra.mxu1 %v6483_v55  ;;  %v6536_v54 = vld [vmem:[%s8852_s16 + $0xc] ss:$28 sps:$4 sm:$0xff]  }
 0x657   :  { %4728 = vmatprep.subr.bf16.mxu0 %v6488_v56  ;;  %4769 = vmatprep.subr.bf16.mxu1 %v6491_v47  ;;  %v6539_v55 = vld [vmem:[%s8852_s16 + $0x38c] ss:$28 sps:$4 sm:$0xff]  }
 0x658   :  { %v6534_v56 = vld [vmem:[%s8852_s16 + $0x8] ss:$28 sps:$4 sm:$0xff]  }
 0x659   :  { %v6537_v47 = vld [vmem:[%s8852_s16 + $0x388] ss:$28 sps:$4 sm:$0xff]  }
 0x65a   :  { %4729 = vmatpush2.bf16.msra.mxu0 %v6486_v15  ;;  %4770 = vmatpush2.bf16.msra.mxu1 %v6489_v57  ;;  %v6542_v15 = vld [vmem:[%s8852_s16 + $0x354] ss:$28 sps:$4 sm:$0xff]  }
 0x65b   :  { %4780 = vmatprep.subr.bf16.mxu0 %v6494_v58  ;;  %4821 = vmatprep.subr.bf16.mxu1 %v6497_v6  ;;  %v6545_v57 = vld [vmem:[%s8852_s16 + $0x6d4] ss:$28 sps:$4 sm:$0xff]  }
 0x65c   :  { %v6540_v58 = vld [vmem:[%s8852_s16 + $0x350] ss:$28 sps:$4 sm:$0xff]  }
 0x65d   :  { %v6543_v6 = vld [vmem:[%s8852_s16 + $0x6d0] ss:$28 sps:$4 sm:$0xff]  }
 0x6dd   :  { %v3197_v2 = vpop.f32.mrf.mxu0  ;;  %v3238_v3 = vpop.f32.mrf.mxu1 }
 0x6de   :  { %v3198_v4 = vadd.f32 %v3197_v2, %v2826_v61  ;;  %v3239_v5 = vadd.f32 %v3238_v3, %v2834_v35  ;;  %v6551_v61 = vld [vmem:[%s8852_s16 + $0x69c] ss:$28 sps:$4 sm:$0xff]   ;;  %v6557_v2 = vld [vmem:[%s8852_s16 + $0x664] ss:$28 sps:$4 sm:$0xff]  }
 0x6df   :  { %v3199_v8 = vpop.f32.mrf.mxu0  ;;  %v3240_v9 = vpop.f32.mrf.mxu1  ;;  %v6546_v35 = vld [vmem:[%s8852_s16 + $0x318] ss:$28 sps:$4 sm:$0xff]   ;;  %v6552_v3 = vld [vmem:[%s8852_s16 + $0x2e0] ss:$28 sps:$4 sm:$0xff]  }
 0x6e0   :  { %v3200_v10 = vadd.f32 %v3199_v8, %v2830_v62  ;;  %v3241_v11 = vadd.f32 %v3240_v9, %v2838_v1  ;;  %v3245_v12 = vmax.f32 %v3198_v4, 0.0  ;;  %v3247_v16 = vmax.f32 %v3239_v5, 0.0  ;;  %v6549_v62 = vld [vmem:[%s8852_s16 + $0x698] ss:$28 sps:$4 sm:$0xff]   ;;  %v6554_v1 = vld [vmem:[%s8852_s16 + $0x2e4] ss:$28 sps:$4 sm:$0xff]  }
 0x6e1   :  { %v3201_v13 = vpop.f32.mrf.mxu0  ;;  %v3242_v14 = vpop.f32.mrf.mxu1  ;;  %v6555_v4 = vld [vmem:[%s8852_s16 + $0x660] ss:$28 sps:$4 sm:$0xff]   ;;  %v6560_v5 = vld [vmem:[%s8852_s16 + $0x2ac] ss:$28 sps:$4 sm:$0xff]  }
 0x6e2   :  { %v3246_v17 = vmax.f32 %v3200_v10, 0.0  ;;  %v3248_v18 = vmax.f32 %v3241_v11, 0.0  ;;  %v8314_v23 = vpack.c.bf16 %v3245_v12, %v3245_v12  ;;  %v8316_v51 = vpack.c.bf16 %v3247_v16, %v3247_v16  ;;  %v6563_v8 = vld [vmem:[%s8852_s16 + $0x62c] ss:$28 sps:$4 sm:$0xff]   ;;  %v6566_v11 = vld [vmem:[%s8852_s16 + $0x274] ss:$28 sps:$4 sm:$0xff]  }
 0x6e3   :  { %v3202_v19 = vpop.f32.mrf.mxu0  ;;  %v3243_v22 = vpop.f32.mrf.mxu1  ;;  %v6558_v9 = vld [vmem:[%s8852_s16 + $0x2a8] ss:$28 sps:$4 sm:$0xff]   ;;  %v6569_v12 = vld [vmem:[%s8852_s16 + $0x5f4] ss:$28 sps:$4 sm:$0xff]   ;;  %v6572_v14 = vld [vmem:[%s8852_s16 + $0x23c] ss:$28 sps:$4 sm:$0xff]  }
 0x6e4   :  { %v8304_v25 = vpack.c.bf16 %v3246_v17, %v3246_v17  ;;  %v8306_v26 = vpack.c.bf16 %v3248_v18, %v3248_v18  ;;  %v6561_v10 = vld [vmem:[%s8852_s16 + $0x628] ss:$28 sps:$4 sm:$0xff]   ;;  %v6564_v16 = vld [vmem:[%s8852_s16 + $0x270] ss:$28 sps:$4 sm:$0xff]   ;;  %v6575_v17 = vld [vmem:[%s8852_s16 + $0x5bc] ss:$28 sps:$4 sm:$0xff]  }
 0x6e5   :  { %v6567_v13 = vld [vmem:[%s8852_s16 + $0x5f0] ss:$28 sps:$4 sm:$0xff]   ;;  %v6570_v18 = vld [vmem:[%s8852_s16 + $0x238] ss:$28 sps:$4 sm:$0xff]   ;;  %v6578_v22 = vld [vmem:[%s8852_s16 + $0x204] ss:$28 sps:$4 sm:$0xff]  }
 0x6e6   :  { %4730 = vmatprep.mubr.bf16.mxu0 %v8304_v25  ;;  %4771 = vmatprep.mubr.bf16.mxu1 %v8306_v26  ;;  %v6573_v19 = vld [vmem:[%s8852_s16 + $0x5b8] ss:$28 sps:$4 sm:$0xff]  }
 0x6e7   :  { %4731 = vmatmul.mubr.bf16.vlgmr.msra.gmra.mxu0 %v8314_v23  ;;  %4772 = vmatmul.mubr.bf16.vlgmr.msra.gmra.mxu1 %v8316_v51 }
 0x6e8   :  { %4781 = vmatpush1.bf16.msra.mxu0 %v6492_v27  ;;  %4822 = vmatpush1.bf16.msra.mxu1 %v6495_v20  ;;  %v6581_v27 = vld [vmem:[%s8852_s16 + $0x584] ss:$28 sps:$4 sm:$0xff]  }
 0x6e9   :  { %4812 = vmatprep.mubr.bf16.mxu0 %v8304_v25  ;;  %4853 = vmatprep.mubr.bf16.mxu1 %v8306_v26  ;;  %v6576_v20 = vld [vmem:[%s8852_s16 + $0x200] ss:$28 sps:$4 sm:$0xff]  }
 0x6ea   :  { %4782 = vmatprep.subr.bf16.mxu0 %v6500_v21  ;;  %4823 = vmatprep.subr.bf16.mxu1 %v6503_v7  ;;  %v6579_v21 = vld [vmem:[%s8852_s16 + $0x580] ss:$28 sps:$4 sm:$0xff]   ;;  %v6584_v7 = vld [vmem:[%s8852_s16 + $0x1cc] ss:$28 sps:$4 sm:$0xff]  }
 0x6ec   :  { %4783 = vmatpush1.bf16.msra.mxu0 %v6498_v28  ;;  %4824 = vmatpush1.bf16.msra.mxu1 %v6501_v24  ;;  %v6587_v28 = vld [vmem:[%s8852_s16 + $0x54c] ss:$28 sps:$4 sm:$0xff]  }
 0x6ed   :  { %4784 = vmatprep.subr.bf16.mxu0 %v6506_v29  ;;  %4825 = vmatprep.subr.bf16.mxu1 %v6509_v30  ;;  %v6582_v24 = vld [vmem:[%s8852_s16 + $0x1c8] ss:$28 sps:$4 sm:$0xff]   ;;  %v6590_v30 = vld [vmem:[%s8852_s16 + $0x19c] ss:$28 sps:$4 sm:$0xff]  }
 0x6ee   :  { %v6585_v29 = vld [vmem:[%s8852_s16 + $0x548] ss:$28 sps:$4 sm:$0xff]  }
 0x6f0   :  { %4785 = vmatpush1.bf16.msra.mxu0 %v6504_v31  ;;  %4826 = vmatpush1.bf16.msra.mxu1 %v6507_v32  ;;  %v6593_v31 = vld [vmem:[%s8852_s16 + $0x51c] ss:$28 sps:$4 sm:$0xff]  }
 0x6f1   :  { %4786 = vmatprep.subr.bf16.mxu0 %v6512_v34  ;;  %4827 = vmatprep.subr.bf16.mxu1 %v6515_v36  ;;  %v6588_v32 = vld [vmem:[%s8852_s16 + $0x198] ss:$28 sps:$4 sm:$0xff]   ;;  %v6596_v36 = vld [vmem:[%s8852_s16 + $0x164] ss:$28 sps:$4 sm:$0xff]  }
 0x6f2   :  { %v6591_v34 = vld [vmem:[%s8852_s16 + $0x518] ss:$28 sps:$4 sm:$0xff]  }
 0x6f4   :  { %4787 = vmatpush1.bf16.msra.mxu0 %v6510_v38  ;;  %4828 = vmatpush1.bf16.msra.mxu1 %v6513_v39  ;;  %v6599_v38 = vld [vmem:[%s8852_s16 + $0x4e4] ss:$28 sps:$4 sm:$0xff]  }
 0x6f5   :  { %4788 = vmatprep.subr.bf16.mxu0 %v6518_v40  ;;  %4829 = vmatprep.subr.bf16.mxu1 %v6521_v41  ;;  %v6594_v39 = vld [vmem:[%s8852_s16 + $0x160] ss:$28 sps:$4 sm:$0xff]   ;;  %v6602_v41 = vld [vmem:[%s8852_s16 + $0x12c] ss:$28 sps:$4 sm:$0xff]  }
 0x6f6   :  { %v6597_v40 = vld [vmem:[%s8852_s16 + $0x4e0] ss:$28 sps:$4 sm:$0xff]  }
 0x6f8   :  { %4789 = vmatpush1.bf16.msra.mxu0 %v6516_v42  ;;  %4830 = vmatpush1.bf16.msra.mxu1 %v6519_v43  ;;  %v6605_v42 = vld [vmem:[%s8852_s16 + $0x4ac] ss:$28 sps:$4 sm:$0xff]  }
 0x6f9   :  { %4790 = vmatprep.subr.bf16.mxu0 %v6524_v44  ;;  %4831 = vmatprep.subr.bf16.mxu1 %v6527_v45  ;;  %v6600_v43 = vld [vmem:[%s8852_s16 + $0x128] ss:$28 sps:$4 sm:$0xff]   ;;  %v6608_v45 = vld [vmem:[%s8852_s16 + $0xf4] ss:$28 sps:$4 sm:$0xff]  }
 0x6fa   :  { %v6603_v44 = vld [vmem:[%s8852_s16 + $0x4a8] ss:$28 sps:$4 sm:$0xff]  }
 0x6fc   :  { %4791 = vmatpush1.bf16.msra.mxu0 %v6522_v46  ;;  %4832 = vmatpush1.bf16.msra.mxu1 %v6525_v48  ;;  %v6611_v46 = vld [vmem:[%s8852_s16 + $0x474] ss:$28 sps:$4 sm:$0xff]  }
 0x6fd   :  { %4792 = vmatprep.subr.bf16.mxu0 %v6530_v49  ;;  %4833 = vmatprep.subr.bf16.mxu1 %v6533_v50  ;;  %v6606_v48 = vld [vmem:[%s8852_s16 + $0xf0] ss:$28 sps:$4 sm:$0xff]   ;;  %v6614_v50 = vld [vmem:[%s8852_s16 + $0xbc] ss:$28 sps:$4 sm:$0xff]  }
 0x6fe   :  { %v6609_v49 = vld [vmem:[%s8852_s16 + $0x470] ss:$28 sps:$4 sm:$0xff]  }
 0x700   :  { %4793 = vmatpush1.bf16.msra.mxu0 %v6528_v52  ;;  %4834 = vmatpush1.bf16.msra.mxu1 %v6531_v53  ;;  %v6617_v52 = vld [vmem:[%s8852_s16 + $0x43c] ss:$28 sps:$4 sm:$0xff]  }
 0x701   :  { %4794 = vmatprep.subr.bf16.mxu0 %v6536_v54  ;;  %4835 = vmatprep.subr.bf16.mxu1 %v6539_v55  ;;  %v6612_v53 = vld [vmem:[%s8852_s16 + $0xb8] ss:$28 sps:$4 sm:$0xff]   ;;  %v6620_v55 = vld [vmem:[%s8852_s16 + $0x84] ss:$28 sps:$4 sm:$0xff]  }
 0x702   :  { %v6615_v54 = vld [vmem:[%s8852_s16 + $0x438] ss:$28 sps:$4 sm:$0xff]  }
 0x704   :  { %4795 = vmatpush1.bf16.msra.mxu0 %v6534_v56  ;;  %4836 = vmatpush1.bf16.msra.mxu1 %v6537_v47  ;;  %v6623_v56 = vld [vmem:[%s8852_s16 + $0x404] ss:$28 sps:$4 sm:$0xff]  }
 0x705   :  { %4796 = vmatprep.subr.bf16.mxu0 %v6542_v15  ;;  %4837 = vmatprep.subr.bf16.mxu1 %v6545_v57  ;;  %v6618_v47 = vld [vmem:[%s8852_s16 + $0x80] ss:$28 sps:$4 sm:$0xff]   ;;  %v6626_v57 = vld [vmem:[%s8852_s16 + $0x4c] ss:$28 sps:$4 sm:$0xff]  }
 0x706   :  { %v6621_v15 = vld [vmem:[%s8852_s16 + $0x400] ss:$28 sps:$4 sm:$0xff]  }
 0x708   :  { %4797 = vmatpush2.bf16.msra.mxu0 %v6540_v58  ;;  %4838 = vmatpush2.bf16.msra.mxu1 %v6543_v6  ;;  %v6629_v58 = vld [vmem:[%s8852_s16 + $0x3cc] ss:$28 sps:$4 sm:$0xff]  }
 0x709   :  { %4798 = vmatprep.subr.bf16.mxu0 %v6548_v60  ;;  %4839 = vmatprep.subr.bf16.mxu1 %v6551_v61  ;;  %v6624_v6 = vld [vmem:[%s8852_s16 + $0x48] ss:$28 sps:$4 sm:$0xff]   ;;  %v6632_v61 = vld [vmem:[%s8852_s16 + $0x14] ss:$28 sps:$4 sm:$0xff]  }
 0x70a   :  { %v6627_v60 = vld [vmem:[%s8852_s16 + $0x3c8] ss:$28 sps:$4 sm:$0xff]  }
 0x70c   :  { %4799 = vmatpush2.bf16.msra.mxu0 %v6546_v35  ;;  %4840 = vmatpush2.bf16.msra.mxu1 %v6549_v62  ;;  %v6635_v35 = vld [vmem:[%s8852_s16 + $0x394] ss:$28 sps:$4 sm:$0xff]  }
 0x70d   :  { %4800 = vmatprep.subr.bf16.mxu0 %v6554_v1  ;;  %4841 = vmatprep.subr.bf16.mxu1 %v6557_v2  ;;  %v6630_v62 = vld [vmem:[%s8852_s16 + $0x10] ss:$28 sps:$4 sm:$0xff]   ;;  %v6638_v2 = vld [vmem:[%s8852_s16 + $0x35c] ss:$28 sps:$4 sm:$0xff]  }
 0x70e   :  { %v6633_v1 = vld [vmem:[%s8852_s16 + $0x390] ss:$28 sps:$4 sm:$0xff]  }
 0x710   :  { %4801 = vmatpush2.bf16.msra.mxu0 %v6552_v3  ;;  %4842 = vmatpush2.bf16.msra.mxu1 %v6555_v4  ;;  %v6641_v3 = vld [vmem:[%s8852_s16 + $0x6dc] ss:$28 sps:$4 sm:$0xff]  }
 0x711   :  { %4802 = vmatprep.subr.bf16.mxu0 %v6560_v5  ;;  %4843 = vmatprep.subr.bf16.mxu1 %v6563_v8  ;;  %v6636_v4 = vld [vmem:[%s8852_s16 + $0x358] ss:$28 sps:$4 sm:$0xff]   ;;  %v6644_v8 = vld [vmem:[%s8852_s16 + $0x324] ss:$28 sps:$4 sm:$0xff]  }
 0x712   :  { %v6639_v5 = vld [vmem:[%s8852_s16 + $0x6d8] ss:$28 sps:$4 sm:$0xff]  }
 0x714   :  { %4803 = vmatpush2.bf16.msra.mxu0 %v6558_v9  ;;  %4844 = vmatpush2.bf16.msra.mxu1 %v6561_v10  ;;  %v6647_v9 = vld [vmem:[%s8852_s16 + $0x6a4] ss:$28 sps:$4 sm:$0xff]  }
 0x715   :  { %4804 = vmatprep.subr.bf16.mxu0 %v6566_v11  ;;  %4845 = vmatprep.subr.bf16.mxu1 %v6569_v12  ;;  %v6642_v10 = vld [vmem:[%s8852_s16 + $0x320] ss:$28 sps:$4 sm:$0xff]   ;;  %v6650_v12 = vld [vmem:[%s8852_s16 + $0x2ec] ss:$28 sps:$4 sm:$0xff]  }
 0x716   :  { %v6645_v11 = vld [vmem:[%s8852_s16 + $0x6a0] ss:$28 sps:$4 sm:$0xff]  }
 0x718   :  { %4805 = vmatpush2.bf16.msra.mxu0 %v6564_v16  ;;  %4846 = vmatpush2.bf16.msra.mxu1 %v6567_v13  ;;  %v6653_v16 = vld [vmem:[%s8852_s16 + $0x66c] ss:$28 sps:$4 sm:$0xff]  }
 0x719   :  { %4806 = vmatprep.subr.bf16.mxu0 %v6572_v14  ;;  %4847 = vmatprep.subr.bf16.mxu1 %v6575_v17  ;;  %v6648_v13 = vld [vmem:[%s8852_s16 + $0x2e8] ss:$28 sps:$4 sm:$0xff]   ;;  %v6656_v17 = vld [vmem:[%s8852_s16 + $0x2b4] ss:$28 sps:$4 sm:$0xff]  }
 0x71a   :  { %v6651_v14 = vld [vmem:[%s8852_s16 + $0x668] ss:$28 sps:$4 sm:$0xff]  }
 0x71c   :  { %4807 = vmatpush2.bf16.msra.mxu0 %v6570_v18  ;;  %4848 = vmatpush2.bf16.msra.mxu1 %v6573_v19  ;;  %v6659_v18 = vld [vmem:[%s8852_s16 + $0x634] ss:$28 sps:$4 sm:$0xff]  }
 0x71d   :  { %4808 = vmatprep.subr.bf16.mxu0 %v6578_v22  ;;  %4849 = vmatprep.subr.bf16.mxu1 %v6581_v27  ;;  %v6654_v19 = vld [vmem:[%s8852_s16 + $0x2b0] ss:$28 sps:$4 sm:$0xff]   ;;  %v6662_v27 = vld [vmem:[%s8852_s16 + $0x27c] ss:$28 sps:$4 sm:$0xff]  }
 0x71e   :  { %v6657_v22 = vld [vmem:[%s8852_s16 + $0x630] ss:$28 sps:$4 sm:$0xff]  }
 0x720   :  { %4809 = vmatpush2.bf16.msra.mxu0 %v6576_v20  ;;  %4850 = vmatpush2.bf16.msra.mxu1 %v6579_v21  ;;  %v6665_v20 = vld [vmem:[%s8852_s16 + $0x5fc] ss:$28 sps:$4 sm:$0xff]  }
 0x721   :  { %4810 = vmatprep.subr.bf16.mxu0 %v6584_v7  ;;  %4851 = vmatprep.subr.bf16.mxu1 %v6587_v28  ;;  %v6660_v21 = vld [vmem:[%s8852_s16 + $0x278] ss:$28 sps:$4 sm:$0xff]   ;;  %v6668_v28 = vld [vmem:[%s8852_s16 + $0x244] ss:$28 sps:$4 sm:$0xff]  }
 0x722   :  { %v6663_v7 = vld [vmem:[%s8852_s16 + $0x5f8] ss:$28 sps:$4 sm:$0xff]  }
 0x724   :  { %4811 = vmatpush2.bf16.msra.mxu0 %v6582_v24  ;;  %4852 = vmatpush2.bf16.msra.mxu1 %v6585_v29  ;;  %v6671_v24 = vld [vmem:[%s8852_s16 + $0x5c4] ss:$28 sps:$4 sm:$0xff]  }
 0x725   :  { %4862 = vmatprep.subr.bf16.mxu0 %v6590_v30  ;;  %4903 = vmatprep.subr.bf16.mxu1 %v6593_v31  ;;  %v6666_v29 = vld [vmem:[%s8852_s16 + $0x240] ss:$28 sps:$4 sm:$0xff]   ;;  %v6674_v31 = vld [vmem:[%s8852_s16 + $0x20c] ss:$28 sps:$4 sm:$0xff]  }
 0x726   :  { %v6669_v30 = vld [vmem:[%s8852_s16 + $0x5c0] ss:$28 sps:$4 sm:$0xff]  }
 0x727   :  { %4813 = vmatmul.mubr.bf16.vlgmr.msra.gmra.mxu0 %v8314_v23  ;;  %4854 = vmatmul.mubr.bf16.vlgmr.msra.gmra.mxu1 %v8316_v51 }
 0x728   :  { %4863 = vmatpush1.bf16.msra.mxu0 %v6588_v32  ;;  %4894 = vmatprep.mubr.bf16.mxu0 %v8304_v25  ;;  %v6677_v32 = vld [vmem:[%s8852_s16 + $0x58c] ss:$28 sps:$4 sm:$0xff]  }
 0x729   :  { %4904 = vmatpush1.bf16.msra.mxu1 %v6591_v34  ;;  %4935 = vmatprep.mubr.bf16.mxu1 %v8306_v26  ;;  %v6672_v34 = vld [vmem:[%s8852_s16 + $0x208] ss:$28 sps:$4 sm:$0xff]  }
 0x72a   :  { %4864 = vmatprep.subr.bf16.mxu0 %v6596_v36  ;;  %4905 = vmatprep.subr.bf16.mxu1 %v6599_v38  ;;  %v6675_v36 = vld [vmem:[%s8852_s16 + $0x588] ss:$28 sps:$4 sm:$0xff]   ;;  %v6680_v38 = vld [vmem:[%s8852_s16 + $0x1d4] ss:$28 sps:$4 sm:$0xff]  }
 0x72c   :  { %4865 = vmatpush1.bf16.msra.mxu0 %v6594_v39  ;;  %v6683_v39 = vld [vmem:[%s8852_s16 + $0x554] ss:$28 sps:$4 sm:$0xff]  }
 0x72d   :  { %4906 = vmatpush1.bf16.msra.mxu1 %v6597_v40  ;;  %4866 = vmatprep.subr.bf16.mxu0 %v6602_v41  ;;  %v6678_v40 = vld [vmem:[%s8852_s16 + $0x1d0] ss:$28 sps:$4 sm:$0xff]  }
 0x72e   :  { %4907 = vmatprep.subr.bf16.mxu1 %v6605_v42  ;;  %v6681_v41 = vld [vmem:[%s8852_s16 + $0x550] ss:$28 sps:$4 sm:$0xff]   ;;  %v6684_v42 = vld [vmem:[%s8852_s16 + $0x360] ss:$28 sps:$4 sm:$0xff]  }
 0x730   :  { %4867 = vmatpush1.bf16.msra.mxu0 %v6600_v43  ;;  %v6685_v43 = vld [vmem:[%s8852_s16 + $0x6e0] ss:$28 sps:$4 sm:$0xff]  }
 0x731   :  { %4908 = vmatpush1.bf16.msra.mxu1 %v6603_v44  ;;  %4868 = vmatprep.subr.bf16.mxu0 %v6608_v45  ;;  %v6686_v44 = vld [vmem:[%s8852_s16 + $0x1a0] ss:$28 sps:$4 sm:$0xff]  }
 0x732   :  { %4909 = vmatprep.subr.bf16.mxu1 %v6611_v46  ;;  %v6687_v45 = vld [vmem:[%s8852_s16 + $0x520] ss:$28 sps:$4 sm:$0xff]   ;;  %v6688_v46 = vld [vmem:[%s8852_s16 + $0x328] ss:$28 sps:$4 sm:$0xff]  }
 0x734   :  { %4869 = vmatpush1.bf16.msra.mxu0 %v6606_v48  ;;  %v6689_v48 = vld [vmem:[%s8852_s16 + $0x6a8] ss:$28 sps:$4 sm:$0xff]  }
 0x735   :  { %4910 = vmatpush1.bf16.msra.mxu1 %v6609_v49  ;;  %4870 = vmatprep.subr.bf16.mxu0 %v6614_v50  ;;  %v6690_v49 = vld [vmem:[%s8852_s16 + $0x168] ss:$28 sps:$4 sm:$0xff]  }
 0x736   :  { %4911 = vmatprep.subr.bf16.mxu1 %v6617_v52  ;;  %v6691_v50 = vld [vmem:[%s8852_s16 + $0x4e8] ss:$28 sps:$4 sm:$0xff]   ;;  %v6692_v52 = vld [vmem:[%s8852_s16 + $0x2f0] ss:$28 sps:$4 sm:$0xff]  }
 0x738   :  { %4871 = vmatpush1.bf16.msra.mxu0 %v6612_v53  ;;  %v6693_v53 = vld [vmem:[%s8852_s16 + $0x670] ss:$28 sps:$4 sm:$0xff]  }
 0x739   :  { %4912 = vmatpush1.bf16.msra.mxu1 %v6615_v54  ;;  %4872 = vmatprep.subr.bf16.mxu0 %v6620_v55  ;;  %v6695_v54 = vld [vmem:[%s8852_s16 + $0x4b0] ss:$28 sps:$4 sm:$0xff]   ;;  %v6697_v55 = vld [vmem:[%s8852_s16 + $0x638] ss:$28 sps:$4 sm:$0xff]  }
 0x73a   :  { %4913 = vmatprep.subr.bf16.mxu1 %v6623_v56  ;;  %v6698_v56 = vld [vmem:[%s8852_s16 + $0xf8] ss:$28 sps:$4 sm:$0xff]  }
 0x73c   :  { %4873 = vmatpush1.bf16.msra.mxu0 %v6618_v47  ;;  %v6699_v47 = vld [vmem:[%s8852_s16 + $0x478] ss:$28 sps:$4 sm:$0xff]  }
 0x73d   :  { %4914 = vmatpush1.bf16.msra.mxu1 %v6621_v15  ;;  %4874 = vmatprep.subr.bf16.mxu0 %v6626_v57  ;;  %v6700_v15 = vld [vmem:[%s8852_s16 + $0x280] ss:$28 sps:$4 sm:$0xff]  }
 0x73e   :  { %4915 = vmatprep.subr.bf16.mxu1 %v6629_v58  ;;  %v6701_v57 = vld [vmem:[%s8852_s16 + $0x600] ss:$28 sps:$4 sm:$0xff]  }
 0x73f   :  { %v6702_v58 = vld [vmem:[%s8852_s16 + $0xc0] ss:$28 sps:$4 sm:$0xff]  }
 0x740   :  { %4875 = vmatpush1.bf16.msra.mxu0 %v6624_v6  ;;  %v6703_v6 = vld [vmem:[%s8852_s16 + $0x440] ss:$28 sps:$4 sm:$0xff]  }
 0x741   :  { %4916 = vmatpush1.bf16.msra.mxu1 %v6627_v60  ;;  %4876 = vmatprep.subr.bf16.mxu0 %v6632_v61  ;;  %v6704_v60 = vld [vmem:[%s8852_s16 + $0x248] ss:$28 sps:$4 sm:$0xff]  }
 0x742   :  { %4917 = vmatprep.subr.bf16.mxu1 %v6635_v35  ;;  %v6705_v61 = vld [vmem:[%s8852_s16 + $0x5c8] ss:$28 sps:$4 sm:$0xff]  }
 0x743   :  { %v6706_v35 = vld [vmem:[%s8852_s16 + $0x88] ss:$28 sps:$4 sm:$0xff]  }
 0x744   :  { %4877 = vmatpush1.bf16.msra.mxu0 %v6630_v62  ;;  %v6707_v62 = vld [vmem:[%s8852_s16 + $0x408] ss:$28 sps:$4 sm:$0xff]  }
 0x745   :  { %4918 = vmatpush1.bf16.msra.mxu1 %v6633_v1  ;;  %4878 = vmatprep.subr.bf16.mxu0 %v6638_v2  ;;  %v6708_v1 = vld [vmem:[%s8852_s16 + $0x210] ss:$28 sps:$4 sm:$0xff]  }
 0x746   :  { %4919 = vmatprep.subr.bf16.mxu1 %v6641_v3  ;;  %v6709_v2 = vld [vmem:[%s8852_s16 + $0x590] ss:$28 sps:$4 sm:$0xff]  }
 0x747   :  { %v6710_v3 = vld [vmem:[%s8852_s16 + $0x50] ss:$28 sps:$4 sm:$0xff]  }
 0x748   :  { %4879 = vmatpush2.bf16.msra.mxu0 %v6636_v4  ;;  %v6711_v4 = vld [vmem:[%s8852_s16 + $0x3d0] ss:$28 sps:$4 sm:$0xff]  }
 0x749   :  { %4920 = vmatpush2.bf16.msra.mxu1 %v6639_v5  ;;  %4880 = vmatprep.subr.bf16.mxu0 %v6644_v8  ;;  %v6712_v5 = vld [vmem:[%s8852_s16 + $0x1d8] ss:$28 sps:$4 sm:$0xff]  }
 0x74a   :  { %4921 = vmatprep.subr.bf16.mxu1 %v6647_v9  ;;  %v6713_v8 = vld [vmem:[%s8852_s16 + $0x558] ss:$28 sps:$4 sm:$0xff]  }
 0x74b   :  { %v6714_v9 = vld [vmem:[%s8852_s16 + $0x18] ss:$28 sps:$4 sm:$0xff]  }
 0x74c   :  { %4881 = vmatpush2.bf16.msra.mxu0 %v6642_v10  ;;  %v6715_v10 = vld [vmem:[%s8852_s16 + $0x398] ss:$28 sps:$4 sm:$0xff]  }
 0x74d   :  { %4922 = vmatpush2.bf16.msra.mxu1 %v6645_v11  ;;  %4882 = vmatprep.subr.bf16.mxu0 %v6650_v12  ;;  %v8805_v11 = vld [vmem:[%s8853_s17] sm:$0xff] }
 0x74e   :  { %4923 = vmatprep.subr.bf16.mxu1 %v6653_v16  ;;  %v3514_v12 = vrot.slane %v8805_v11, %v7771_v63  ;;  %v3518_v16 = vrot.slane %v8805_v11, %v7774_v0 }
 0x750   :  { %4883 = vmatpush2.bf16.msra.mxu0 %v6648_v13 }
 0x751   :  { %4924 = vmatpush2.bf16.msra.mxu1 %v6651_v14  ;;  %4884 = vmatprep.subr.bf16.mxu0 %v6656_v17 }
 0x752   :  { %4925 = vmatprep.subr.bf16.mxu1 %v6659_v18 }
 0x754   :  { %4885 = vmatpush2.bf16.msra.mxu0 %v6654_v19 }
 0x755   :  { %4926 = vmatpush2.bf16.msra.mxu1 %v6657_v22  ;;  %4886 = vmatprep.subr.bf16.mxu0 %v6662_v27 }
 0x756   :  { %4927 = vmatprep.subr.bf16.mxu1 %v6665_v20 }
 0x758   :  { %4887 = vmatpush2.bf16.msra.mxu0 %v6660_v21 }
 0x759   :  { %4928 = vmatpush2.bf16.msra.mxu1 %v6663_v7  ;;  %4888 = vmatprep.subr.bf16.mxu0 %v6668_v28 }
 0x75a   :  { %4929 = vmatprep.subr.bf16.mxu1 %v6671_v24 }
 0x75c   :  { %4889 = vmatpush2.bf16.msra.mxu0 %v6666_v29 }
 0x75d   :  { %4930 = vmatpush2.bf16.msra.mxu1 %v6669_v30  ;;  %4890 = vmatprep.subr.bf16.mxu0 %v6674_v31 }
 0x75e   :  { %4931 = vmatprep.subr.bf16.mxu1 %v6677_v32 }
 0x760   :  { %4891 = vmatpush2.bf16.msra.mxu0 %v6672_v34 }
 0x761   :  { %4932 = vmatpush2.bf16.msra.mxu1 %v6675_v36  ;;  %4892 = vmatprep.subr.bf16.mxu0 %v6680_v38  ;;  %v3522_v36 = vrot.slane %v8805_v11, %v7795_v33  ;;  %v3526_v38 = vrot.slane %v8805_v11, %v7804_v37 }
 0x762   :  { %4933 = vmatprep.subr.bf16.mxu1 %v6683_v39 }
 0x764   :  { %4893 = vmatpush2.bf16.msra.mxu0 %v6678_v40 }
 0x765   :  { %4934 = vmatpush2.bf16.msra.mxu1 %v6681_v41  ;;  %5758 = vmatprep.subr.bf16.mxu0 %v6684_v42 }
 0x766   :  { %5780 = vmatprep.subr.bf16.mxu1 %v6685_v43 }
 0x767   :  { %4895 = vmatmul.mubr.bf16.vlgmr.msra.gmra.mxu0 %v8314_v23 }
 0x768   :  { %4936 = vmatmul.mubr.bf16.vlgmr.msra.gmra.mxu1 %v8316_v51  ;;  %5759 = vmatpush3.bf16.msra.mxu0 %v6686_v44 }
 0x769   :  { %4976 = vmatprep.mubr.bf16.mxu0 %v8304_v25  ;;  %5781 = vmatpush3.bf16.msra.mxu1 %v6687_v45  ;;  %v6694_v25 = vld [vmem:[%s8852_s16 + $0x130] ss:$28 sps:$4 sm:$0xff]  }
 0x76a   :  { %5016 = vmatprep.mubr.bf16.mxu1 %v8306_v26  ;;  %5760 = vmatprep.subr.bf16.mxu0 %v6688_v46  ;;  %v6696_v26 = vld [vmem:[%s8852_s16 + $0x2b8] ss:$28 sps:$4 sm:$0xff]  }
 0x76b   :  { %5782 = vmatprep.subr.bf16.mxu1 %v6689_v48 }
 0x76c   :  { %5761 = vmatpush3.bf16.msra.mxu0 %v6690_v49 }
 0x76d   :  { %5783 = vmatpush3.bf16.msra.mxu1 %v6691_v50  ;;  %5762 = vmatprep.subr.bf16.mxu0 %v6692_v52 }
 0x76e   :  { %5784 = vmatprep.subr.bf16.mxu1 %v6693_v53 }
 0x770   :  { %5763 = vmatpush3.bf16.msra.mxu0 %v6694_v25 }
 0x771   :  { %5785 = vmatpush3.bf16.msra.mxu1 %v6695_v54  ;;  %5764 = vmatprep.subr.bf16.mxu0 %v6696_v26 }
 0x772   :  { %5786 = vmatprep.subr.bf16.mxu1 %v6697_v55 }
 0x774   :  { %5765 = vmatpush3.bf16.msra.mxu0 %v6698_v56 }
 0x775   :  { %5787 = vmatpush3.bf16.msra.mxu1 %v6699_v47  ;;  %5766 = vmatprep.subr.bf16.mxu0 %v6700_v15  ;;  %v3529_v15 = vsub.s32 4, %v7762_v59 }
 0x776   :  { %5788 = vmatprep.subr.bf16.mxu1 %v6701_v57  ;;  %v3533_v57 = vsub.s32 5, %v7762_v59 }
 0x778   :  { %5767 = vmatpush3.bf16.msra.mxu0 %v6702_v58  ;;  %v3530_v58 = vrot.slane %v8805_v11, %v3529_v15 }
 0x779   :  { %5789 = vmatpush3.bf16.msra.mxu1 %v6703_v6  ;;  %5768 = vmatprep.subr.bf16.mxu0 %v6704_v60  ;;  %v3534_v6 = vrot.slane %v8805_v11, %v3533_v57 }
 0x77a   :  { %5790 = vmatprep.subr.bf16.mxu1 %v6705_v61 }
 0x77c   :  { %5769 = vmatpush3.bf16.msra.mxu0 %v6706_v35 }
 0x77d   :  { %5791 = vmatpush3.bf16.msra.mxu1 %v6707_v62  ;;  %5770 = vmatprep.subr.bf16.mxu0 %v6708_v1 }
 0x77e   :  { %5792 = vmatprep.subr.bf16.mxu1 %v6709_v2 }
 0x780   :  { %5771 = vmatpush3.bf16.msra.mxu0 %v6710_v3 }
 0x781   :  { %5793 = vmatpush3.bf16.msra.mxu1 %v6711_v4  ;;  %5772 = vmatprep.subr.bf16.mxu0 %v6712_v5 }
 0x782   :  { %5794 = vmatprep.subr.bf16.mxu1 %v6713_v8 }
 0x784   :  { %5773 = vmatpush3.bf16.msra.mxu0 %v6714_v9 }
 0x785   :  { %5795 = vmatpush3.bf16.msra.mxu1 %v6715_v10 }
 0x787   :  { %4977 = vmatmul.mubr.bf16.vlgmr.msra.gmra.mxu0 %v8314_v23 }
 0x788   :  { %5017 = vmatmul.mubr.bf16.vlgmr.msra.gmra.mxu1 %v8316_v51 }
 0x7a7   :  { %v4732_v13 = vpop.f32.mrf.mxu0  ;;  %v4773_v14 = vpop.f32.mrf.mxu1 }
 0x7a8   :  { %v4733_v17 = vadd.f32 %v4732_v13, %v3514_v12 }
 0x7a9   :  { %v4734_v18 = vpop.f32.mrf.mxu0  ;;  %v4775_v19 = vpop.f32.mrf.mxu1 }
 0x7aa   :  { %v4774_v22 = vadd.f32 %v4773_v14, %v4733_v17  ;;  %v4735_v23 = vadd.f32 %v4734_v18, %v3518_v16 }
 0x7ab   :  { %v4736_v27 = vpop.f32.mrf.mxu0  ;;  %v4777_v51 = vpop.f32.mrf.mxu1 }
 0x7ac   :  { %v5024_v20 = vmul.f32 0.5, %v4774_v22  ;;  %v4776_v21 = vadd.f32 %v4775_v19, %v4735_v23  ;;  %v3537_v27 = vsub.s32 6, %v7762_v59 }
 0x7ad   :  { %v4737_v7 = vpop.f32.mrf.mxu0  ;;  %v4778_v28 = vpop.f32.mrf.mxu1 }
 0x7ae   :  { %6718 = vtanh.f32 %v5024_v20  ;;  %v5025_v24 = vmul.f32 0.5, %v4776_v21  ;;  %v3538_v21 = vrot.slane %v8805_v11, %v3537_v27 }
 0x7b0   :  { %6720 = vtanh.f32 %v5025_v24 }
 0x7bb   :  { %v6719_v63 = vpop.eup %6718 }
 0x7bc   :  { %v5038_v29 = vmul.f32 0.5, %v6719_v63 }
 0x7bd   :  { %v6721_v30 = vpop.eup %6720 }
 0x7be   :  { %v5039_v0 = vmul.f32 0.5, %v6721_v30  ;;  %v5045_v31 = vadd.f32 0.5, %v5038_v29 }
 0x7c0   :  { %v5046_v32 = vadd.f32 0.5, %v5039_v0 }
 0x7c2   :  { %v5725_v34 = vpack.c.bf16 %v5046_v32, %v5045_v31 }
 0x7c4   :  { %5081 = vst [vmem:[%s8854_s18] sm:$0xff] %v5725_v34 }
 0x7e7   :  { %v4814_v39 = vpop.f32.mrf.mxu0  ;;  %v4855_v40 = vpop.f32.mrf.mxu1 }
 0x7e8   :  { %v4815_v41 = vadd.f32 %v4814_v39, %v3522_v36 }
 0x7e9   :  { %v4816_v42 = vpop.f32.mrf.mxu0  ;;  %v4857_v43 = vpop.f32.mrf.mxu1 }
 0x7ea   :  { %v4856_v44 = vadd.f32 %v4855_v40, %v4815_v41  ;;  %v4817_v45 = vadd.f32 %v4816_v42, %v3526_v38 }
 0x7eb   :  { %v4818_v46 = vpop.f32.mrf.mxu0  ;;  %v4859_v48 = vpop.f32.mrf.mxu1 }
 0x7ec   :  { %v5026_v49 = vmul.f32 0.5, %v4856_v44  ;;  %v4858_v50 = vadd.f32 %v4857_v43, %v4817_v45 }
 0x7ed   :  { %v4819_v33 = vpop.f32.mrf.mxu0  ;;  %v4860_v52 = vpop.f32.mrf.mxu1 }
 0x7ee   :  { %6722 = vtanh.f32 %v5026_v49  ;;  %v5027_v37 = vmul.f32 0.5, %v4858_v50 }
 0x7f0   :  { %6724 = vtanh.f32 %v5027_v37 }
 0x7fb   :  { %v6723_v53 = vpop.eup %6722 }
 0x7fc   :  { %v5040_v25 = vmul.f32 0.5, %v6723_v53 }
 0x7fd   :  { %v6725_v54 = vpop.eup %6724 }
 0x7fe   :  { %v5041_v26 = vmul.f32 0.5, %v6725_v54  ;;  %v5047_v55 = vadd.f32 0.5, %v5040_v25 }
 0x800   :  { %v5048_v56 = vadd.f32 0.5, %v5041_v26 }
 0x802   :  { %v5726_v47 = vpack.c.bf16 %v5048_v56, %v5047_v55 }
 0x804   :  { %5082 = vst [vmem:[%s8854_s18 + $0x8] sm:$0xff] %v5726_v47 }
 0x827   :  { %v4896_v60 = vpop.f32.mrf.mxu0 }
 0x828   :  { %v4897_v61 = vadd.f32 %v4896_v60, %v3530_v58  ;;  %v4937_v35 = vpop.f32.mrf.mxu1 }
 0x829   :  { %v4898_v62 = vpop.f32.mrf.mxu0 }
 0x82a   :  { %v4938_v1 = vadd.f32 %v4937_v35, %v4897_v61  ;;  %v4899_v2 = vadd.f32 %v4898_v62, %v3534_v6  ;;  %v4939_v3 = vpop.f32.mrf.mxu1 }
 0x82b   :  { %v4900_v4 = vpop.f32.mrf.mxu0 }
 0x82c   :  { %v5028_v5 = vmul.f32 0.5, %v4938_v1  ;;  %v4940_v8 = vadd.f32 %v4939_v3, %v4899_v2  ;;  %v4941_v9 = vpop.f32.mrf.mxu1 }
 0x82d   :  { %v4901_v10 = vpop.f32.mrf.mxu0 }
 0x82e   :  { %6726 = vtanh.f32 %v5028_v5  ;;  %v5029_v12 = vmul.f32 0.5, %v4940_v8  ;;  %v4942_v16 = vpop.f32.mrf.mxu1 }
 0x830   :  { %6728 = vtanh.f32 %v5029_v12 }
 0x83b   :  { %v6727_v13 = vpop.eup %6726 }
 0x83c   :  { %v5042_v14 = vmul.f32 0.5, %v6727_v13 }
 0x83d   :  { %v6729_v17 = vpop.eup %6728 }
 0x83e   :  { %v5043_v18 = vmul.f32 0.5, %v6729_v17  ;;  %v5049_v19 = vadd.f32 0.5, %v5042_v14 }
 0x840   :  { %v5050_v22 = vadd.f32 0.5, %v5043_v18 }
 0x842   :  { %v5727_v23 = vpack.c.bf16 %v5050_v22, %v5049_v19 }
 0x844   :  { %5083 = vst [vmem:[%s8854_s18 + $0x10] sm:$0xff] %v5727_v23 }
 0x847   :  { %v5774_v51 = vpop.f32.mrf.mxu0 }
 0x848   :  { %v5796_v20 = vpop.f32.mrf.mxu1 }
 0x849   :  { %v5775_v7 = vpop.f32.mrf.mxu0 }
 0x84a   :  { %v5776_v28 = vadd.f32 %v5775_v7, %v5774_v51  ;;  %v5797_v24 = vpop.f32.mrf.mxu1 }
 0x84b   :  { %v5777_v63 = vpop.f32.mrf.mxu0  ;;  %v5798_v30 = vadd.f32 %v5797_v24, %v5796_v20 }
 0x84c   :  { %v4979_v29 = vadd.f32 %v5776_v28, %v3538_v21  ;;  %v5799_v0 = vpop.f32.mrf.mxu1 }
 0x84d   :  { %v5778_v31 = vpop.f32.mrf.mxu0 }
 0x84e   :  { %v5019_v32 = vadd.f32 %v5798_v30, %v4979_v29  ;;  %v5800_v34 = vpop.f32.mrf.mxu1 }
 0x850   :  { %v5030_v36 = vmul.f32 0.5, %v5019_v32 }
 0x852   :  { %6730 = vtanh.f32 %v5030_v36 }
 0x85f   :  { %v6731_v38 = vpop.eup %6730 }
 0x860   :  { %v5044_v39 = vmul.f32 0.5, %v6731_v38 }
 0x862   :  { %v5051_v40 = vadd.f32 0.5, %v5044_v39 }
 0x864   :  { %v5728_v59 = vpack.c.bf16 %v5051_v40, %v5051_v40 }
 0x866   :  { %5084 = vst [vmem:[%s8854_s18 + $0x18] sm:$0xf] %v5728_v59 }
 0x867   :  { %6741 = dma.done.wait [#allocation3], 16  }
 0x868   :  { %6742 = vsyncadd [#allocation3], 4294967280 }
 0x869   :  { %5100 = sfence }
 0x86a   :  { %5101 = vsyncpa [#allocation3], 1 }

</bundles_post_ra>
